<compile_context>
chip_gen: v7x
topology: tpu7x:2x2x1
jax: 0.10.0
libtpu: 0.0.40
codegen_flags: <defaults>
</compile_context>

<pallas_src>
import functools

import jax
import jax.numpy as jnp
from jax.experimental import pallas as pl
from jax.experimental.pallas import tpu as pltpu


def _ps_kernel(*refs, n_feat, cgs):
    """One sample-tile grid step for one center species.

    refs[:-1]: one VMEM ref per l, shape (2l+1, F, TN)   lane-major (samples on lanes)
    refs[-1] : VMEM output ref, shape (TN, (l_max+1)*F*F) samples-major, lane dense
    """
    o_ref = refs[-1]
    c_refs = refs[:-1]
    f = n_feat
    ff = f * f

    for li, (c_ref, cg) in enumerate(zip(c_refs, cgs)):
        n_m = c_ref.shape[0]                          # true 2l+1 (no zero padding)
        stripes = []
        for i in range(f):                            # static unroll (F is small)
            # stripe_i[j, :] = sum_m c[m, i, :] * c[m, j, :]
            # Each term is a (F, TN) full-lane-width VPU FMA; the m-sum is a
            # plain add of vreg planes (no XLU sublane reduce).
            c_m = c_ref[0].astype(jnp.float32)        # (F, TN)
            acc = c_m[i:i + 1, :] * c_m               # sublane-broadcast row i
            for m in range(1, n_m):
                c_m = c_ref[m].astype(jnp.float32)
                acc = acc + c_m[i:i + 1, :] * c_m
            stripes.append(acc)
        # Stack along sublanes -> (F*F, TN), fold in cg = (2l+1)^(-1/2), then a
        # single 128-aligned transpose back to samples-major (TN, F*F).
        res = jnp.concatenate(stripes, axis=0) * cg
        res = jnp.transpose(res, (1, 0))
        # 128-aligned, full-width (unmasked) stores into the concatenated slab.
        o_ref[:, li * ff:(li + 1) * ff] = res.astype(o_ref.dtype)


def _vmem_params():
    """Generation-aware VMEM sizing (v7x has 64 MiB, v5e/v6e have 128 MiB)."""
    try:
        cap = pltpu.get_tpu_info().vmem_capacity_bytes
    except Exception:
        cap = 64 * 1024 * 1024                 # conservative (v7x-sized) fallback
    budget = cap // 3                          # working-set target for tile sizing
    limit = min((cap * 5) // 8, 96 * 1024 * 1024)
    return budget, limit


def _pick_tile_n(n_samples, m_total, n_feat, n_l, budget_bytes):
    """Largest lane tile (multiple of 128) whose estimated double-buffered
    working set plus in-kernel temporaries fits the VMEM budget, capped so the
    grid keeps >= 2 steps when there is enough work (v7x megacore)."""
    out_cols = n_l * n_feat * n_feat
    bytes_per_col = 4 * (
        2 * m_total * n_feat       # double-buffered input tiles (all l)
        + 2 * out_cols             # double-buffered output tile
        + 3 * out_cols             # concat / transpose / scaled temporaries
        + 4 * n_feat)              # accumulator stripes
    max_cols = max(128, budget_bytes // bytes_per_col)
    n_pad = ((n_samples + 127) // 128) * 128
    tile = 128
    for cand in (2048, 1024, 512, 256, 128):
        if cand <= max_cols and cand <= n_pad:
            tile = cand
            break
    while tile > 128 and pl.cdiv(n_pad, tile) < 2:
        tile //= 2
    return tile


def power_spectrum_species(blocks_by_l, *, out_dtype=None):
    """cg_l * sum_m outer(c_l[n, m, :], c_l[n, m, :]) for every l, flattened and
    written directly into one (n_samples, (l_max+1)*F*F) concatenated array.

    blocks_by_l[l]: (n_samples, 2l+1, F) spherical-expansion coefficients.
    """
    n = int(blocks_by_l[0].shape[0])
    f = int(blocks_by_l[0].shape[2])
    ff = f * f
    n_l = len(blocks_by_l)
    out_cols = n_l * ff
    if out_dtype is None:
        out_dtype = blocks_by_l[0].dtype

    m_total = sum(int(b.shape[1]) for b in blocks_by_l)
    budget, vmem_limit = _vmem_params()
    tile_n = _pick_tile_n(n, m_total, f, n_l, budget)
    n_pad = pl.cdiv(n, tile_n) * tile_n

    # Lane-major inputs (2l+1, F, N_pad): one HBM pass over the (small) input
    # side only; zero-padded sample columns produce zero output rows that are
    # sliced off below.
    xt = []
    for b in blocks_by_l:
        t = jnp.transpose(b, (1, 2, 0))
        if n_pad != n:
            t = jnp.pad(t, ((0, 0), (0, 0), (0, n_pad - n)))
        xt.append(t)

    cgs = tuple(float(b.shape[1]) ** -0.5 for b in blocks_by_l)
    in_specs = [
        pl.BlockSpec((int(b.shape[1]), f, tile_n), lambda i: (0, 0, i))
        for b in blocks_by_l
    ]

    out = pl.pallas_call(
        functools.partial(_ps_kernel, n_feat=f, cgs=cgs),
        out_shape=jax.ShapeDtypeStruct((n_pad, out_cols), out_dtype),
        grid=(n_pad // tile_n,),
        in_specs=in_specs,
        out_specs=pl.BlockSpec((tile_n, out_cols), lambda i: (i, 0)),
        compiler_params=pltpu.CompilerParams(
            dimension_semantics=("parallel",),
            vmem_limit_bytes=vmem_limit),
    )(*xt)

    if n_pad != n:
        out = out[:n, :]
    return out


def power_spectrum_forward(spex, l_max, all_species):
    """JAX analogue of PowerSpectrum.forward.

    spex: dict {(l, a_i): array (n_samples, 2l+1, n_features)}
    returns: (keys, blocks) with keys = [[a_i], ...] and
             blocks = {a_i: array (n_samples, (l_max+1) * F^2)}
    """
    keys, blocks = [], {}
    for a_i in all_species:
        per_l = [spex[(l, a_i)] for l in range(l_max + 1)]
        keys.append([a_i])
        blocks[a_i] = power_spectrum_species(per_l)
    # TODO(synk): TensorMap/TensorBlock/Labels metadata containers have no
    # Pallas/JAX equivalent; returning plain (keys, dict-of-arrays) instead.
    return keys, blocks


def _reference_block(c):
    """Pure-JAX mirror of the PyTorch per-(a_i, l) computation."""
    m = c.shape[1]                       # m == 2l + 1
    cg = float(m) ** -0.5
    ps = cg * jnp.sum(c[:, :, :, None] * c[:, :, None, :], axis=1)
    return ps.reshape(c.shape[0], c.shape[2] * c.shape[2])


if __name__ == "__main__":
    l_max = 2
    all_species = [1, 6]
    n_samples = 8
    n_features = 16

    key = jax.random.PRNGKey(0)
    spex = {}
    for a_i in all_species:
        for l in range(l_max + 1):
            key, sub = jax.random.split(key)
            spex[(l, a_i)] = jax.random.normal(
                sub, (n_samples, 2 * l + 1, n_features), dtype=jnp.float32)

    keys, blocks = power_spectrum_forward(spex, l_max, all_species)
    for a_i in all_species:
        jax.block_until_ready(blocks[a_i])

    # Correctness check against a pure-JAX reference (same math as PyTorch).
    for a_i in all_species:
        ref = jnp.concatenate(
            [_reference_block(spex[(l, a_i)]) for l in range(l_max + 1)],
            axis=-1)
        assert blocks[a_i].shape == (n_samples, (l_max + 1) * n_features ** 2)
        assert jnp.allclose(blocks[a_i], ref, atol=1e-5, rtol=1e-5)

    print("KERNEL_OK")
</pallas_src>

<mosaic_0001>
module attributes {stable_mosaic.version = 11 : i64} {
  func.func @_ps_kernel(%arg0: i32, %arg1: memref<1x16x128xf32, #tpu.memory_space<vmem>>, %arg2: memref<3x16x128xf32, #tpu.memory_space<vmem>>, %arg3: memref<5x16x128xf32, #tpu.memory_space<vmem>>, %arg4: memref<128x768xf32, #tpu.memory_space<vmem>>) attributes {dimension_semantics = [#tpu.dimension_semantics<parallel>], iteration_bounds = array<i64: 1>, scalar_prefetch = 0 : i64, scratch_operands = 0 : i64, tpu.core_type = #tpu.core_type<tc>, window_params = [{transform_indices = @transform_0, window_bounds = array<i64: 1, 16, 128>}, {transform_indices = @transform_1, window_bounds = array<i64: 3, 16, 128>}, {transform_indices = @transform_2, window_bounds = array<i64: 5, 16, 128>}, {transform_indices = @transform_3, window_bounds = array<i64: 128, 768>}]} {
    %c0 = arith.constant 0 : index
    %c0_0 = arith.constant 0 : index
    %c0_1 = arith.constant 0 : index
    %0 = vector.load %arg1[%c0, %c0_0, %c0_1] : memref<1x16x128xf32, #tpu.memory_space<vmem>>, vector<1x16x128xf32>
    %1 = vector.shape_cast %0 : vector<1x16x128xf32> to vector<16x128xf32>
    %2 = vector.extract_strided_slice %1 {offsets = [0, 0], sizes = [1, 128], strides = [1, 1]} : vector<16x128xf32> to vector<1x128xf32>
    %3 = vector.broadcast %2 : vector<1x128xf32> to vector<16x128xf32>
    %4 = arith.mulf %3, %1 : vector<16x128xf32>
    %c0_2 = arith.constant 0 : index
    %c0_3 = arith.constant 0 : index
    %c0_4 = arith.constant 0 : index
    %5 = vector.load %arg1[%c0_2, %c0_3, %c0_4] : memref<1x16x128xf32, #tpu.memory_space<vmem>>, vector<1x16x128xf32>
    %6 = vector.shape_cast %5 : vector<1x16x128xf32> to vector<16x128xf32>
    %7 = vector.extract_strided_slice %6 {offsets = [1, 0], sizes = [1, 128], strides = [1, 1]} : vector<16x128xf32> to vector<1x128xf32>
    %8 = vector.broadcast %7 : vector<1x128xf32> to vector<16x128xf32>
    %9 = arith.mulf %8, %6 : vector<16x128xf32>
    %c0_5 = arith.constant 0 : index
    %c0_6 = arith.constant 0 : index
    %c0_7 = arith.constant 0 : index
    %10 = vector.load %arg1[%c0_5, %c0_6, %c0_7] : memref<1x16x128xf32, #tpu.memory_space<vmem>>, vector<1x16x128xf32>
    %11 = vector.shape_cast %10 : vector<1x16x128xf32> to vector<16x128xf32>
    %12 = vector.extract_strided_slice %11 {offsets = [2, 0], sizes = [1, 128], strides = [1, 1]} : vector<16x128xf32> to vector<1x128xf32>
    %13 = vector.broadcast %12 : vector<1x128xf32> to vector<16x128xf32>
    %14 = arith.mulf %13, %11 : vector<16x128xf32>
    %c0_8 = arith.constant 0 : index
    %c0_9 = arith.constant 0 : index
    %c0_10 = arith.constant 0 : index
    %15 = vector.load %arg1[%c0_8, %c0_9, %c0_10] : memref<1x16x128xf32, #tpu.memory_space<vmem>>, vector<1x16x128xf32>
    %16 = vector.shape_cast %15 : vector<1x16x128xf32> to vector<16x128xf32>
    %17 = vector.extract_strided_slice %16 {offsets = [3, 0], sizes = [1, 128], strides = [1, 1]} : vector<16x128xf32> to vector<1x128xf32>
    %18 = vector.broadcast %17 : vector<1x128xf32> to vector<16x128xf32>
    %19 = arith.mulf %18, %16 : vector<16x128xf32>
    %c0_11 = arith.constant 0 : index
    %c0_12 = arith.constant 0 : index
    %c0_13 = arith.constant 0 : index
    %20 = vector.load %arg1[%c0_11, %c0_12, %c0_13] : memref<1x16x128xf32, #tpu.memory_space<vmem>>, vector<1x16x128xf32>
    %21 = vector.shape_cast %20 : vector<1x16x128xf32> to vector<16x128xf32>
    %22 = vector.extract_strided_slice %21 {offsets = [4, 0], sizes = [1, 128], strides = [1, 1]} : vector<16x128xf32> to vector<1x128xf32>
    %23 = vector.broadcast %22 : vector<1x128xf32> to vector<16x128xf32>
    %24 = arith.mulf %23, %21 : vector<16x128xf32>
    %c0_14 = arith.constant 0 : index
    %c0_15 = arith.constant 0 : index
    %c0_16 = arith.constant 0 : index
    %25 = vector.load %arg1[%c0_14, %c0_15, %c0_16] : memref<1x16x128xf32, #tpu.memory_space<vmem>>, vector<1x16x128xf32>
    %26 = vector.shape_cast %25 : vector<1x16x128xf32> to vector<16x128xf32>
    %27 = vector.extract_strided_slice %26 {offsets = [5, 0], sizes = [1, 128], strides = [1, 1]} : vector<16x128xf32> to vector<1x128xf32>
    %28 = vector.broadcast %27 : vector<1x128xf32> to vector<16x128xf32>
    %29 = arith.mulf %28, %26 : vector<16x128xf32>
    %c0_17 = arith.constant 0 : index
    %c0_18 = arith.constant 0 : index
    %c0_19 = arith.constant 0 : index
    %30 = vector.load %arg1[%c0_17, %c0_18, %c0_19] : memref<1x16x128xf32, #tpu.memory_space<vmem>>, vector<1x16x128xf32>
    %31 = vector.shape_cast %30 : vector<1x16x128xf32> to vector<16x128xf32>
    %32 = vector.extract_strided_slice %31 {offsets = [6, 0], sizes = [1, 128], strides = [1, 1]} : vector<16x128xf32> to vector<1x128xf32>
    %33 = vector.broadcast %32 : vector<1x128xf32> to vector<16x128xf32>
    %34 = arith.mulf %33, %31 : vector<16x128xf32>
    %c0_20 = arith.constant 0 : index
    %c0_21 = arith.constant 0 : index
    %c0_22 = arith.constant 0 : index
    %35 = vector.load %arg1[%c0_20, %c0_21, %c0_22] : memref<1x16x128xf32, #tpu.memory_space<vmem>>, vector<1x16x128xf32>
    %36 = vector.shape_cast %35 : vector<1x16x128xf32> to vector<16x128xf32>
    %37 = vector.extract_strided_slice %36 {offsets = [7, 0], sizes = [1, 128], strides = [1, 1]} : vector<16x128xf32> to vector<1x128xf32>
    %38 = vector.broadcast %37 : vector<1x128xf32> to vector<16x128xf32>
    %39 = arith.mulf %38, %36 : vector<16x128xf32>
    %c0_23 = arith.constant 0 : index
    %c0_24 = arith.constant 0 : index
    %c0_25 = arith.constant 0 : index
    %40 = vector.load %arg1[%c0_23, %c0_24, %c0_25] : memref<1x16x128xf32, #tpu.memory_space<vmem>>, vector<1x16x128xf32>
    %41 = vector.shape_cast %40 : vector<1x16x128xf32> to vector<16x128xf32>
    %42 = vector.extract_strided_slice %41 {offsets = [8, 0], sizes = [1, 128], strides = [1, 1]} : vector<16x128xf32> to vector<1x128xf32>
    %43 = vector.broadcast %42 : vector<1x128xf32> to vector<16x128xf32>
    %44 = arith.mulf %43, %41 : vector<16x128xf32>
    %c0_26 = arith.constant 0 : index
    %c0_27 = arith.constant 0 : index
    %c0_28 = arith.constant 0 : index
    %45 = vector.load %arg1[%c0_26, %c0_27, %c0_28] : memref<1x16x128xf32, #tpu.memory_space<vmem>>, vector<1x16x128xf32>
    %46 = vector.shape_cast %45 : vector<1x16x128xf32> to vector<16x128xf32>
    %47 = vector.extract_strided_slice %46 {offsets = [9, 0], sizes = [1, 128], strides = [1, 1]} : vector<16x128xf32> to vector<1x128xf32>
    %48 = vector.broadcast %47 : vector<1x128xf32> to vector<16x128xf32>
    %49 = arith.mulf %48, %46 : vector<16x128xf32>
    %c0_29 = arith.constant 0 : index
    %c0_30 = arith.constant 0 : index
    %c0_31 = arith.constant 0 : index
    %50 = vector.load %arg1[%c0_29, %c0_30, %c0_31] : memref<1x16x128xf32, #tpu.memory_space<vmem>>, vector<1x16x128xf32>
    %51 = vector.shape_cast %50 : vector<1x16x128xf32> to vector<16x128xf32>
    %52 = vector.extract_strided_slice %51 {offsets = [10, 0], sizes = [1, 128], strides = [1, 1]} : vector<16x128xf32> to vector<1x128xf32>
    %53 = vector.broadcast %52 : vector<1x128xf32> to vector<16x128xf32>
    %54 = arith.mulf %53, %51 : vector<16x128xf32>
    %c0_32 = arith.constant 0 : index
    %c0_33 = arith.constant 0 : index
    %c0_34 = arith.constant 0 : index
    %55 = vector.load %arg1[%c0_32, %c0_33, %c0_34] : memref<1x16x128xf32, #tpu.memory_space<vmem>>, vector<1x16x128xf32>
    %56 = vector.shape_cast %55 : vector<1x16x128xf32> to vector<16x128xf32>
    %57 = vector.extract_strided_slice %56 {offsets = [11, 0], sizes = [1, 128], strides = [1, 1]} : vector<16x128xf32> to vector<1x128xf32>
    %58 = vector.broadcast %57 : vector<1x128xf32> to vector<16x128xf32>
    %59 = arith.mulf %58, %56 : vector<16x128xf32>
    %c0_35 = arith.constant 0 : index
    %c0_36 = arith.constant 0 : index
    %c0_37 = arith.constant 0 : index
    %60 = vector.load %arg1[%c0_35, %c0_36, %c0_37] : memref<1x16x128xf32, #tpu.memory_space<vmem>>, vector<1x16x128xf32>
    %61 = vector.shape_cast %60 : vector<1x16x128xf32> to vector<16x128xf32>
    %62 = vector.extract_strided_slice %61 {offsets = [12, 0], sizes = [1, 128], strides = [1, 1]} : vector<16x128xf32> to vector<1x128xf32>
    %63 = vector.broadcast %62 : vector<1x128xf32> to vector<16x128xf32>
    %64 = arith.mulf %63, %61 : vector<16x128xf32>
    %c0_38 = arith.constant 0 : index
    %c0_39 = arith.constant 0 : index
    %c0_40 = arith.constant 0 : index
    %65 = vector.load %arg1[%c0_38, %c0_39, %c0_40] : memref<1x16x128xf32, #tpu.memory_space<vmem>>, vector<1x16x128xf32>
    %66 = vector.shape_cast %65 : vector<1x16x128xf32> to vector<16x128xf32>
    %67 = vector.extract_strided_slice %66 {offsets = [13, 0], sizes = [1, 128], strides = [1, 1]} : vector<16x128xf32> to vector<1x128xf32>
    %68 = vector.broadcast %67 : vector<1x128xf32> to vector<16x128xf32>
    %69 = arith.mulf %68, %66 : vector<16x128xf32>
    %c0_41 = arith.constant 0 : index
    %c0_42 = arith.constant 0 : index
    %c0_43 = arith.constant 0 : index
    %70 = vector.load %arg1[%c0_41, %c0_42, %c0_43] : memref<1x16x128xf32, #tpu.memory_space<vmem>>, vector<1x16x128xf32>
    %71 = vector.shape_cast %70 : vector<1x16x128xf32> to vector<16x128xf32>
    %72 = vector.extract_strided_slice %71 {offsets = [14, 0], sizes = [1, 128], strides = [1, 1]} : vector<16x128xf32> to vector<1x128xf32>
    %73 = vector.broadcast %72 : vector<1x128xf32> to vector<16x128xf32>
    %74 = arith.mulf %73, %71 : vector<16x128xf32>
    %c0_44 = arith.constant 0 : index
    %c0_45 = arith.constant 0 : index
    %c0_46 = arith.constant 0 : index
    %75 = vector.load %arg1[%c0_44, %c0_45, %c0_46] : memref<1x16x128xf32, #tpu.memory_space<vmem>>, vector<1x16x128xf32>
    %76 = vector.shape_cast %75 : vector<1x16x128xf32> to vector<16x128xf32>
    %77 = vector.extract_strided_slice %76 {offsets = [15, 0], sizes = [1, 128], strides = [1, 1]} : vector<16x128xf32> to vector<1x128xf32>
    %78 = vector.broadcast %77 : vector<1x128xf32> to vector<16x128xf32>
    %79 = arith.mulf %78, %76 : vector<16x128xf32>
    %80 = tpu.concatenate %4, %9, %14, %19, %24, %29, %34, %39, %44, %49, %54, %59, %64, %69, %74, %79 in 0 : vector<16x128xf32>, vector<16x128xf32>, vector<16x128xf32>, vector<16x128xf32>, vector<16x128xf32>, vector<16x128xf32>, vector<16x128xf32>, vector<16x128xf32>, vector<16x128xf32>, vector<16x128xf32>, vector<16x128xf32>, vector<16x128xf32>, vector<16x128xf32>, vector<16x128xf32>, vector<16x128xf32>, vector<16x128xf32> -> vector<256x128xf32>
    %cst = arith.constant 1.000000e+00 : f32
    %81 = vector.broadcast %cst : f32 to vector<256x128xf32>
    %82 = arith.mulf %80, %81 : vector<256x128xf32>
    %83 = tpu.transpose %82, [1, 0] : vector<256x128xf32> -> vector<128x256xf32>
    %c0_47 = arith.constant 0 : index
    %c0_48 = arith.constant 0 : index
    %84 = vector.load %arg4[%c0_47, %c0_48] : memref<128x768xf32, #tpu.memory_space<vmem>>, vector<128x256xf32>
    tpu.vector_store %arg4[%c0_47, %c0_48], %83 {strides = array<i32>} : memref<128x768xf32, #tpu.memory_space<vmem>>, vector<128x256xf32>,
    %c0_49 = arith.constant 0 : index
    %c0_50 = arith.constant 0 : index
    %c0_51 = arith.constant 0 : index
    %85 = vector.load %arg2[%c0_49, %c0_50, %c0_51] : memref<3x16x128xf32, #tpu.memory_space<vmem>>, vector<1x16x128xf32>
    %86 = vector.shape_cast %85 : vector<1x16x128xf32> to vector<16x128xf32>
    %87 = vector.extract_strided_slice %86 {offsets = [0, 0], sizes = [1, 128], strides = [1, 1]} : vector<16x128xf32> to vector<1x128xf32>
    %88 = vector.broadcast %87 : vector<1x128xf32> to vector<16x128xf32>
    %89 = arith.mulf %88, %86 : vector<16x128xf32>
    %c1 = arith.constant 1 : index
    %c0_52 = arith.constant 0 : index
    %c0_53 = arith.constant 0 : index
    %90 = vector.load %arg2[%c1, %c0_52, %c0_53] : memref<3x16x128xf32, #tpu.memory_space<vmem>>, vector<1x16x128xf32>
    %91 = vector.shape_cast %90 : vector<1x16x128xf32> to vector<16x128xf32>
    %92 = vector.extract_strided_slice %91 {offsets = [0, 0], sizes = [1, 128], strides = [1, 1]} : vector<16x128xf32> to vector<1x128xf32>
    %93 = vector.broadcast %92 : vector<1x128xf32> to vector<16x128xf32>
    %94 = arith.mulf %93, %91 : vector<16x128xf32>
    %95 = arith.addf %89, %94 : vector<16x128xf32>
    %c2 = arith.constant 2 : index
    %c0_54 = arith.constant 0 : index
    %c0_55 = arith.constant 0 : index
    %96 = vector.load %arg2[%c2, %c0_54, %c0_55] : memref<3x16x128xf32, #tpu.memory_space<vmem>>, vector<1x16x128xf32>
    %97 = vector.shape_cast %96 : vector<1x16x128xf32> to vector<16x128xf32>
    %98 = vector.extract_strided_slice %97 {offsets = [0, 0], sizes = [1, 128], strides = [1, 1]} : vector<16x128xf32> to vector<1x128xf32>
    %99 = vector.broadcast %98 : vector<1x128xf32> to vector<16x128xf32>
    %100 = arith.mulf %99, %97 : vector<16x128xf32>
    %101 = arith.addf %95, %100 : vector<16x128xf32>
    %c0_56 = arith.constant 0 : index
    %c0_57 = arith.constant 0 : index
    %c0_58 = arith.constant 0 : index
    %102 = vector.load %arg2[%c0_56, %c0_57, %c0_58] : memref<3x16x128xf32, #tpu.memory_space<vmem>>, vector<1x16x128xf32>
    %103 = vector.shape_cast %102 : vector<1x16x128xf32> to vector<16x128xf32>
    %104 = vector.extract_strided_slice %103 {offsets = [1, 0], sizes = [1, 128], strides = [1, 1]} : vector<16x128xf32> to vector<1x128xf32>
    %105 = vector.broadcast %104 : vector<1x128xf32> to vector<16x128xf32>
    %106 = arith.mulf %105, %103 : vector<16x128xf32>
    %c1_59 = arith.constant 1 : index
    %c0_60 = arith.constant 0 : index
    %c0_61 = arith.constant 0 : index
    %107 = vector.load %arg2[%c1_59, %c0_60, %c0_61] : memref<3x16x128xf32, #tpu.memory_space<vmem>>, vector<1x16x128xf32>
    %108 = vector.shape_cast %107 : vector<1x16x128xf32> to vector<16x128xf32>
    %109 = vector.extract_strided_slice %108 {offsets = [1, 0], sizes = [1, 128], strides = [1, 1]} : vector<16x128xf32> to vector<1x128xf32>
    %110 = vector.broadcast %109 : vector<1x128xf32> to vector<16x128xf32>
    %111 = arith.mulf %110, %108 : vector<16x128xf32>
    %112 = arith.addf %106, %111 : vector<16x128xf32>
    %c2_62 = arith.constant 2 : index
    %c0_63 = arith.constant 0 : index
    %c0_64 = arith.constant 0 : index
    %113 = vector.load %arg2[%c2_62, %c0_63, %c0_64] : memref<3x16x128xf32, #tpu.memory_space<vmem>>, vector<1x16x128xf32>
    %114 = vector.shape_cast %113 : vector<1x16x128xf32> to vector<16x128xf32>
    %115 = vector.extract_strided_slice %114 {offsets = [1, 0], sizes = [1, 128], strides = [1, 1]} : vector<16x128xf32> to vector<1x128xf32>
    %116 = vector.broadcast %115 : vector<1x128xf32> to vector<16x128xf32>
    %117 = arith.mulf %116, %114 : vector<16x128xf32>
    %118 = arith.addf %112, %117 : vector<16x128xf32>
    %c0_65 = arith.constant 0 : index
    %c0_66 = arith.constant 0 : index
    %c0_67 = arith.constant 0 : index
    %119 = vector.load %arg2[%c0_65, %c0_66, %c0_67] : memref<3x16x128xf32, #tpu.memory_space<vmem>>, vector<1x16x128xf32>
    %120 = vector.shape_cast %119 : vector<1x16x128xf32> to vector<16x128xf32>
    %121 = vector.extract_strided_slice %120 {offsets = [2, 0], sizes = [1, 128], strides = [1, 1]} : vector<16x128xf32> to vector<1x128xf32>
    %122 = vector.broadcast %121 : vector<1x128xf32> to vector<16x128xf32>
    %123 = arith.mulf %122, %120 : vector<16x128xf32>
    %c1_68 = arith.constant 1 : index
    %c0_69 = arith.constant 0 : index
    %c0_70 = arith.constant 0 : index
    %124 = vector.load %arg2[%c1_68, %c0_69, %c0_70] : memref<3x16x128xf32, #tpu.memory_space<vmem>>, vector<1x16x128xf32>
    %125 = vector.shape_cast %124 : vector<1x16x128xf32> to vector<16x128xf32>
    %126 = vector.extract_strided_slice %125 {offsets = [2, 0], sizes = [1, 128], strides = [1, 1]} : vector<16x128xf32> to vector<1x128xf32>
    %127 = vector.broadcast %126 : vector<1x128xf32> to vector<16x128xf32>
    %128 = arith.mulf %127, %125 : vector<16x128xf32>
    %129 = arith.addf %123, %128 : vector<16x128xf32>
    %c2_71 = arith.constant 2 : index
    %c0_72 = arith.constant 0 : index
    %c0_73 = arith.constant 0 : index
    %130 = vector.load %arg2[%c2_71, %c0_72, %c0_73] : memref<3x16x128xf32, #tpu.memory_space<vmem>>, vector<1x16x128xf32>
    %131 = vector.shape_cast %130 : vector<1x16x128xf32> to vector<16x128xf32>
    %132 = vector.extract_strided_slice %131 {offsets = [2, 0], sizes = [1, 128], strides = [1, 1]} : vector<16x128xf32> to vector<1x128xf32>
    %133 = vector.broadcast %132 : vector<1x128xf32> to vector<16x128xf32>
    %134 = arith.mulf %133, %131 : vector<16x128xf32>
    %135 = arith.addf %129, %134 : vector<16x128xf32>
    %c0_74 = arith.constant 0 : index
    %c0_75 = arith.constant 0 : index
    %c0_76 = arith.constant 0 : index
    %136 = vector.load %arg2[%c0_74, %c0_75, %c0_76] : memref<3x16x128xf32, #tpu.memory_space<vmem>>, vector<1x16x128xf32>
    %137 = vector.shape_cast %136 : vector<1x16x128xf32> to vector<16x128xf32>
    %138 = vector.extract_strided_slice %137 {offsets = [3, 0], sizes = [1, 128], strides = [1, 1]} : vector<16x128xf32> to vector<1x128xf32>
    %139 = vector.broadcast %138 : vector<1x128xf32> to vector<16x128xf32>
    %140 = arith.mulf %139, %137 : vector<16x128xf32>
    %c1_77 = arith.constant 1 : index
    %c0_78 = arith.constant 0 : index
    %c0_79 = arith.constant 0 : index
    %141 = vector.load %arg2[%c1_77, %c0_78, %c0_79] : memref<3x16x128xf32, #tpu.memory_space<vmem>>, vector<1x16x128xf32>
    %142 = vector.shape_cast %141 : vector<1x16x128xf32> to vector<16x128xf32>
    %143 = vector.extract_strided_slice %142 {offsets = [3, 0], sizes = [1, 128], strides = [1, 1]} : vector<16x128xf32> to vector<1x128xf32>
    %144 = vector.broadcast %143 : vector<1x128xf32> to vector<16x128xf32>
    %145 = arith.mulf %144, %142 : vector<16x128xf32>
    %146 = arith.addf %140, %145 : vector<16x128xf32>
    %c2_80 = arith.constant 2 : index
    %c0_81 = arith.constant 0 : index
    %c0_82 = arith.constant 0 : index
    %147 = vector.load %arg2[%c2_80, %c0_81, %c0_82] : memref<3x16x128xf32, #tpu.memory_space<vmem>>, vector<1x16x128xf32>
    %148 = vector.shape_cast %147 : vector<1x16x128xf32> to vector<16x128xf32>
    %149 = vector.extract_strided_slice %148 {offsets = [3, 0], sizes = [1, 128], strides = [1, 1]} : vector<16x128xf32> to vector<1x128xf32>
    %150 = vector.broadcast %149 : vector<1x128xf32> to vector<16x128xf32>
    %151 = arith.mulf %150, %148 : vector<16x128xf32>
    %152 = arith.addf %146, %151 : vector<16x128xf32>
    %c0_83 = arith.constant 0 : index
    %c0_84 = arith.constant 0 : index
    %c0_85 = arith.constant 0 : index
    %153 = vector.load %arg2[%c0_83, %c0_84, %c0_85] : memref<3x16x128xf32, #tpu.memory_space<vmem>>, vector<1x16x128xf32>
    %154 = vector.shape_cast %153 : vector<1x16x128xf32> to vector<16x128xf32>
    %155 = vector.extract_strided_slice %154 {offsets = [4, 0], sizes = [1, 128], strides = [1, 1]} : vector<16x128xf32> to vector<1x128xf32>
    %156 = vector.broadcast %155 : vector<1x128xf32> to vector<16x128xf32>
    %157 = arith.mulf %156, %154 : vector<16x128xf32>
    %c1_86 = arith.constant 1 : index
    %c0_87 = arith.constant 0 : index
    %c0_88 = arith.constant 0 : index
    %158 = vector.load %arg2[%c1_86, %c0_87, %c0_88] : memref<3x16x128xf32, #tpu.memory_space<vmem>>, vector<1x16x128xf32>
    %159 = vector.shape_cast %158 : vector<1x16x128xf32> to vector<16x128xf32>
    %160 = vector.extract_strided_slice %159 {offsets = [4, 0], sizes = [1, 128], strides = [1, 1]} : vector<16x128xf32> to vector<1x128xf32>
    %161 = vector.broadcast %160 : vector<1x128xf32> to vector<16x128xf32>
    %162 = arith.mulf %161, %159 : vector<16x128xf32>
    %163 = arith.addf %157, %162 : vector<16x128xf32>
    %c2_89 = arith.constant 2 : index
    %c0_90 = arith.constant 0 : index
    %c0_91 = arith.constant 0 : index
    %164 = vector.load %arg2[%c2_89, %c0_90, %c0_91] : memref<3x16x128xf32, #tpu.memory_space<vmem>>, vector<1x16x128xf32>
    %165 = vector.shape_cast %164 : vector<1x16x128xf32> to vector<16x128xf32>
    %166 = vector.extract_strided_slice %165 {offsets = [4, 0], sizes = [1, 128], strides = [1, 1]} : vector<16x128xf32> to vector<1x128xf32>
    %167 = vector.broadcast %166 : vector<1x128xf32> to vector<16x128xf32>
    %168 = arith.mulf %167, %165 : vector<16x128xf32>
    %169 = arith.addf %163, %168 : vector<16x128xf32>
    %c0_92 = arith.constant 0 : index
    %c0_93 = arith.constant 0 : index
    %c0_94 = arith.constant 0 : index
    %170 = vector.load %arg2[%c0_92, %c0_93, %c0_94] : memref<3x16x128xf32, #tpu.memory_space<vmem>>, vector<1x16x128xf32>
    %171 = vector.shape_cast %170 : vector<1x16x128xf32> to vector<16x128xf32>
    %172 = vector.extract_strided_slice %171 {offsets = [5, 0], sizes = [1, 128], strides = [1, 1]} : vector<16x128xf32> to vector<1x128xf32>
    %173 = vector.broadcast %172 : vector<1x128xf32> to vector<16x128xf32>
    %174 = arith.mulf %173, %171 : vector<16x128xf32>
    %c1_95 = arith.constant 1 : index
    %c0_96 = arith.constant 0 : index
    %c0_97 = arith.constant 0 : index
    %175 = vector.load %arg2[%c1_95, %c0_96, %c0_97] : memref<3x16x128xf32, #tpu.memory_space<vmem>>, vector<1x16x128xf32>
    %176 = vector.shape_cast %175 : vector<1x16x128xf32> to vector<16x128xf32>
    %177 = vector.extract_strided_slice %176 {offsets = [5, 0], sizes = [1, 128], strides = [1, 1]} : vector<16x128xf32> to vector<1x128xf32>
    %178 = vector.broadcast %177 : vector<1x128xf32> to vector<16x128xf32>
    %179 = arith.mulf %178, %176 : vector<16x128xf32>
    %180 = arith.addf %174, %179 : vector<16x128xf32>
    %c2_98 = arith.constant 2 : index
    %c0_99 = arith.constant 0 : index
    %c0_100 = arith.constant 0 : index
    %181 = vector.load %arg2[%c2_98, %c0_99, %c0_100] : memref<3x16x128xf32, #tpu.memory_space<vmem>>, vector<1x16x128xf32>
    %182 = vector.shape_cast %181 : vector<1x16x128xf32> to vector<16x128xf32>
    %183 = vector.extract_strided_slice %182 {offsets = [5, 0], sizes = [1, 128], strides = [1, 1]} : vector<16x128xf32> to vector<1x128xf32>
    %184 = vector.broadcast %183 : vector<1x128xf32> to vector<16x128xf32>
    %185 = arith.mulf %184, %182 : vector<16x128xf32>
    %186 = arith.addf %180, %185 : vector<16x128xf32>
    %c0_101 = arith.constant 0 : index
    %c0_102 = arith.constant 0 : index
    %c0_103 = arith.constant 0 : index
    %187 = vector.load %arg2[%c0_101, %c0_102, %c0_103] : memref<3x16x128xf32, #tpu.memory_space<vmem>>, vector<1x16x128xf32>
    %188 = vector.shape_cast %187 : vector<1x16x128xf32> to vector<16x128xf32>
    %189 = vector.extract_strided_slice %188 {offsets = [6, 0], sizes = [1, 128], strides = [1, 1]} : vector<16x128xf32> to vector<1x128xf32>
    %190 = vector.broadcast %189 : vector<1x128xf32> to vector<16x128xf32>
    %191 = arith.mulf %190, %188 : vector<16x128xf32>
    %c1_104 = arith.constant 1 : index
    %c0_105 = arith.constant 0 : index
    %c0_106 = arith.constant 0 : index
    %192 = vector.load %arg2[%c1_104, %c0_105, %c0_106] : memref<3x16x128xf32, #tpu.memory_space<vmem>>, vector<1x16x128xf32>
    %193 = vector.shape_cast %192 : vector<1x16x128xf32> to vector<16x128xf32>
    %194 = vector.extract_strided_slice %193 {offsets = [6, 0], sizes = [1, 128], strides = [1, 1]} : vector<16x128xf32> to vector<1x128xf32>
    %195 = vector.broadcast %194 : vector<1x128xf32> to vector<16x128xf32>
    %196 = arith.mulf %195, %193 : vector<16x128xf32>
    %197 = arith.addf %191, %196 : vector<16x128xf32>
    %c2_107 = arith.constant 2 : index
    %c0_108 = arith.constant 0 : index
    %c0_109 = arith.constant 0 : index
    %198 = vector.load %arg2[%c2_107, %c0_108, %c0_109] : memref<3x16x128xf32, #tpu.memory_space<vmem>>, vector<1x16x128xf32>
    %199 = vector.shape_cast %198 : vector<1x16x128xf32> to vector<16x128xf32>
    %200 = vector.extract_strided_slice %199 {offsets = [6, 0], sizes = [1, 128], strides = [1, 1]} : vector<16x128xf32> to vector<1x128xf32>
    %201 = vector.broadcast %200 : vector<1x128xf32> to vector<16x128xf32>
    %202 = arith.mulf %201, %199 : vector<16x128xf32>
    %203 = arith.addf %197, %202 : vector<16x128xf32>
    %c0_110 = arith.constant 0 : index
    %c0_111 = arith.constant 0 : index
    %c0_112 = arith.constant 0 : index
    %204 = vector.load %arg2[%c0_110, %c0_111, %c0_112] : memref<3x16x128xf32, #tpu.memory_space<vmem>>, vector<1x16x128xf32>
    %205 = vector.shape_cast %204 : vector<1x16x128xf32> to vector<16x128xf32>
    %206 = vector.extract_strided_slice %205 {offsets = [7, 0], sizes = [1, 128], strides = [1, 1]} : vector<16x128xf32> to vector<1x128xf32>
    %207 = vector.broadcast %206 : vector<1x128xf32> to vector<16x128xf32>
    %208 = arith.mulf %207, %205 : vector<16x128xf32>
    %c1_113 = arith.constant 1 : index
    %c0_114 = arith.constant 0 : index
    %c0_115 = arith.constant 0 : index
    %209 = vector.load %arg2[%c1_113, %c0_114, %c0_115] : memref<3x16x128xf32, #tpu.memory_space<vmem>>, vector<1x16x128xf32>
    %210 = vector.shape_cast %209 : vector<1x16x128xf32> to vector<16x128xf32>
    %211 = vector.extract_strided_slice %210 {offsets = [7, 0], sizes = [1, 128], strides = [1, 1]} : vector<16x128xf32> to vector<1x128xf32>
    %212 = vector.broadcast %211 : vector<1x128xf32> to vector<16x128xf32>
    %213 = arith.mulf %212, %210 : vector<16x128xf32>
    %214 = arith.addf %208, %213 : vector<16x128xf32>
    %c2_116 = arith.constant 2 : index
    %c0_117 = arith.constant 0 : index
    %c0_118 = arith.constant 0 : index
    %215 = vector.load %arg2[%c2_116, %c0_117, %c0_118] : memref<3x16x128xf32, #tpu.memory_space<vmem>>, vector<1x16x128xf32>
    %216 = vector.shape_cast %215 : vector<1x16x128xf32> to vector<16x128xf32>
    %217 = vector.extract_strided_slice %216 {offsets = [7, 0], sizes = [1, 128], strides = [1, 1]} : vector<16x128xf32> to vector<1x128xf32>
    %218 = vector.broadcast %217 : vector<1x128xf32> to vector<16x128xf32>
    %219 = arith.mulf %218, %216 : vector<16x128xf32>
    %220 = arith.addf %214, %219 : vector<16x128xf32>
    %c0_119 = arith.constant 0 : index
    %c0_120 = arith.constant 0 : index
    %c0_121 = arith.constant 0 : index
    %221 = vector.load %arg2[%c0_119, %c0_120, %c0_121] : memref<3x16x128xf32, #tpu.memory_space<vmem>>, vector<1x16x128xf32>
    %222 = vector.shape_cast %221 : vector<1x16x128xf32> to vector<16x128xf32>
    %223 = vector.extract_strided_slice %222 {offsets = [8, 0], sizes = [1, 128], strides = [1, 1]} : vector<16x128xf32> to vector<1x128xf32>
    %224 = vector.broadcast %223 : vector<1x128xf32> to vector<16x128xf32>
    %225 = arith.mulf %224, %222 : vector<16x128xf32>
    %c1_122 = arith.constant 1 : index
    %c0_123 = arith.constant 0 : index
    %c0_124 = arith.constant 0 : index
    %226 = vector.load %arg2[%c1_122, %c0_123, %c0_124] : memref<3x16x128xf32, #tpu.memory_space<vmem>>, vector<1x16x128xf32>
    %227 = vector.shape_cast %226 : vector<1x16x128xf32> to vector<16x128xf32>
    %228 = vector.extract_strided_slice %227 {offsets = [8, 0], sizes = [1, 128], strides = [1, 1]} : vector<16x128xf32> to vector<1x128xf32>
    %229 = vector.broadcast %228 : vector<1x128xf32> to vector<16x128xf32>
    %230 = arith.mulf %229, %227 : vector<16x128xf32>
    %231 = arith.addf %225, %230 : vector<16x128xf32>
    %c2_125 = arith.constant 2 : index
    %c0_126 = arith.constant 0 : index
    %c0_127 = arith.constant 0 : index
    %232 = vector.load %arg2[%c2_125, %c0_126, %c0_127] : memref<3x16x128xf32, #tpu.memory_space<vmem>>, vector<1x16x128xf32>
    %233 = vector.shape_cast %232 : vector<1x16x128xf32> to vector<16x128xf32>
    %234 = vector.extract_strided_slice %233 {offsets = [8, 0], sizes = [1, 128], strides = [1, 1]} : vector<16x128xf32> to vector<1x128xf32>
    %235 = vector.broadcast %234 : vector<1x128xf32> to vector<16x128xf32>
    %236 = arith.mulf %235, %233 : vector<16x128xf32>
    %237 = arith.addf %231, %236 : vector<16x128xf32>
    %c0_128 = arith.constant 0 : index
    %c0_129 = arith.constant 0 : index
    %c0_130 = arith.constant 0 : index
    %238 = vector.load %arg2[%c0_128, %c0_129, %c0_130] : memref<3x16x128xf32, #tpu.memory_space<vmem>>, vector<1x16x128xf32>
    %239 = vector.shape_cast %238 : vector<1x16x128xf32> to vector<16x128xf32>
    %240 = vector.extract_strided_slice %239 {offsets = [9, 0], sizes = [1, 128], strides = [1, 1]} : vector<16x128xf32> to vector<1x128xf32>
    %241 = vector.broadcast %240 : vector<1x128xf32> to vector<16x128xf32>
    %242 = arith.mulf %241, %239 : vector<16x128xf32>
    %c1_131 = arith.constant 1 : index
    %c0_132 = arith.constant 0 : index
    %c0_133 = arith.constant 0 : index
    %243 = vector.load %arg2[%c1_131, %c0_132, %c0_133] : memref<3x16x128xf32, #tpu.memory_space<vmem>>, vector<1x16x128xf32>
    %244 = vector.shape_cast %243 : vector<1x16x128xf32> to vector<16x128xf32>
    %245 = vector.extract_strided_slice %244 {offsets = [9, 0], sizes = [1, 128], strides = [1, 1]} : vector<16x128xf32> to vector<1x128xf32>
    %246 = vector.broadcast %245 : vector<1x128xf32> to vector<16x128xf32>
    %247 = arith.mulf %246, %244 : vector<16x128xf32>
    %248 = arith.addf %242, %247 : vector<16x128xf32>
    %c2_134 = arith.constant 2 : index
    %c0_135 = arith.constant 0 : index
    %c0_136 = arith.constant 0 : index
    %249 = vector.load %arg2[%c2_134, %c0_135, %c0_136] : memref<3x16x128xf32, #tpu.memory_space<vmem>>, vector<1x16x128xf32>
    %250 = vector.shape_cast %249 : vector<1x16x128xf32> to vector<16x128xf32>
    %251 = vector.extract_strided_slice %250 {offsets = [9, 0], sizes = [1, 128], strides = [1, 1]} : vector<16x128xf32> to vector<1x128xf32>
    %252 = vector.broadcast %251 : vector<1x128xf32> to vector<16x128xf32>
    %253 = arith.mulf %252, %250 : vector<16x128xf32>
    %254 = arith.addf %248, %253 : vector<16x128xf32>
    %c0_137 = arith.constant 0 : index
    %c0_138 = arith.constant 0 : index
    %c0_139 = arith.constant 0 : index
    %255 = vector.load %arg2[%c0_137, %c0_138, %c0_139] : memref<3x16x128xf32, #tpu.memory_space<vmem>>, vector<1x16x128xf32>
    %256 = vector.shape_cast %255 : vector<1x16x128xf32> to vector<16x128xf32>
    %257 = vector.extract_strided_slice %256 {offsets = [10, 0], sizes = [1, 128], strides = [1, 1]} : vector<16x128xf32> to vector<1x128xf32>
    %258 = vector.broadcast %257 : vector<1x128xf32> to vector<16x128xf32>
    %259 = arith.mulf %258, %256 : vector<16x128xf32>
    %c1_140 = arith.constant 1 : index
    %c0_141 = arith.constant 0 : index
    %c0_142 = arith.constant 0 : index
    %260 = vector.load %arg2[%c1_140, %c0_141, %c0_142] : memref<3x16x128xf32, #tpu.memory_space<vmem>>, vector<1x16x128xf32>
    %261 = vector.shape_cast %260 : vector<1x16x128xf32> to vector<16x128xf32>
    %262 = vector.extract_strided_slice %261 {offsets = [10, 0], sizes = [1, 128], strides = [1, 1]} : vector<16x128xf32> to vector<1x128xf32>
    %263 = vector.broadcast %262 : vector<1x128xf32> to vector<16x128xf32>
    %264 = arith.mulf %263, %261 : vector<16x128xf32>
    %265 = arith.addf %259, %264 : vector<16x128xf32>
    %c2_143 = arith.constant 2 : index
    %c0_144 = arith.constant 0 : index
    %c0_145 = arith.constant 0 : index
    %266 = vector.load %arg2[%c2_143, %c0_144, %c0_145] : memref<3x16x128xf32, #tpu.memory_space<vmem>>, vector<1x16x128xf32>
    %267 = vector.shape_cast %266 : vector<1x16x128xf32> to vector<16x128xf32>
    %268 = vector.extract_strided_slice %267 {offsets = [10, 0], sizes = [1, 128], strides = [1, 1]} : vector<16x128xf32> to vector<1x128xf32>
    %269 = vector.broadcast %268 : vector<1x128xf32> to vector<16x128xf32>
    %270 = arith.mulf %269, %267 : vector<16x128xf32>
    %271 = arith.addf %265, %270 : vector<16x128xf32>
    %c0_146 = arith.constant 0 : index
    %c0_147 = arith.constant 0 : index
    %c0_148 = arith.constant 0 : index
    %272 = vector.load %arg2[%c0_146, %c0_147, %c0_148] : memref<3x16x128xf32, #tpu.memory_space<vmem>>, vector<1x16x128xf32>
    %273 = vector.shape_cast %272 : vector<1x16x128xf32> to vector<16x128xf32>
    %274 = vector.extract_strided_slice %273 {offsets = [11, 0], sizes = [1, 128], strides = [1, 1]} : vector<16x128xf32> to vector<1x128xf32>
    %275 = vector.broadcast %274 : vector<1x128xf32> to vector<16x128xf32>
    %276 = arith.mulf %275, %273 : vector<16x128xf32>
    %c1_149 = arith.constant 1 : index
    %c0_150 = arith.constant 0 : index
    %c0_151 = arith.constant 0 : index
    %277 = vector.load %arg2[%c1_149, %c0_150, %c0_151] : memref<3x16x128xf32, #tpu.memory_space<vmem>>, vector<1x16x128xf32>
    %278 = vector.shape_cast %277 : vector<1x16x128xf32> to vector<16x128xf32>
    %279 = vector.extract_strided_slice %278 {offsets = [11, 0], sizes = [1, 128], strides = [1, 1]} : vector<16x128xf32> to vector<1x128xf32>
    %280 = vector.broadcast %279 : vector<1x128xf32> to vector<16x128xf32>
    %281 = arith.mulf %280, %278 : vector<16x128xf32>
    %282 = arith.addf %276, %281 : vector<16x128xf32>
    %c2_152 = arith.constant 2 : index
    %c0_153 = arith.constant 0 : index
    %c0_154 = arith.constant 0 : index
    %283 = vector.load %arg2[%c2_152, %c0_153, %c0_154] : memref<3x16x128xf32, #tpu.memory_space<vmem>>, vector<1x16x128xf32>
    %284 = vector.shape_cast %283 : vector<1x16x128xf32> to vector<16x128xf32>
    %285 = vector.extract_strided_slice %284 {offsets = [11, 0], sizes = [1, 128], strides = [1, 1]} : vector<16x128xf32> to vector<1x128xf32>
    %286 = vector.broadcast %285 : vector<1x128xf32> to vector<16x128xf32>
    %287 = arith.mulf %286, %284 : vector<16x128xf32>
    %288 = arith.addf %282, %287 : vector<16x128xf32>
    %c0_155 = arith.constant 0 : index
    %c0_156 = arith.constant 0 : index
    %c0_157 = arith.constant 0 : index
    %289 = vector.load %arg2[%c0_155, %c0_156, %c0_157] : memref<3x16x128xf32, #tpu.memory_space<vmem>>, vector<1x16x128xf32>
    %290 = vector.shape_cast %289 : vector<1x16x128xf32> to vector<16x128xf32>
    %291 = vector.extract_strided_slice %290 {offsets = [12, 0], sizes = [1, 128], strides = [1, 1]} : vector<16x128xf32> to vector<1x128xf32>
    %292 = vector.broadcast %291 : vector<1x128xf32> to vector<16x128xf32>
    %293 = arith.mulf %292, %290 : vector<16x128xf32>
    %c1_158 = arith.constant 1 : index
    %c0_159 = arith.constant 0 : index
    %c0_160 = arith.constant 0 : index
    %294 = vector.load %arg2[%c1_158, %c0_159, %c0_160] : memref<3x16x128xf32, #tpu.memory_space<vmem>>, vector<1x16x128xf32>
    %295 = vector.shape_cast %294 : vector<1x16x128xf32> to vector<16x128xf32>
    %296 = vector.extract_strided_slice %295 {offsets = [12, 0], sizes = [1, 128], strides = [1, 1]} : vector<16x128xf32> to vector<1x128xf32>
    %297 = vector.broadcast %296 : vector<1x128xf32> to vector<16x128xf32>
    %298 = arith.mulf %297, %295 : vector<16x128xf32>
    %299 = arith.addf %293, %298 : vector<16x128xf32>
    %c2_161 = arith.constant 2 : index
    %c0_162 = arith.constant 0 : index
    %c0_163 = arith.constant 0 : index
    %300 = vector.load %arg2[%c2_161, %c0_162, %c0_163] : memref<3x16x128xf32, #tpu.memory_space<vmem>>, vector<1x16x128xf32>
    %301 = vector.shape_cast %300 : vector<1x16x128xf32> to vector<16x128xf32>
    %302 = vector.extract_strided_slice %301 {offsets = [12, 0], sizes = [1, 128], strides = [1, 1]} : vector<16x128xf32> to vector<1x128xf32>
    %303 = vector.broadcast %302 : vector<1x128xf32> to vector<16x128xf32>
    %304 = arith.mulf %303, %301 : vector<16x128xf32>
    %305 = arith.addf %299, %304 : vector<16x128xf32>
    %c0_164 = arith.constant 0 : index
    %c0_165 = arith.constant 0 : index
    %c0_166 = arith.constant 0 : index
    %306 = vector.load %arg2[%c0_164, %c0_165, %c0_166] : memref<3x16x128xf32, #tpu.memory_space<vmem>>, vector<1x16x128xf32>
    %307 = vector.shape_cast %306 : vector<1x16x128xf32> to vector<16x128xf32>
    %308 = vector.extract_strided_slice %307 {offsets = [13, 0], sizes = [1, 128], strides = [1, 1]} : vector<16x128xf32> to vector<1x128xf32>
    %309 = vector.broadcast %308 : vector<1x128xf32> to vector<16x128xf32>
    %310 = arith.mulf %309, %307 : vector<16x128xf32>
    %c1_167 = arith.constant 1 : index
    %c0_168 = arith.constant 0 : index
    %c0_169 = arith.constant 0 : index
    %311 = vector.load %arg2[%c1_167, %c0_168, %c0_169] : memref<3x16x128xf32, #tpu.memory_space<vmem>>, vector<1x16x128xf32>
    %312 = vector.shape_cast %311 : vector<1x16x128xf32> to vector<16x128xf32>
    %313 = vector.extract_strided_slice %312 {offsets = [13, 0], sizes = [1, 128], strides = [1, 1]} : vector<16x128xf32> to vector<1x128xf32>
    %314 = vector.broadcast %313 : vector<1x128xf32> to vector<16x128xf32>
    %315 = arith.mulf %314, %312 : vector<16x128xf32>
    %316 = arith.addf %310, %315 : vector<16x128xf32>
    %c2_170 = arith.constant 2 : index
    %c0_171 = arith.constant 0 : index
    %c0_172 = arith.constant 0 : index
    %317 = vector.load %arg2[%c2_170, %c0_171, %c0_172] : memref<3x16x128xf32, #tpu.memory_space<vmem>>, vector<1x16x128xf32>
    %318 = vector.shape_cast %317 : vector<1x16x128xf32> to vector<16x128xf32>
    %319 = vector.extract_strided_slice %318 {offsets = [13, 0], sizes = [1, 128], strides = [1, 1]} : vector<16x128xf32> to vector<1x128xf32>
    %320 = vector.broadcast %319 : vector<1x128xf32> to vector<16x128xf32>
    %321 = arith.mulf %320, %318 : vector<16x128xf32>
    %322 = arith.addf %316, %321 : vector<16x128xf32>
    %c0_173 = arith.constant 0 : index
    %c0_174 = arith.constant 0 : index
    %c0_175 = arith.constant 0 : index
    %323 = vector.load %arg2[%c0_173, %c0_174, %c0_175] : memref<3x16x128xf32, #tpu.memory_space<vmem>>, vector<1x16x128xf32>
    %324 = vector.shape_cast %323 : vector<1x16x128xf32> to vector<16x128xf32>
    %325 = vector.extract_strided_slice %324 {offsets = [14, 0], sizes = [1, 128], strides = [1, 1]} : vector<16x128xf32> to vector<1x128xf32>
    %326 = vector.broadcast %325 : vector<1x128xf32> to vector<16x128xf32>
    %327 = arith.mulf %326, %324 : vector<16x128xf32>
    %c1_176 = arith.constant 1 : index
    %c0_177 = arith.constant 0 : index
    %c0_178 = arith.constant 0 : index
    %328 = vector.load %arg2[%c1_176, %c0_177, %c0_178] : memref<3x16x128xf32, #tpu.memory_space<vmem>>, vector<1x16x128xf32>
    %329 = vector.shape_cast %328 : vector<1x16x128xf32> to vector<16x128xf32>
    %330 = vector.extract_strided_slice %329 {offsets = [14, 0], sizes = [1, 128], strides = [1, 1]} : vector<16x128xf32> to vector<1x128xf32>
    %331 = vector.broadcast %330 : vector<1x128xf32> to vector<16x128xf32>
    %332 = arith.mulf %331, %329 : vector<16x128xf32>
    %333 = arith.addf %327, %332 : vector<16x128xf32>
    %c2_179 = arith.constant 2 : index
    %c0_180 = arith.constant 0 : index
    %c0_181 = arith.constant 0 : index
    %334 = vector.load %arg2[%c2_179, %c0_180, %c0_181] : memref<3x16x128xf32, #tpu.memory_space<vmem>>, vector<1x16x128xf32>
    %335 = vector.shape_cast %334 : vector<1x16x128xf32> to vector<16x128xf32>
    %336 = vector.extract_strided_slice %335 {offsets = [14, 0], sizes = [1, 128], strides = [1, 1]} : vector<16x128xf32> to vector<1x128xf32>
    %337 = vector.broadcast %336 : vector<1x128xf32> to vector<16x128xf32>
    %338 = arith.mulf %337, %335 : vector<16x128xf32>
    %339 = arith.addf %333, %338 : vector<16x128xf32>
    %c0_182 = arith.constant 0 : index
    %c0_183 = arith.constant 0 : index
    %c0_184 = arith.constant 0 : index
    %340 = vector.load %arg2[%c0_182, %c0_183, %c0_184] : memref<3x16x128xf32, #tpu.memory_space<vmem>>, vector<1x16x128xf32>
    %341 = vector.shape_cast %340 : vector<1x16x128xf32> to vector<16x128xf32>
    %342 = vector.extract_strided_slice %341 {offsets = [15, 0], sizes = [1, 128], strides = [1, 1]} : vector<16x128xf32> to vector<1x128xf32>
    %343 = vector.broadcast %342 : vector<1x128xf32> to vector<16x128xf32>
    %344 = arith.mulf %343, %341 : vector<16x128xf32>
    %c1_185 = arith.constant 1 : index
    %c0_186 = arith.constant 0 : index
    %c0_187 = arith.constant 0 : index
    %345 = vector.load %arg2[%c1_185, %c0_186, %c0_187] : memref<3x16x128xf32, #tpu.memory_space<vmem>>, vector<1x16x128xf32>
    %346 = vector.shape_cast %345 : vector<1x16x128xf32> to vector<16x128xf32>
    %347 = vector.extract_strided_slice %346 {offsets = [15, 0], sizes = [1, 128], strides = [1, 1]} : vector<16x128xf32> to vector<1x128xf32>
    %348 = vector.broadcast %347 : vector<1x128xf32> to vector<16x128xf32>
    %349 = arith.mulf %348, %346 : vector<16x128xf32>
    %350 = arith.addf %344, %349 : vector<16x128xf32>
    %c2_188 = arith.constant 2 : index
    %c0_189 = arith.constant 0 : index
    %c0_190 = arith.constant 0 : index
    %351 = vector.load %arg2[%c2_188, %c0_189, %c0_190] : memref<3x16x128xf32, #tpu.memory_space<vmem>>, vector<1x16x128xf32>
    %352 = vector.shape_cast %351 : vector<1x16x128xf32> to vector<16x128xf32>
    %353 = vector.extract_strided_slice %352 {offsets = [15, 0], sizes = [1, 128], strides = [1, 1]} : vector<16x128xf32> to vector<1x128xf32>
    %354 = vector.broadcast %353 : vector<1x128xf32> to vector<16x128xf32>
    %355 = arith.mulf %354, %352 : vector<16x128xf32>
    %356 = arith.addf %350, %355 : vector<16x128xf32>
    %357 = tpu.concatenate %101, %118, %135, %152, %169, %186, %203, %220, %237, %254, %271, %288, %305, %322, %339, %356 in 0 : vector<16x128xf32>, vector<16x128xf32>, vector<16x128xf32>, vector<16x128xf32>, vector<16x128xf32>, vector<16x128xf32>, vector<16x128xf32>, vector<16x128xf32>, vector<16x128xf32>, vector<16x128xf32>, vector<16x128xf32>, vector<16x128xf32>, vector<16x128xf32>, vector<16x128xf32>, vector<16x128xf32>, vector<16x128xf32> -> vector<256x128xf32>
    %cst_191 = arith.constant 0.577350259 : f32
    %358 = vector.broadcast %cst_191 : f32 to vector<256x128xf32>
    %359 = arith.mulf %357, %358 : vector<256x128xf32>
    %360 = tpu.transpose %359, [1, 0] : vector<256x128xf32> -> vector<128x256xf32>
    %c0_192 = arith.constant 0 : index
    %c256 = arith.constant 256 : index
    %361 = vector.load %arg4[%c0_192, %c256] : memref<128x768xf32, #tpu.memory_space<vmem>>, vector<128x256xf32>
    tpu.vector_store %arg4[%c0_192, %c256], %360 {strides = array<i32>} : memref<128x768xf32, #tpu.memory_space<vmem>>, vector<128x256xf32>,
    %c0_193 = arith.constant 0 : index
    %c0_194 = arith.constant 0 : index
    %c0_195 = arith.constant 0 : index
    %362 = vector.load %arg3[%c0_193, %c0_194, %c0_195] : memref<5x16x128xf32, #tpu.memory_space<vmem>>, vector<1x16x128xf32>
    %363 = vector.shape_cast %362 : vector<1x16x128xf32> to vector<16x128xf32>
    %364 = vector.extract_strided_slice %363 {offsets = [0, 0], sizes = [1, 128], strides = [1, 1]} : vector<16x128xf32> to vector<1x128xf32>
    %365 = vector.broadcast %364 : vector<1x128xf32> to vector<16x128xf32>
    %366 = arith.mulf %365, %363 : vector<16x128xf32>
    %c1_196 = arith.constant 1 : index
    %c0_197 = arith.constant 0 : index
    %c0_198 = arith.constant 0 : index
    %367 = vector.load %arg3[%c1_196, %c0_197, %c0_198] : memref<5x16x128xf32, #tpu.memory_space<vmem>>, vector<1x16x128xf32>
    %368 = vector.shape_cast %367 : vector<1x16x128xf32> to vector<16x128xf32>
    %369 = vector.extract_strided_slice %368 {offsets = [0, 0], sizes = [1, 128], strides = [1, 1]} : vector<16x128xf32> to vector<1x128xf32>
    %370 = vector.broadcast %369 : vector<1x128xf32> to vector<16x128xf32>
    %371 = arith.mulf %370, %368 : vector<16x128xf32>
    %372 = arith.addf %366, %371 : vector<16x128xf32>
    %c2_199 = arith.constant 2 : index
    %c0_200 = arith.constant 0 : index
    %c0_201 = arith.constant 0 : index
    %373 = vector.load %arg3[%c2_199, %c0_200, %c0_201] : memref<5x16x128xf32, #tpu.memory_space<vmem>>, vector<1x16x128xf32>
    %374 = vector.shape_cast %373 : vector<1x16x128xf32> to vector<16x128xf32>
    %375 = vector.extract_strided_slice %374 {offsets = [0, 0], sizes = [1, 128], strides = [1, 1]} : vector<16x128xf32> to vector<1x128xf32>
    %376 = vector.broadcast %375 : vector<1x128xf32> to vector<16x128xf32>
    %377 = arith.mulf %376, %374 : vector<16x128xf32>
    %378 = arith.addf %372, %377 : vector<16x128xf32>
    %c3 = arith.constant 3 : index
    %c0_202 = arith.constant 0 : index
    %c0_203 = arith.constant 0 : index
    %379 = vector.load %arg3[%c3, %c0_202, %c0_203] : memref<5x16x128xf32, #tpu.memory_space<vmem>>, vector<1x16x128xf32>
    %380 = vector.shape_cast %379 : vector<1x16x128xf32> to vector<16x128xf32>
    %381 = vector.extract_strided_slice %380 {offsets = [0, 0], sizes = [1, 128], strides = [1, 1]} : vector<16x128xf32> to vector<1x128xf32>
    %382 = vector.broadcast %381 : vector<1x128xf32> to vector<16x128xf32>
    %383 = arith.mulf %382, %380 : vector<16x128xf32>
    %384 = arith.addf %378, %383 : vector<16x128xf32>
    %c4 = arith.constant 4 : index
    %c0_204 = arith.constant 0 : index
    %c0_205 = arith.constant 0 : index
    %385 = vector.load %arg3[%c4, %c0_204, %c0_205] : memref<5x16x128xf32, #tpu.memory_space<vmem>>, vector<1x16x128xf32>
    %386 = vector.shape_cast %385 : vector<1x16x128xf32> to vector<16x128xf32>
    %387 = vector.extract_strided_slice %386 {offsets = [0, 0], sizes = [1, 128], strides = [1, 1]} : vector<16x128xf32> to vector<1x128xf32>
    %388 = vector.broadcast %387 : vector<1x128xf32> to vector<16x128xf32>
    %389 = arith.mulf %388, %386 : vector<16x128xf32>
    %390 = arith.addf %384, %389 : vector<16x128xf32>
    %c0_206 = arith.constant 0 : index
    %c0_207 = arith.constant 0 : index
    %c0_208 = arith.constant 0 : index
    %391 = vector.load %arg3[%c0_206, %c0_207, %c0_208] : memref<5x16x128xf32, #tpu.memory_space<vmem>>, vector<1x16x128xf32>
    %392 = vector.shape_cast %391 : vector<1x16x128xf32> to vector<16x128xf32>
    %393 = vector.extract_strided_slice %392 {offsets = [1, 0], sizes = [1, 128], strides = [1, 1]} : vector<16x128xf32> to vector<1x128xf32>
    %394 = vector.broadcast %393 : vector<1x128xf32> to vector<16x128xf32>
    %395 = arith.mulf %394, %392 : vector<16x128xf32>
    %c1_209 = arith.constant 1 : index
    %c0_210 = arith.constant 0 : index
    %c0_211 = arith.constant 0 : index
    %396 = vector.load %arg3[%c1_209, %c0_210, %c0_211] : memref<5x16x128xf32, #tpu.memory_space<vmem>>, vector<1x16x128xf32>
    %397 = vector.shape_cast %396 : vector<1x16x128xf32> to vector<16x128xf32>
    %398 = vector.extract_strided_slice %397 {offsets = [1, 0], sizes = [1, 128], strides = [1, 1]} : vector<16x128xf32> to vector<1x128xf32>
    %399 = vector.broadcast %398 : vector<1x128xf32> to vector<16x128xf32>
    %400 = arith.mulf %399, %397 : vector<16x128xf32>
    %401 = arith.addf %395, %400 : vector<16x128xf32>
    %c2_212 = arith.constant 2 : index
    %c0_213 = arith.constant 0 : index
    %c0_214 = arith.constant 0 : index
    %402 = vector.load %arg3[%c2_212, %c0_213, %c0_214] : memref<5x16x128xf32, #tpu.memory_space<vmem>>, vector<1x16x128xf32>
    %403 = vector.shape_cast %402 : vector<1x16x128xf32> to vector<16x128xf32>
    %404 = vector.extract_strided_slice %403 {offsets = [1, 0], sizes = [1, 128], strides = [1, 1]} : vector<16x128xf32> to vector<1x128xf32>
    %405 = vector.broadcast %404 : vector<1x128xf32> to vector<16x128xf32>
    %406 = arith.mulf %405, %403 : vector<16x128xf32>
    %407 = arith.addf %401, %406 : vector<16x128xf32>
    %c3_215 = arith.constant 3 : index
    %c0_216 = arith.constant 0 : index
    %c0_217 = arith.constant 0 : index
    %408 = vector.load %arg3[%c3_215, %c0_216, %c0_217] : memref<5x16x128xf32, #tpu.memory_space<vmem>>, vector<1x16x128xf32>
    %409 = vector.shape_cast %408 : vector<1x16x128xf32> to vector<16x128xf32>
    %410 = vector.extract_strided_slice %409 {offsets = [1, 0], sizes = [1, 128], strides = [1, 1]} : vector<16x128xf32> to vector<1x128xf32>
    %411 = vector.broadcast %410 : vector<1x128xf32> to vector<16x128xf32>
    %412 = arith.mulf %411, %409 : vector<16x128xf32>
    %413 = arith.addf %407, %412 : vector<16x128xf32>
    %c4_218 = arith.constant 4 : index
    %c0_219 = arith.constant 0 : index
    %c0_220 = arith.constant 0 : index
    %414 = vector.load %arg3[%c4_218, %c0_219, %c0_220] : memref<5x16x128xf32, #tpu.memory_space<vmem>>, vector<1x16x128xf32>
    %415 = vector.shape_cast %414 : vector<1x16x128xf32> to vector<16x128xf32>
    %416 = vector.extract_strided_slice %415 {offsets = [1, 0], sizes = [1, 128], strides = [1, 1]} : vector<16x128xf32> to vector<1x128xf32>
    %417 = vector.broadcast %416 : vector<1x128xf32> to vector<16x128xf32>
    %418 = arith.mulf %417, %415 : vector<16x128xf32>
    %419 = arith.addf %413, %418 : vector<16x128xf32>
    %c0_221 = arith.constant 0 : index
    %c0_222 = arith.constant 0 : index
    %c0_223 = arith.constant 0 : index
    %420 = vector.load %arg3[%c0_221, %c0_222, %c0_223] : memref<5x16x128xf32, #tpu.memory_space<vmem>>, vector<1x16x128xf32>
    %421 = vector.shape_cast %420 : vector<1x16x128xf32> to vector<16x128xf32>
    %422 = vector.extract_strided_slice %421 {offsets = [2, 0], sizes = [1, 128], strides = [1, 1]} : vector<16x128xf32> to vector<1x128xf32>
    %423 = vector.broadcast %422 : vector<1x128xf32> to vector<16x128xf32>
    %424 = arith.mulf %423, %421 : vector<16x128xf32>
    %c1_224 = arith.constant 1 : index
    %c0_225 = arith.constant 0 : index
    %c0_226 = arith.constant 0 : index
    %425 = vector.load %arg3[%c1_224, %c0_225, %c0_226] : memref<5x16x128xf32, #tpu.memory_space<vmem>>, vector<1x16x128xf32>
    %426 = vector.shape_cast %425 : vector<1x16x128xf32> to vector<16x128xf32>
    %427 = vector.extract_strided_slice %426 {offsets = [2, 0], sizes = [1, 128], strides = [1, 1]} : vector<16x128xf32> to vector<1x128xf32>
    %428 = vector.broadcast %427 : vector<1x128xf32> to vector<16x128xf32>
    %429 = arith.mulf %428, %426 : vector<16x128xf32>
    %430 = arith.addf %424, %429 : vector<16x128xf32>
    %c2_227 = arith.constant 2 : index
    %c0_228 = arith.constant 0 : index
    %c0_229 = arith.constant 0 : index
    %431 = vector.load %arg3[%c2_227, %c0_228, %c0_229] : memref<5x16x128xf32, #tpu.memory_space<vmem>>, vector<1x16x128xf32>
    %432 = vector.shape_cast %431 : vector<1x16x128xf32> to vector<16x128xf32>
    %433 = vector.extract_strided_slice %432 {offsets = [2, 0], sizes = [1, 128], strides = [1, 1]} : vector<16x128xf32> to vector<1x128xf32>
    %434 = vector.broadcast %433 : vector<1x128xf32> to vector<16x128xf32>
    %435 = arith.mulf %434, %432 : vector<16x128xf32>
    %436 = arith.addf %430, %435 : vector<16x128xf32>
    %c3_230 = arith.constant 3 : index
    %c0_231 = arith.constant 0 : index
    %c0_232 = arith.constant 0 : index
    %437 = vector.load %arg3[%c3_230, %c0_231, %c0_232] : memref<5x16x128xf32, #tpu.memory_space<vmem>>, vector<1x16x128xf32>
    %438 = vector.shape_cast %437 : vector<1x16x128xf32> to vector<16x128xf32>
    %439 = vector.extract_strided_slice %438 {offsets = [2, 0], sizes = [1, 128], strides = [1, 1]} : vector<16x128xf32> to vector<1x128xf32>
    %440 = vector.broadcast %439 : vector<1x128xf32> to vector<16x128xf32>
    %441 = arith.mulf %440, %438 : vector<16x128xf32>
    %442 = arith.addf %436, %441 : vector<16x128xf32>
    %c4_233 = arith.constant 4 : index
    %c0_234 = arith.constant 0 : index
    %c0_235 = arith.constant 0 : index
    %443 = vector.load %arg3[%c4_233, %c0_234, %c0_235] : memref<5x16x128xf32, #tpu.memory_space<vmem>>, vector<1x16x128xf32>
    %444 = vector.shape_cast %443 : vector<1x16x128xf32> to vector<16x128xf32>
    %445 = vector.extract_strided_slice %444 {offsets = [2, 0], sizes = [1, 128], strides = [1, 1]} : vector<16x128xf32> to vector<1x128xf32>
    %446 = vector.broadcast %445 : vector<1x128xf32> to vector<16x128xf32>
    %447 = arith.mulf %446, %444 : vector<16x128xf32>
    %448 = arith.addf %442, %447 : vector<16x128xf32>
    %c0_236 = arith.constant 0 : index
    %c0_237 = arith.constant 0 : index
    %c0_238 = arith.constant 0 : index
    %449 = vector.load %arg3[%c0_236, %c0_237, %c0_238] : memref<5x16x128xf32, #tpu.memory_space<vmem>>, vector<1x16x128xf32>
    %450 = vector.shape_cast %449 : vector<1x16x128xf32> to vector<16x128xf32>
    %451 = vector.extract_strided_slice %450 {offsets = [3, 0], sizes = [1, 128], strides = [1, 1]} : vector<16x128xf32> to vector<1x128xf32>
    %452 = vector.broadcast %451 : vector<1x128xf32> to vector<16x128xf32>
    %453 = arith.mulf %452, %450 : vector<16x128xf32>
    %c1_239 = arith.constant 1 : index
    %c0_240 = arith.constant 0 : index
    %c0_241 = arith.constant 0 : index
    %454 = vector.load %arg3[%c1_239, %c0_240, %c0_241] : memref<5x16x128xf32, #tpu.memory_space<vmem>>, vector<1x16x128xf32>
    %455 = vector.shape_cast %454 : vector<1x16x128xf32> to vector<16x128xf32>
    %456 = vector.extract_strided_slice %455 {offsets = [3, 0], sizes = [1, 128], strides = [1, 1]} : vector<16x128xf32> to vector<1x128xf32>
    %457 = vector.broadcast %456 : vector<1x128xf32> to vector<16x128xf32>
    %458 = arith.mulf %457, %455 : vector<16x128xf32>
    %459 = arith.addf %453, %458 : vector<16x128xf32>
    %c2_242 = arith.constant 2 : index
    %c0_243 = arith.constant 0 : index
    %c0_244 = arith.constant 0 : index
    %460 = vector.load %arg3[%c2_242, %c0_243, %c0_244] : memref<5x16x128xf32, #tpu.memory_space<vmem>>, vector<1x16x128xf32>
    %461 = vector.shape_cast %460 : vector<1x16x128xf32> to vector<16x128xf32>
    %462 = vector.extract_strided_slice %461 {offsets = [3, 0], sizes = [1, 128], strides = [1, 1]} : vector<16x128xf32> to vector<1x128xf32>
    %463 = vector.broadcast %462 : vector<1x128xf32> to vector<16x128xf32>
    %464 = arith.mulf %463, %461 : vector<16x128xf32>
    %465 = arith.addf %459, %464 : vector<16x128xf32>
    %c3_245 = arith.constant 3 : index
    %c0_246 = arith.constant 0 : index
    %c0_247 = arith.constant 0 : index
    %466 = vector.load %arg3[%c3_245, %c0_246, %c0_247] : memref<5x16x128xf32, #tpu.memory_space<vmem>>, vector<1x16x128xf32>
    %467 = vector.shape_cast %466 : vector<1x16x128xf32> to vector<16x128xf32>
    %468 = vector.extract_strided_slice %467 {offsets = [3, 0], sizes = [1, 128], strides = [1, 1]} : vector<16x128xf32> to vector<1x128xf32>
    %469 = vector.broadcast %468 : vector<1x128xf32> to vector<16x128xf32>
    %470 = arith.mulf %469, %467 : vector<16x128xf32>
    %471 = arith.addf %465, %470 : vector<16x128xf32>
    %c4_248 = arith.constant 4 : index
    %c0_249 = arith.constant 0 : index
    %c0_250 = arith.constant 0 : index
    %472 = vector.load %arg3[%c4_248, %c0_249, %c0_250] : memref<5x16x128xf32, #tpu.memory_space<vmem>>, vector<1x16x128xf32>
    %473 = vector.shape_cast %472 : vector<1x16x128xf32> to vector<16x128xf32>
    %474 = vector.extract_strided_slice %473 {offsets = [3, 0], sizes = [1, 128], strides = [1, 1]} : vector<16x128xf32> to vector<1x128xf32>
    %475 = vector.broadcast %474 : vector<1x128xf32> to vector<16x128xf32>
    %476 = arith.mulf %475, %473 : vector<16x128xf32>
    %477 = arith.addf %471, %476 : vector<16x128xf32>
    %c0_251 = arith.constant 0 : index
    %c0_252 = arith.constant 0 : index
    %c0_253 = arith.constant 0 : index
    %478 = vector.load %arg3[%c0_251, %c0_252, %c0_253] : memref<5x16x128xf32, #tpu.memory_space<vmem>>, vector<1x16x128xf32>
    %479 = vector.shape_cast %478 : vector<1x16x128xf32> to vector<16x128xf32>
    %480 = vector.extract_strided_slice %479 {offsets = [4, 0], sizes = [1, 128], strides = [1, 1]} : vector<16x128xf32> to vector<1x128xf32>
    %481 = vector.broadcast %480 : vector<1x128xf32> to vector<16x128xf32>
    %482 = arith.mulf %481, %479 : vector<16x128xf32>
    %c1_254 = arith.constant 1 : index
    %c0_255 = arith.constant 0 : index
    %c0_256 = arith.constant 0 : index
    %483 = vector.load %arg3[%c1_254, %c0_255, %c0_256] : memref<5x16x128xf32, #tpu.memory_space<vmem>>, vector<1x16x128xf32>
    %484 = vector.shape_cast %483 : vector<1x16x128xf32> to vector<16x128xf32>
    %485 = vector.extract_strided_slice %484 {offsets = [4, 0], sizes = [1, 128], strides = [1, 1]} : vector<16x128xf32> to vector<1x128xf32>
    %486 = vector.broadcast %485 : vector<1x128xf32> to vector<16x128xf32>
    %487 = arith.mulf %486, %484 : vector<16x128xf32>
    %488 = arith.addf %482, %487 : vector<16x128xf32>
    %c2_257 = arith.constant 2 : index
    %c0_258 = arith.constant 0 : index
    %c0_259 = arith.constant 0 : index
    %489 = vector.load %arg3[%c2_257, %c0_258, %c0_259] : memref<5x16x128xf32, #tpu.memory_space<vmem>>, vector<1x16x128xf32>
    %490 = vector.shape_cast %489 : vector<1x16x128xf32> to vector<16x128xf32>
    %491 = vector.extract_strided_slice %490 {offsets = [4, 0], sizes = [1, 128], strides = [1, 1]} : vector<16x128xf32> to vector<1x128xf32>
    %492 = vector.broadcast %491 : vector<1x128xf32> to vector<16x128xf32>
    %493 = arith.mulf %492, %490 : vector<16x128xf32>
    %494 = arith.addf %488, %493 : vector<16x128xf32>
    %c3_260 = arith.constant 3 : index
    %c0_261 = arith.constant 0 : index
    %c0_262 = arith.constant 0 : index
    %495 = vector.load %arg3[%c3_260, %c0_261, %c0_262] : memref<5x16x128xf32, #tpu.memory_space<vmem>>, vector<1x16x128xf32>
    %496 = vector.shape_cast %495 : vector<1x16x128xf32> to vector<16x128xf32>
    %497 = vector.extract_strided_slice %496 {offsets = [4, 0], sizes = [1, 128], strides = [1, 1]} : vector<16x128xf32> to vector<1x128xf32>
    %498 = vector.broadcast %497 : vector<1x128xf32> to vector<16x128xf32>
    %499 = arith.mulf %498, %496 : vector<16x128xf32>
    %500 = arith.addf %494, %499 : vector<16x128xf32>
    %c4_263 = arith.constant 4 : index
    %c0_264 = arith.constant 0 : index
    %c0_265 = arith.constant 0 : index
    %501 = vector.load %arg3[%c4_263, %c0_264, %c0_265] : memref<5x16x128xf32, #tpu.memory_space<vmem>>, vector<1x16x128xf32>
    %502 = vector.shape_cast %501 : vector<1x16x128xf32> to vector<16x128xf32>
    %503 = vector.extract_strided_slice %502 {offsets = [4, 0], sizes = [1, 128], strides = [1, 1]} : vector<16x128xf32> to vector<1x128xf32>
    %504 = vector.broadcast %503 : vector<1x128xf32> to vector<16x128xf32>
    %505 = arith.mulf %504, %502 : vector<16x128xf32>
    %506 = arith.addf %500, %505 : vector<16x128xf32>
    %c0_266 = arith.constant 0 : index
    %c0_267 = arith.constant 0 : index
    %c0_268 = arith.constant 0 : index
    %507 = vector.load %arg3[%c0_266, %c0_267, %c0_268] : memref<5x16x128xf32, #tpu.memory_space<vmem>>, vector<1x16x128xf32>
    %508 = vector.shape_cast %507 : vector<1x16x128xf32> to vector<16x128xf32>
    %509 = vector.extract_strided_slice %508 {offsets = [5, 0], sizes = [1, 128], strides = [1, 1]} : vector<16x128xf32> to vector<1x128xf32>
    %510 = vector.broadcast %509 : vector<1x128xf32> to vector<16x128xf32>
    %511 = arith.mulf %510, %508 : vector<16x128xf32>
    %c1_269 = arith.constant 1 : index
    %c0_270 = arith.constant 0 : index
    %c0_271 = arith.constant 0 : index
    %512 = vector.load %arg3[%c1_269, %c0_270, %c0_271] : memref<5x16x128xf32, #tpu.memory_space<vmem>>, vector<1x16x128xf32>
    %513 = vector.shape_cast %512 : vector<1x16x128xf32> to vector<16x128xf32>
    %514 = vector.extract_strided_slice %513 {offsets = [5, 0], sizes = [1, 128], strides = [1, 1]} : vector<16x128xf32> to vector<1x128xf32>
    %515 = vector.broadcast %514 : vector<1x128xf32> to vector<16x128xf32>
    %516 = arith.mulf %515, %513 : vector<16x128xf32>
    %517 = arith.addf %511, %516 : vector<16x128xf32>
    %c2_272 = arith.constant 2 : index
    %c0_273 = arith.constant 0 : index
    %c0_274 = arith.constant 0 : index
    %518 = vector.load %arg3[%c2_272, %c0_273, %c0_274] : memref<5x16x128xf32, #tpu.memory_space<vmem>>, vector<1x16x128xf32>
    %519 = vector.shape_cast %518 : vector<1x16x128xf32> to vector<16x128xf32>
    %520 = vector.extract_strided_slice %519 {offsets = [5, 0], sizes = [1, 128], strides = [1, 1]} : vector<16x128xf32> to vector<1x128xf32>
    %521 = vector.broadcast %520 : vector<1x128xf32> to vector<16x128xf32>
    %522 = arith.mulf %521, %519 : vector<16x128xf32>
    %523 = arith.addf %517, %522 : vector<16x128xf32>
    %c3_275 = arith.constant 3 : index
    %c0_276 = arith.constant 0 : index
    %c0_277 = arith.constant 0 : index
    %524 = vector.load %arg3[%c3_275, %c0_276, %c0_277] : memref<5x16x128xf32, #tpu.memory_space<vmem>>, vector<1x16x128xf32>
    %525 = vector.shape_cast %524 : vector<1x16x128xf32> to vector<16x128xf32>
    %526 = vector.extract_strided_slice %525 {offsets = [5, 0], sizes = [1, 128], strides = [1, 1]} : vector<16x128xf32> to vector<1x128xf32>
    %527 = vector.broadcast %526 : vector<1x128xf32> to vector<16x128xf32>
    %528 = arith.mulf %527, %525 : vector<16x128xf32>
    %529 = arith.addf %523, %528 : vector<16x128xf32>
    %c4_278 = arith.constant 4 : index
    %c0_279 = arith.constant 0 : index
    %c0_280 = arith.constant 0 : index
    %530 = vector.load %arg3[%c4_278, %c0_279, %c0_280] : memref<5x16x128xf32, #tpu.memory_space<vmem>>, vector<1x16x128xf32>
    %531 = vector.shape_cast %530 : vector<1x16x128xf32> to vector<16x128xf32>
    %532 = vector.extract_strided_slice %531 {offsets = [5, 0], sizes = [1, 128], strides = [1, 1]} : vector<16x128xf32> to vector<1x128xf32>
    %533 = vector.broadcast %532 : vector<1x128xf32> to vector<16x128xf32>
    %534 = arith.mulf %533, %531 : vector<16x128xf32>
    %535 = arith.addf %529, %534 : vector<16x128xf32>
    %c0_281 = arith.constant 0 : index
    %c0_282 = arith.constant 0 : index
    %c0_283 = arith.constant 0 : index
    %536 = vector.load %arg3[%c0_281, %c0_282, %c0_283] : memref<5x16x128xf32, #tpu.memory_space<vmem>>, vector<1x16x128xf32>
    %537 = vector.shape_cast %536 : vector<1x16x128xf32> to vector<16x128xf32>
    %538 = vector.extract_strided_slice %537 {offsets = [6, 0], sizes = [1, 128], strides = [1, 1]} : vector<16x128xf32> to vector<1x128xf32>
    %539 = vector.broadcast %538 : vector<1x128xf32> to vector<16x128xf32>
    %540 = arith.mulf %539, %537 : vector<16x128xf32>
    %c1_284 = arith.constant 1 : index
    %c0_285 = arith.constant 0 : index
    %c0_286 = arith.constant 0 : index
    %541 = vector.load %arg3[%c1_284, %c0_285, %c0_286] : memref<5x16x128xf32, #tpu.memory_space<vmem>>, vector<1x16x128xf32>
    %542 = vector.shape_cast %541 : vector<1x16x128xf32> to vector<16x128xf32>
    %543 = vector.extract_strided_slice %542 {offsets = [6, 0], sizes = [1, 128], strides = [1, 1]} : vector<16x128xf32> to vector<1x128xf32>
    %544 = vector.broadcast %543 : vector<1x128xf32> to vector<16x128xf32>
    %545 = arith.mulf %544, %542 : vector<16x128xf32>
    %546 = arith.addf %540, %545 : vector<16x128xf32>
    %c2_287 = arith.constant 2 : index
    %c0_288 = arith.constant 0 : index
    %c0_289 = arith.constant 0 : index
    %547 = vector.load %arg3[%c2_287, %c0_288, %c0_289] : memref<5x16x128xf32, #tpu.memory_space<vmem>>, vector<1x16x128xf32>
    %548 = vector.shape_cast %547 : vector<1x16x128xf32> to vector<16x128xf32>
    %549 = vector.extract_strided_slice %548 {offsets = [6, 0], sizes = [1, 128], strides = [1, 1]} : vector<16x128xf32> to vector<1x128xf32>
    %550 = vector.broadcast %549 : vector<1x128xf32> to vector<16x128xf32>
    %551 = arith.mulf %550, %548 : vector<16x128xf32>
    %552 = arith.addf %546, %551 : vector<16x128xf32>
    %c3_290 = arith.constant 3 : index
    %c0_291 = arith.constant 0 : index
    %c0_292 = arith.constant 0 : index
    %553 = vector.load %arg3[%c3_290, %c0_291, %c0_292] : memref<5x16x128xf32, #tpu.memory_space<vmem>>, vector<1x16x128xf32>
    %554 = vector.shape_cast %553 : vector<1x16x128xf32> to vector<16x128xf32>
    %555 = vector.extract_strided_slice %554 {offsets = [6, 0], sizes = [1, 128], strides = [1, 1]} : vector<16x128xf32> to vector<1x128xf32>
    %556 = vector.broadcast %555 : vector<1x128xf32> to vector<16x128xf32>
    %557 = arith.mulf %556, %554 : vector<16x128xf32>
    %558 = arith.addf %552, %557 : vector<16x128xf32>
    %c4_293 = arith.constant 4 : index
    %c0_294 = arith.constant 0 : index
    %c0_295 = arith.constant 0 : index
    %559 = vector.load %arg3[%c4_293, %c0_294, %c0_295] : memref<5x16x128xf32, #tpu.memory_space<vmem>>, vector<1x16x128xf32>
    %560 = vector.shape_cast %559 : vector<1x16x128xf32> to vector<16x128xf32>
    %561 = vector.extract_strided_slice %560 {offsets = [6, 0], sizes = [1, 128], strides = [1, 1]} : vector<16x128xf32> to vector<1x128xf32>
    %562 = vector.broadcast %561 : vector<1x128xf32> to vector<16x128xf32>
    %563 = arith.mulf %562, %560 : vector<16x128xf32>
    %564 = arith.addf %558, %563 : vector<16x128xf32>
    %c0_296 = arith.constant 0 : index
    %c0_297 = arith.constant 0 : index
    %c0_298 = arith.constant 0 : index
    %565 = vector.load %arg3[%c0_296, %c0_297, %c0_298] : memref<5x16x128xf32, #tpu.memory_space<vmem>>, vector<1x16x128xf32>
    %566 = vector.shape_cast %565 : vector<1x16x128xf32> to vector<16x128xf32>
    %567 = vector.extract_strided_slice %566 {offsets = [7, 0], sizes = [1, 128], strides = [1, 1]} : vector<16x128xf32> to vector<1x128xf32>
    %568 = vector.broadcast %567 : vector<1x128xf32> to vector<16x128xf32>
    %569 = arith.mulf %568, %566 : vector<16x128xf32>
    %c1_299 = arith.constant 1 : index
    %c0_300 = arith.constant 0 : index
    %c0_301 = arith.constant 0 : index
    %570 = vector.load %arg3[%c1_299, %c0_300, %c0_301] : memref<5x16x128xf32, #tpu.memory_space<vmem>>, vector<1x16x128xf32>
    %571 = vector.shape_cast %570 : vector<1x16x128xf32> to vector<16x128xf32>
    %572 = vector.extract_strided_slice %571 {offsets = [7, 0], sizes = [1, 128], strides = [1, 1]} : vector<16x128xf32> to vector<1x128xf32>
    %573 = vector.broadcast %572 : vector<1x128xf32> to vector<16x128xf32>
    %574 = arith.mulf %573, %571 : vector<16x128xf32>
    %575 = arith.addf %569, %574 : vector<16x128xf32>
    %c2_302 = arith.constant 2 : index
    %c0_303 = arith.constant 0 : index
    %c0_304 = arith.constant 0 : index
    %576 = vector.load %arg3[%c2_302, %c0_303, %c0_304] : memref<5x16x128xf32, #tpu.memory_space<vmem>>, vector<1x16x128xf32>
    %577 = vector.shape_cast %576 : vector<1x16x128xf32> to vector<16x128xf32>
    %578 = vector.extract_strided_slice %577 {offsets = [7, 0], sizes = [1, 128], strides = [1, 1]} : vector<16x128xf32> to vector<1x128xf32>
    %579 = vector.broadcast %578 : vector<1x128xf32> to vector<16x128xf32>
    %580 = arith.mulf %579, %577 : vector<16x128xf32>
    %581 = arith.addf %575, %580 : vector<16x128xf32>
    %c3_305 = arith.constant 3 : index
    %c0_306 = arith.constant 0 : index
    %c0_307 = arith.constant 0 : index
    %582 = vector.load %arg3[%c3_305, %c0_306, %c0_307] : memref<5x16x128xf32, #tpu.memory_space<vmem>>, vector<1x16x128xf32>
    %583 = vector.shape_cast %582 : vector<1x16x128xf32> to vector<16x128xf32>
    %584 = vector.extract_strided_slice %583 {offsets = [7, 0], sizes = [1, 128], strides = [1, 1]} : vector<16x128xf32> to vector<1x128xf32>
    %585 = vector.broadcast %584 : vector<1x128xf32> to vector<16x128xf32>
    %586 = arith.mulf %585, %583 : vector<16x128xf32>
    %587 = arith.addf %581, %586 : vector<16x128xf32>
    %c4_308 = arith.constant 4 : index
    %c0_309 = arith.constant 0 : index
    %c0_310 = arith.constant 0 : index
    %588 = vector.load %arg3[%c4_308, %c0_309, %c0_310] : memref<5x16x128xf32, #tpu.memory_space<vmem>>, vector<1x16x128xf32>
    %589 = vector.shape_cast %588 : vector<1x16x128xf32> to vector<16x128xf32>
    %590 = vector.extract_strided_slice %589 {offsets = [7, 0], sizes = [1, 128], strides = [1, 1]} : vector<16x128xf32> to vector<1x128xf32>
    %591 = vector.broadcast %590 : vector<1x128xf32> to vector<16x128xf32>
    %592 = arith.mulf %591, %589 : vector<16x128xf32>
    %593 = arith.addf %587, %592 : vector<16x128xf32>
    %c0_311 = arith.constant 0 : index
    %c0_312 = arith.constant 0 : index
    %c0_313 = arith.constant 0 : index
    %594 = vector.load %arg3[%c0_311, %c0_312, %c0_313] : memref<5x16x128xf32, #tpu.memory_space<vmem>>, vector<1x16x128xf32>
    %595 = vector.shape_cast %594 : vector<1x16x128xf32> to vector<16x128xf32>
    %596 = vector.extract_strided_slice %595 {offsets = [8, 0], sizes = [1, 128], strides = [1, 1]} : vector<16x128xf32> to vector<1x128xf32>
    %597 = vector.broadcast %596 : vector<1x128xf32> to vector<16x128xf32>
    %598 = arith.mulf %597, %595 : vector<16x128xf32>
    %c1_314 = arith.constant 1 : index
    %c0_315 = arith.constant 0 : index
    %c0_316 = arith.constant 0 : index
    %599 = vector.load %arg3[%c1_314, %c0_315, %c0_316] : memref<5x16x128xf32, #tpu.memory_space<vmem>>, vector<1x16x128xf32>
    %600 = vector.shape_cast %599 : vector<1x16x128xf32> to vector<16x128xf32>
    %601 = vector.extract_strided_slice %600 {offsets = [8, 0], sizes = [1, 128], strides = [1, 1]} : vector<16x128xf32> to vector<1x128xf32>
    %602 = vector.broadcast %601 : vector<1x128xf32> to vector<16x128xf32>
    %603 = arith.mulf %602, %600 : vector<16x128xf32>
    %604 = arith.addf %598, %603 : vector<16x128xf32>
    %c2_317 = arith.constant 2 : index
    %c0_318 = arith.constant 0 : index
    %c0_319 = arith.constant 0 : index
    %605 = vector.load %arg3[%c2_317, %c0_318, %c0_319] : memref<5x16x128xf32, #tpu.memory_space<vmem>>, vector<1x16x128xf32>
    %606 = vector.shape_cast %605 : vector<1x16x128xf32> to vector<16x128xf32>
    %607 = vector.extract_strided_slice %606 {offsets = [8, 0], sizes = [1, 128], strides = [1, 1]} : vector<16x128xf32> to vector<1x128xf32>
    %608 = vector.broadcast %607 : vector<1x128xf32> to vector<16x128xf32>
    %609 = arith.mulf %608, %606 : vector<16x128xf32>
    %610 = arith.addf %604, %609 : vector<16x128xf32>
    %c3_320 = arith.constant 3 : index
    %c0_321 = arith.constant 0 : index
    %c0_322 = arith.constant 0 : index
    %611 = vector.load %arg3[%c3_320, %c0_321, %c0_322] : memref<5x16x128xf32, #tpu.memory_space<vmem>>, vector<1x16x128xf32>
    %612 = vector.shape_cast %611 : vector<1x16x128xf32> to vector<16x128xf32>
    %613 = vector.extract_strided_slice %612 {offsets = [8, 0], sizes = [1, 128], strides = [1, 1]} : vector<16x128xf32> to vector<1x128xf32>
    %614 = vector.broadcast %613 : vector<1x128xf32> to vector<16x128xf32>
    %615 = arith.mulf %614, %612 : vector<16x128xf32>
    %616 = arith.addf %610, %615 : vector<16x128xf32>
    %c4_323 = arith.constant 4 : index
    %c0_324 = arith.constant 0 : index
    %c0_325 = arith.constant 0 : index
    %617 = vector.load %arg3[%c4_323, %c0_324, %c0_325] : memref<5x16x128xf32, #tpu.memory_space<vmem>>, vector<1x16x128xf32>
    %618 = vector.shape_cast %617 : vector<1x16x128xf32> to vector<16x128xf32>
    %619 = vector.extract_strided_slice %618 {offsets = [8, 0], sizes = [1, 128], strides = [1, 1]} : vector<16x128xf32> to vector<1x128xf32>
    %620 = vector.broadcast %619 : vector<1x128xf32> to vector<16x128xf32>
    %621 = arith.mulf %620, %618 : vector<16x128xf32>
    %622 = arith.addf %616, %621 : vector<16x128xf32>
    %c0_326 = arith.constant 0 : index
    %c0_327 = arith.constant 0 : index
    %c0_328 = arith.constant 0 : index
    %623 = vector.load %arg3[%c0_326, %c0_327, %c0_328] : memref<5x16x128xf32, #tpu.memory_space<vmem>>, vector<1x16x128xf32>
    %624 = vector.shape_cast %623 : vector<1x16x128xf32> to vector<16x128xf32>
    %625 = vector.extract_strided_slice %624 {offsets = [9, 0], sizes = [1, 128], strides = [1, 1]} : vector<16x128xf32> to vector<1x128xf32>
    %626 = vector.broadcast %625 : vector<1x128xf32> to vector<16x128xf32>
    %627 = arith.mulf %626, %624 : vector<16x128xf32>
    %c1_329 = arith.constant 1 : index
    %c0_330 = arith.constant 0 : index
    %c0_331 = arith.constant 0 : index
    %628 = vector.load %arg3[%c1_329, %c0_330, %c0_331] : memref<5x16x128xf32, #tpu.memory_space<vmem>>, vector<1x16x128xf32>
    %629 = vector.shape_cast %628 : vector<1x16x128xf32> to vector<16x128xf32>
    %630 = vector.extract_strided_slice %629 {offsets = [9, 0], sizes = [1, 128], strides = [1, 1]} : vector<16x128xf32> to vector<1x128xf32>
    %631 = vector.broadcast %630 : vector<1x128xf32> to vector<16x128xf32>
    %632 = arith.mulf %631, %629 : vector<16x128xf32>
    %633 = arith.addf %627, %632 : vector<16x128xf32>
    %c2_332 = arith.constant 2 : index
    %c0_333 = arith.constant 0 : index
    %c0_334 = arith.constant 0 : index
    %634 = vector.load %arg3[%c2_332, %c0_333, %c0_334] : memref<5x16x128xf32, #tpu.memory_space<vmem>>, vector<1x16x128xf32>
    %635 = vector.shape_cast %634 : vector<1x16x128xf32> to vector<16x128xf32>
    %636 = vector.extract_strided_slice %635 {offsets = [9, 0], sizes = [1, 128], strides = [1, 1]} : vector<16x128xf32> to vector<1x128xf32>
    %637 = vector.broadcast %636 : vector<1x128xf32> to vector<16x128xf32>
    %638 = arith.mulf %637, %635 : vector<16x128xf32>
    %639 = arith.addf %633, %638 : vector<16x128xf32>
    %c3_335 = arith.constant 3 : index
    %c0_336 = arith.constant 0 : index
    %c0_337 = arith.constant 0 : index
    %640 = vector.load %arg3[%c3_335, %c0_336, %c0_337] : memref<5x16x128xf32, #tpu.memory_space<vmem>>, vector<1x16x128xf32>
    %641 = vector.shape_cast %640 : vector<1x16x128xf32> to vector<16x128xf32>
    %642 = vector.extract_strided_slice %641 {offsets = [9, 0], sizes = [1, 128], strides = [1, 1]} : vector<16x128xf32> to vector<1x128xf32>
    %643 = vector.broadcast %642 : vector<1x128xf32> to vector<16x128xf32>
    %644 = arith.mulf %643, %641 : vector<16x128xf32>
    %645 = arith.addf %639, %644 : vector<16x128xf32>
    %c4_338 = arith.constant 4 : index
    %c0_339 = arith.constant 0 : index
    %c0_340 = arith.constant 0 : index
    %646 = vector.load %arg3[%c4_338, %c0_339, %c0_340] : memref<5x16x128xf32, #tpu.memory_space<vmem>>, vector<1x16x128xf32>
    %647 = vector.shape_cast %646 : vector<1x16x128xf32> to vector<16x128xf32>
    %648 = vector.extract_strided_slice %647 {offsets = [9, 0], sizes = [1, 128], strides = [1, 1]} : vector<16x128xf32> to vector<1x128xf32>
    %649 = vector.broadcast %648 : vector<1x128xf32> to vector<16x128xf32>
    %650 = arith.mulf %649, %647 : vector<16x128xf32>
    %651 = arith.addf %645, %650 : vector<16x128xf32>
    %c0_341 = arith.constant 0 : index
    %c0_342 = arith.constant 0 : index
    %c0_343 = arith.constant 0 : index
    %652 = vector.load %arg3[%c0_341, %c0_342, %c0_343] : memref<5x16x128xf32, #tpu.memory_space<vmem>>, vector<1x16x128xf32>
    %653 = vector.shape_cast %652 : vector<1x16x128xf32> to vector<16x128xf32>
    %654 = vector.extract_strided_slice %653 {offsets = [10, 0], sizes = [1, 128], strides = [1, 1]} : vector<16x128xf32> to vector<1x128xf32>
    %655 = vector.broadcast %654 : vector<1x128xf32> to vector<16x128xf32>
    %656 = arith.mulf %655, %653 : vector<16x128xf32>
    %c1_344 = arith.constant 1 : index
    %c0_345 = arith.constant 0 : index
    %c0_346 = arith.constant 0 : index
    %657 = vector.load %arg3[%c1_344, %c0_345, %c0_346] : memref<5x16x128xf32, #tpu.memory_space<vmem>>, vector<1x16x128xf32>
    %658 = vector.shape_cast %657 : vector<1x16x128xf32> to vector<16x128xf32>
    %659 = vector.extract_strided_slice %658 {offsets = [10, 0], sizes = [1, 128], strides = [1, 1]} : vector<16x128xf32> to vector<1x128xf32>
    %660 = vector.broadcast %659 : vector<1x128xf32> to vector<16x128xf32>
    %661 = arith.mulf %660, %658 : vector<16x128xf32>
    %662 = arith.addf %656, %661 : vector<16x128xf32>
    %c2_347 = arith.constant 2 : index
    %c0_348 = arith.constant 0 : index
    %c0_349 = arith.constant 0 : index
    %663 = vector.load %arg3[%c2_347, %c0_348, %c0_349] : memref<5x16x128xf32, #tpu.memory_space<vmem>>, vector<1x16x128xf32>
    %664 = vector.shape_cast %663 : vector<1x16x128xf32> to vector<16x128xf32>
    %665 = vector.extract_strided_slice %664 {offsets = [10, 0], sizes = [1, 128], strides = [1, 1]} : vector<16x128xf32> to vector<1x128xf32>
    %666 = vector.broadcast %665 : vector<1x128xf32> to vector<16x128xf32>
    %667 = arith.mulf %666, %664 : vector<16x128xf32>
    %668 = arith.addf %662, %667 : vector<16x128xf32>
    %c3_350 = arith.constant 3 : index
    %c0_351 = arith.constant 0 : index
    %c0_352 = arith.constant 0 : index
    %669 = vector.load %arg3[%c3_350, %c0_351, %c0_352] : memref<5x16x128xf32, #tpu.memory_space<vmem>>, vector<1x16x128xf32>
    %670 = vector.shape_cast %669 : vector<1x16x128xf32> to vector<16x128xf32>
    %671 = vector.extract_strided_slice %670 {offsets = [10, 0], sizes = [1, 128], strides = [1, 1]} : vector<16x128xf32> to vector<1x128xf32>
    %672 = vector.broadcast %671 : vector<1x128xf32> to vector<16x128xf32>
    %673 = arith.mulf %672, %670 : vector<16x128xf32>
    %674 = arith.addf %668, %673 : vector<16x128xf32>
    %c4_353 = arith.constant 4 : index
    %c0_354 = arith.constant 0 : index
    %c0_355 = arith.constant 0 : index
    %675 = vector.load %arg3[%c4_353, %c0_354, %c0_355] : memref<5x16x128xf32, #tpu.memory_space<vmem>>, vector<1x16x128xf32>
    %676 = vector.shape_cast %675 : vector<1x16x128xf32> to vector<16x128xf32>
    %677 = vector.extract_strided_slice %676 {offsets = [10, 0], sizes = [1, 128], strides = [1, 1]} : vector<16x128xf32> to vector<1x128xf32>
    %678 = vector.broadcast %677 : vector<1x128xf32> to vector<16x128xf32>
    %679 = arith.mulf %678, %676 : vector<16x128xf32>
    %680 = arith.addf %674, %679 : vector<16x128xf32>
    %c0_356 = arith.constant 0 : index
    %c0_357 = arith.constant 0 : index
    %c0_358 = arith.constant 0 : index
    %681 = vector.load %arg3[%c0_356, %c0_357, %c0_358] : memref<5x16x128xf32, #tpu.memory_space<vmem>>, vector<1x16x128xf32>
    %682 = vector.shape_cast %681 : vector<1x16x128xf32> to vector<16x128xf32>
    %683 = vector.extract_strided_slice %682 {offsets = [11, 0], sizes = [1, 128], strides = [1, 1]} : vector<16x128xf32> to vector<1x128xf32>
    %684 = vector.broadcast %683 : vector<1x128xf32> to vector<16x128xf32>
    %685 = arith.mulf %684, %682 : vector<16x128xf32>
    %c1_359 = arith.constant 1 : index
    %c0_360 = arith.constant 0 : index
    %c0_361 = arith.constant 0 : index
    %686 = vector.load %arg3[%c1_359, %c0_360, %c0_361] : memref<5x16x128xf32, #tpu.memory_space<vmem>>, vector<1x16x128xf32>
    %687 = vector.shape_cast %686 : vector<1x16x128xf32> to vector<16x128xf32>
    %688 = vector.extract_strided_slice %687 {offsets = [11, 0], sizes = [1, 128], strides = [1, 1]} : vector<16x128xf32> to vector<1x128xf32>
    %689 = vector.broadcast %688 : vector<1x128xf32> to vector<16x128xf32>
    %690 = arith.mulf %689, %687 : vector<16x128xf32>
    %691 = arith.addf %685, %690 : vector<16x128xf32>
    %c2_362 = arith.constant 2 : index
    %c0_363 = arith.constant 0 : index
    %c0_364 = arith.constant 0 : index
    %692 = vector.load %arg3[%c2_362, %c0_363, %c0_364] : memref<5x16x128xf32, #tpu.memory_space<vmem>>, vector<1x16x128xf32>
    %693 = vector.shape_cast %692 : vector<1x16x128xf32> to vector<16x128xf32>
    %694 = vector.extract_strided_slice %693 {offsets = [11, 0], sizes = [1, 128], strides = [1, 1]} : vector<16x128xf32> to vector<1x128xf32>
    %695 = vector.broadcast %694 : vector<1x128xf32> to vector<16x128xf32>
    %696 = arith.mulf %695, %693 : vector<16x128xf32>
    %697 = arith.addf %691, %696 : vector<16x128xf32>
    %c3_365 = arith.constant 3 : index
    %c0_366 = arith.constant 0 : index
    %c0_367 = arith.constant 0 : index
    %698 = vector.load %arg3[%c3_365, %c0_366, %c0_367] : memref<5x16x128xf32, #tpu.memory_space<vmem>>, vector<1x16x128xf32>
    %699 = vector.shape_cast %698 : vector<1x16x128xf32> to vector<16x128xf32>
    %700 = vector.extract_strided_slice %699 {offsets = [11, 0], sizes = [1, 128], strides = [1, 1]} : vector<16x128xf32> to vector<1x128xf32>
    %701 = vector.broadcast %700 : vector<1x128xf32> to vector<16x128xf32>
    %702 = arith.mulf %701, %699 : vector<16x128xf32>
    %703 = arith.addf %697, %702 : vector<16x128xf32>
    %c4_368 = arith.constant 4 : index
    %c0_369 = arith.constant 0 : index
    %c0_370 = arith.constant 0 : index
    %704 = vector.load %arg3[%c4_368, %c0_369, %c0_370] : memref<5x16x128xf32, #tpu.memory_space<vmem>>, vector<1x16x128xf32>
    %705 = vector.shape_cast %704 : vector<1x16x128xf32> to vector<16x128xf32>
    %706 = vector.extract_strided_slice %705 {offsets = [11, 0], sizes = [1, 128], strides = [1, 1]} : vector<16x128xf32> to vector<1x128xf32>
    %707 = vector.broadcast %706 : vector<1x128xf32> to vector<16x128xf32>
    %708 = arith.mulf %707, %705 : vector<16x128xf32>
    %709 = arith.addf %703, %708 : vector<16x128xf32>
    %c0_371 = arith.constant 0 : index
    %c0_372 = arith.constant 0 : index
    %c0_373 = arith.constant 0 : index
    %710 = vector.load %arg3[%c0_371, %c0_372, %c0_373] : memref<5x16x128xf32, #tpu.memory_space<vmem>>, vector<1x16x128xf32>
    %711 = vector.shape_cast %710 : vector<1x16x128xf32> to vector<16x128xf32>
    %712 = vector.extract_strided_slice %711 {offsets = [12, 0], sizes = [1, 128], strides = [1, 1]} : vector<16x128xf32> to vector<1x128xf32>
    %713 = vector.broadcast %712 : vector<1x128xf32> to vector<16x128xf32>
    %714 = arith.mulf %713, %711 : vector<16x128xf32>
    %c1_374 = arith.constant 1 : index
    %c0_375 = arith.constant 0 : index
    %c0_376 = arith.constant 0 : index
    %715 = vector.load %arg3[%c1_374, %c0_375, %c0_376] : memref<5x16x128xf32, #tpu.memory_space<vmem>>, vector<1x16x128xf32>
    %716 = vector.shape_cast %715 : vector<1x16x128xf32> to vector<16x128xf32>
    %717 = vector.extract_strided_slice %716 {offsets = [12, 0], sizes = [1, 128], strides = [1, 1]} : vector<16x128xf32> to vector<1x128xf32>
    %718 = vector.broadcast %717 : vector<1x128xf32> to vector<16x128xf32>
    %719 = arith.mulf %718, %716 : vector<16x128xf32>
    %720 = arith.addf %714, %719 : vector<16x128xf32>
    %c2_377 = arith.constant 2 : index
    %c0_378 = arith.constant 0 : index
    %c0_379 = arith.constant 0 : index
    %721 = vector.load %arg3[%c2_377, %c0_378, %c0_379] : memref<5x16x128xf32, #tpu.memory_space<vmem>>, vector<1x16x128xf32>
    %722 = vector.shape_cast %721 : vector<1x16x128xf32> to vector<16x128xf32>
    %723 = vector.extract_strided_slice %722 {offsets = [12, 0], sizes = [1, 128], strides = [1, 1]} : vector<16x128xf32> to vector<1x128xf32>
    %724 = vector.broadcast %723 : vector<1x128xf32> to vector<16x128xf32>
    %725 = arith.mulf %724, %722 : vector<16x128xf32>
    %726 = arith.addf %720, %725 : vector<16x128xf32>
    %c3_380 = arith.constant 3 : index
    %c0_381 = arith.constant 0 : index
    %c0_382 = arith.constant 0 : index
    %727 = vector.load %arg3[%c3_380, %c0_381, %c0_382] : memref<5x16x128xf32, #tpu.memory_space<vmem>>, vector<1x16x128xf32>
    %728 = vector.shape_cast %727 : vector<1x16x128xf32> to vector<16x128xf32>
    %729 = vector.extract_strided_slice %728 {offsets = [12, 0], sizes = [1, 128], strides = [1, 1]} : vector<16x128xf32> to vector<1x128xf32>
    %730 = vector.broadcast %729 : vector<1x128xf32> to vector<16x128xf32>
    %731 = arith.mulf %730, %728 : vector<16x128xf32>
    %732 = arith.addf %726, %731 : vector<16x128xf32>
    %c4_383 = arith.constant 4 : index
    %c0_384 = arith.constant 0 : index
    %c0_385 = arith.constant 0 : index
    %733 = vector.load %arg3[%c4_383, %c0_384, %c0_385] : memref<5x16x128xf32, #tpu.memory_space<vmem>>, vector<1x16x128xf32>
    %734 = vector.shape_cast %733 : vector<1x16x128xf32> to vector<16x128xf32>
    %735 = vector.extract_strided_slice %734 {offsets = [12, 0], sizes = [1, 128], strides = [1, 1]} : vector<16x128xf32> to vector<1x128xf32>
    %736 = vector.broadcast %735 : vector<1x128xf32> to vector<16x128xf32>
    %737 = arith.mulf %736, %734 : vector<16x128xf32>
    %738 = arith.addf %732, %737 : vector<16x128xf32>
    %c0_386 = arith.constant 0 : index
    %c0_387 = arith.constant 0 : index
    %c0_388 = arith.constant 0 : index
    %739 = vector.load %arg3[%c0_386, %c0_387, %c0_388] : memref<5x16x128xf32, #tpu.memory_space<vmem>>, vector<1x16x128xf32>
    %740 = vector.shape_cast %739 : vector<1x16x128xf32> to vector<16x128xf32>
    %741 = vector.extract_strided_slice %740 {offsets = [13, 0], sizes = [1, 128], strides = [1, 1]} : vector<16x128xf32> to vector<1x128xf32>
    %742 = vector.broadcast %741 : vector<1x128xf32> to vector<16x128xf32>
    %743 = arith.mulf %742, %740 : vector<16x128xf32>
    %c1_389 = arith.constant 1 : index
    %c0_390 = arith.constant 0 : index
    %c0_391 = arith.constant 0 : index
    %744 = vector.load %arg3[%c1_389, %c0_390, %c0_391] : memref<5x16x128xf32, #tpu.memory_space<vmem>>, vector<1x16x128xf32>
    %745 = vector.shape_cast %744 : vector<1x16x128xf32> to vector<16x128xf32>
    %746 = vector.extract_strided_slice %745 {offsets = [13, 0], sizes = [1, 128], strides = [1, 1]} : vector<16x128xf32> to vector<1x128xf32>
    %747 = vector.broadcast %746 : vector<1x128xf32> to vector<16x128xf32>
    %748 = arith.mulf %747, %745 : vector<16x128xf32>
    %749 = arith.addf %743, %748 : vector<16x128xf32>
    %c2_392 = arith.constant 2 : index
    %c0_393 = arith.constant 0 : index
    %c0_394 = arith.constant 0 : index
    %750 = vector.load %arg3[%c2_392, %c0_393, %c0_394] : memref<5x16x128xf32, #tpu.memory_space<vmem>>, vector<1x16x128xf32>
    %751 = vector.shape_cast %750 : vector<1x16x128xf32> to vector<16x128xf32>
    %752 = vector.extract_strided_slice %751 {offsets = [13, 0], sizes = [1, 128], strides = [1, 1]} : vector<16x128xf32> to vector<1x128xf32>
    %753 = vector.broadcast %752 : vector<1x128xf32> to vector<16x128xf32>
    %754 = arith.mulf %753, %751 : vector<16x128xf32>
    %755 = arith.addf %749, %754 : vector<16x128xf32>
    %c3_395 = arith.constant 3 : index
    %c0_396 = arith.constant 0 : index
    %c0_397 = arith.constant 0 : index
    %756 = vector.load %arg3[%c3_395, %c0_396, %c0_397] : memref<5x16x128xf32, #tpu.memory_space<vmem>>, vector<1x16x128xf32>
    %757 = vector.shape_cast %756 : vector<1x16x128xf32> to vector<16x128xf32>
    %758 = vector.extract_strided_slice %757 {offsets = [13, 0], sizes = [1, 128], strides = [1, 1]} : vector<16x128xf32> to vector<1x128xf32>
    %759 = vector.broadcast %758 : vector<1x128xf32> to vector<16x128xf32>
    %760 = arith.mulf %759, %757 : vector<16x128xf32>
    %761 = arith.addf %755, %760 : vector<16x128xf32>
    %c4_398 = arith.constant 4 : index
    %c0_399 = arith.constant 0 : index
    %c0_400 = arith.constant 0 : index
    %762 = vector.load %arg3[%c4_398, %c0_399, %c0_400] : memref<5x16x128xf32, #tpu.memory_space<vmem>>, vector<1x16x128xf32>
    %763 = vector.shape_cast %762 : vector<1x16x128xf32> to vector<16x128xf32>
    %764 = vector.extract_strided_slice %763 {offsets = [13, 0], sizes = [1, 128], strides = [1, 1]} : vector<16x128xf32> to vector<1x128xf32>
    %765 = vector.broadcast %764 : vector<1x128xf32> to vector<16x128xf32>
    %766 = arith.mulf %765, %763 : vector<16x128xf32>
    %767 = arith.addf %761, %766 : vector<16x128xf32>
    %c0_401 = arith.constant 0 : index
    %c0_402 = arith.constant 0 : index
    %c0_403 = arith.constant 0 : index
    %768 = vector.load %arg3[%c0_401, %c0_402, %c0_403] : memref<5x16x128xf32, #tpu.memory_space<vmem>>, vector<1x16x128xf32>
    %769 = vector.shape_cast %768 : vector<1x16x128xf32> to vector<16x128xf32>
    %770 = vector.extract_strided_slice %769 {offsets = [14, 0], sizes = [1, 128], strides = [1, 1]} : vector<16x128xf32> to vector<1x128xf32>
    %771 = vector.broadcast %770 : vector<1x128xf32> to vector<16x128xf32>
    %772 = arith.mulf %771, %769 : vector<16x128xf32>
    %c1_404 = arith.constant 1 : index
    %c0_405 = arith.constant 0 : index
    %c0_406 = arith.constant 0 : index
    %773 = vector.load %arg3[%c1_404, %c0_405, %c0_406] : memref<5x16x128xf32, #tpu.memory_space<vmem>>, vector<1x16x128xf32>
    %774 = vector.shape_cast %773 : vector<1x16x128xf32> to vector<16x128xf32>
    %775 = vector.extract_strided_slice %774 {offsets = [14, 0], sizes = [1, 128], strides = [1, 1]} : vector<16x128xf32> to vector<1x128xf32>
    %776 = vector.broadcast %775 : vector<1x128xf32> to vector<16x128xf32>
    %777 = arith.mulf %776, %774 : vector<16x128xf32>
    %778 = arith.addf %772, %777 : vector<16x128xf32>
    %c2_407 = arith.constant 2 : index
    %c0_408 = arith.constant 0 : index
    %c0_409 = arith.constant 0 : index
    %779 = vector.load %arg3[%c2_407, %c0_408, %c0_409] : memref<5x16x128xf32, #tpu.memory_space<vmem>>, vector<1x16x128xf32>
    %780 = vector.shape_cast %779 : vector<1x16x128xf32> to vector<16x128xf32>
    %781 = vector.extract_strided_slice %780 {offsets = [14, 0], sizes = [1, 128], strides = [1, 1]} : vector<16x128xf32> to vector<1x128xf32>
    %782 = vector.broadcast %781 : vector<1x128xf32> to vector<16x128xf32>
    %783 = arith.mulf %782, %780 : vector<16x128xf32>
    %784 = arith.addf %778, %783 : vector<16x128xf32>
    %c3_410 = arith.constant 3 : index
    %c0_411 = arith.constant 0 : index
    %c0_412 = arith.constant 0 : index
    %785 = vector.load %arg3[%c3_410, %c0_411, %c0_412] : memref<5x16x128xf32, #tpu.memory_space<vmem>>, vector<1x16x128xf32>
    %786 = vector.shape_cast %785 : vector<1x16x128xf32> to vector<16x128xf32>
    %787 = vector.extract_strided_slice %786 {offsets = [14, 0], sizes = [1, 128], strides = [1, 1]} : vector<16x128xf32> to vector<1x128xf32>
    %788 = vector.broadcast %787 : vector<1x128xf32> to vector<16x128xf32>
    %789 = arith.mulf %788, %786 : vector<16x128xf32>
    %790 = arith.addf %784, %789 : vector<16x128xf32>
    %c4_413 = arith.constant 4 : index
    %c0_414 = arith.constant 0 : index
    %c0_415 = arith.constant 0 : index
    %791 = vector.load %arg3[%c4_413, %c0_414, %c0_415] : memref<5x16x128xf32, #tpu.memory_space<vmem>>, vector<1x16x128xf32>
    %792 = vector.shape_cast %791 : vector<1x16x128xf32> to vector<16x128xf32>
    %793 = vector.extract_strided_slice %792 {offsets = [14, 0], sizes = [1, 128], strides = [1, 1]} : vector<16x128xf32> to vector<1x128xf32>
    %794 = vector.broadcast %793 : vector<1x128xf32> to vector<16x128xf32>
    %795 = arith.mulf %794, %792 : vector<16x128xf32>
    %796 = arith.addf %790, %795 : vector<16x128xf32>
    %c0_416 = arith.constant 0 : index
    %c0_417 = arith.constant 0 : index
    %c0_418 = arith.constant 0 : index
    %797 = vector.load %arg3[%c0_416, %c0_417, %c0_418] : memref<5x16x128xf32, #tpu.memory_space<vmem>>, vector<1x16x128xf32>
    %798 = vector.shape_cast %797 : vector<1x16x128xf32> to vector<16x128xf32>
    %799 = vector.extract_strided_slice %798 {offsets = [15, 0], sizes = [1, 128], strides = [1, 1]} : vector<16x128xf32> to vector<1x128xf32>
    %800 = vector.broadcast %799 : vector<1x128xf32> to vector<16x128xf32>
    %801 = arith.mulf %800, %798 : vector<16x128xf32>
    %c1_419 = arith.constant 1 : index
    %c0_420 = arith.constant 0 : index
    %c0_421 = arith.constant 0 : index
    %802 = vector.load %arg3[%c1_419, %c0_420, %c0_421] : memref<5x16x128xf32, #tpu.memory_space<vmem>>, vector<1x16x128xf32>
    %803 = vector.shape_cast %802 : vector<1x16x128xf32> to vector<16x128xf32>
    %804 = vector.extract_strided_slice %803 {offsets = [15, 0], sizes = [1, 128], strides = [1, 1]} : vector<16x128xf32> to vector<1x128xf32>
    %805 = vector.broadcast %804 : vector<1x128xf32> to vector<16x128xf32>
    %806 = arith.mulf %805, %803 : vector<16x128xf32>
    %807 = arith.addf %801, %806 : vector<16x128xf32>
    %c2_422 = arith.constant 2 : index
    %c0_423 = arith.constant 0 : index
    %c0_424 = arith.constant 0 : index
    %808 = vector.load %arg3[%c2_422, %c0_423, %c0_424] : memref<5x16x128xf32, #tpu.memory_space<vmem>>, vector<1x16x128xf32>
    %809 = vector.shape_cast %808 : vector<1x16x128xf32> to vector<16x128xf32>
    %810 = vector.extract_strided_slice %809 {offsets = [15, 0], sizes = [1, 128], strides = [1, 1]} : vector<16x128xf32> to vector<1x128xf32>
    %811 = vector.broadcast %810 : vector<1x128xf32> to vector<16x128xf32>
    %812 = arith.mulf %811, %809 : vector<16x128xf32>
    %813 = arith.addf %807, %812 : vector<16x128xf32>
    %c3_425 = arith.constant 3 : index
    %c0_426 = arith.constant 0 : index
    %c0_427 = arith.constant 0 : index
    %814 = vector.load %arg3[%c3_425, %c0_426, %c0_427] : memref<5x16x128xf32, #tpu.memory_space<vmem>>, vector<1x16x128xf32>
    %815 = vector.shape_cast %814 : vector<1x16x128xf32> to vector<16x128xf32>
    %816 = vector.extract_strided_slice %815 {offsets = [15, 0], sizes = [1, 128], strides = [1, 1]} : vector<16x128xf32> to vector<1x128xf32>
    %817 = vector.broadcast %816 : vector<1x128xf32> to vector<16x128xf32>
    %818 = arith.mulf %817, %815 : vector<16x128xf32>
    %819 = arith.addf %813, %818 : vector<16x128xf32>
    %c4_428 = arith.constant 4 : index
    %c0_429 = arith.constant 0 : index
    %c0_430 = arith.constant 0 : index
    %820 = vector.load %arg3[%c4_428, %c0_429, %c0_430] : memref<5x16x128xf32, #tpu.memory_space<vmem>>, vector<1x16x128xf32>
    %821 = vector.shape_cast %820 : vector<1x16x128xf32> to vector<16x128xf32>
    %822 = vector.extract_strided_slice %821 {offsets = [15, 0], sizes = [1, 128], strides = [1, 1]} : vector<16x128xf32> to vector<1x128xf32>
    %823 = vector.broadcast %822 : vector<1x128xf32> to vector<16x128xf32>
    %824 = arith.mulf %823, %821 : vector<16x128xf32>
    %825 = arith.addf %819, %824 : vector<16x128xf32>
    %826 = tpu.concatenate %390, %419, %448, %477, %506, %535, %564, %593, %622, %651, %680, %709, %738, %767, %796, %825 in 0 : vector<16x128xf32>, vector<16x128xf32>, vector<16x128xf32>, vector<16x128xf32>, vector<16x128xf32>, vector<16x128xf32>, vector<16x128xf32>, vector<16x128xf32>, vector<16x128xf32>, vector<16x128xf32>, vector<16x128xf32>, vector<16x128xf32>, vector<16x128xf32>, vector<16x128xf32>, vector<16x128xf32>, vector<16x128xf32> -> vector<256x128xf32>
    %cst_431 = arith.constant 0.44721359 : f32
    %827 = vector.broadcast %cst_431 : f32 to vector<256x128xf32>
    %828 = arith.mulf %826, %827 : vector<256x128xf32>
    %829 = tpu.transpose %828, [1, 0] : vector<256x128xf32> -> vector<128x256xf32>
    %c0_432 = arith.constant 0 : index
    %c512 = arith.constant 512 : index
    %830 = vector.load %arg4[%c0_432, %c512] : memref<128x768xf32, #tpu.memory_space<vmem>>, vector<128x256xf32>
    tpu.vector_store %arg4[%c0_432, %c512], %829 {strides = array<i32>} : memref<128x768xf32, #tpu.memory_space<vmem>>, vector<128x256xf32>,
    return
  }
  func.func @transform_0(%arg0: i32) -> (i32, i32, i32) {
    %c0_i32 = arith.constant 0 : i32
    %c0_i32_0 = arith.constant 0 : i32
    %c0_i32_1 = arith.constant 0 : i32
    return %c0_i32, %c0_i32_0, %arg0 : i32, i32, i32
  }
  func.func @transform_1(%arg0: i32) -> (i32, i32, i32) {
    %c0_i32 = arith.constant 0 : i32
    %c0_i32_0 = arith.constant 0 : i32
    %c0_i32_1 = arith.constant 0 : i32
    return %c0_i32, %c0_i32_0, %arg0 : i32, i32, i32
  }
  func.func @transform_2(%arg0: i32) -> (i32, i32, i32) {
    %c0_i32 = arith.constant 0 : i32
    %c0_i32_0 = arith.constant 0 : i32
    %c0_i32_1 = arith.constant 0 : i32
    return %c0_i32, %c0_i32_0, %arg0 : i32, i32, i32
  }
  func.func @transform_3(%arg0: i32) -> (i32, i32) {
    %c0_i32 = arith.constant 0 : i32
    %c0_i32_0 = arith.constant 0 : i32
    return %arg0, %c0_i32 : i32, i32
  }
}

</mosaic_0001>

<bundles_post_ra>
// kernel: tpu_custom_call.1
= control target key start
LH: loop header
LB: loop body
LE: loop exit
PB: predicated region body
PF: predicated region fallthrough
CT: control target
= control target key end

     0   :  { %8 = vsyncpa [#allocation3], 0  ;;  %s2534_s0 = inlined_call_operand.hbm [shape: f32[1,16,128], index: 0, kind: input, shape index: {}]   ;;  %s2535_s1 = inlined_call_operand.hbm [shape: f32[3,16,128], index: 1, kind: input, shape index: {}]   ;;  %s2536_s2 = inlined_call_operand.hbm [shape: f32[5,16,128], index: 2, kind: input, shape index: {}]   ;;  %s2537_s3 = inlined_call_operand.hbm [shape: f32[128,768], index: 3, kind: output, shape index: {}]  }
   0x1   :  { %9 = vsyncpa [#allocation6], 0 }
   0x2   :  { %10 = vsyncpa [#allocation4], 0  ;;  %s1611_s12 = smov [#allocation5]   ;;  %s1612_s14 = smov [#allocation2]  }
   0x3   :  { %s28_s13 = sshll.u32 %s1611_s12, 4  ;;  %s16_s15 = sshll.u32 %s1612_s14, 4  ;;  %s29_s13 = int_to_ptr.vmem [resolvable:$true] %s28_s13  ;;  %s1639_s15 = int_to_ptr.vmem [resolvable:$true] %s16_s15 }
   0x4   :  { %s1517_s18 = scalar_lea.hbm %s2535_s1, 768 }
   0x5   :  { %p1518_p0 = scmp.ne.s32.totalorder %s2535_s1, %s1517_s18  ;;  %p1521_p1 = scmp.lt.u32.totalorder %s1517_s18, %s2535_s1 }
   0x7   :  { %p1523_p2 = pnand %p1521_p1, %p1518_p0 }
   0x9   :  { %1526 = shalt.err (!%p1523_p2)
}
   0xa   :  { %s1527_s23 = scalar_lea.vmem %s29_s13, 768  ;;  %p1532_p4 = scmp.lt.s32.totalorder %s29_s13, %s29_s13 }
   0xb   :  { %p1528_p3 = scmp.ne.s32.totalorder %s29_s13, %s1527_s23  ;;  %p1533_p5 = scmp.lt.s32.totalorder %s1527_s23, %s1527_s23 }
   0xd   :  { %p1534_p6 = por %p1533_p5, %p1532_p4 }
   0xf   :  { %p1535_p7 = pnand %p1534_p6, %p1528_p3 }
  0x11   :  { %1538 = shalt.err (!%p1535_p7)
}
  0x12   :  { %s1613_s24 = smov 128   ;;  %s1614_s25 = smov 8  }
  0x13   :  { %34 = dma.hbm_to_vmem [thread:$0]  %s2535_s1, 768, %s29_s13, [#allocation6], %s1613_s24, %s1613_s24, %s1614_s25  }
  0x14   :  { %s1539_s30 = scalar_lea.hbm %s2534_s0, 256 }
  0x15   :  { %p1540_p8 = scmp.ne.s32.totalorder %s2534_s0, %s1539_s30  ;;  %p1543_p9 = scmp.lt.u32.totalorder %s1539_s30, %s2534_s0 }
  0x17   :  { %p1545_p10 = pnand %p1543_p9, %p1540_p8 }
  0x19   :  { %1548 = shalt.err (!%p1545_p10)
}
  0x1a   :  { %s1549_s8 = scalar_lea.vmem %s1639_s15, 256  ;;  %p1554_p12 = scmp.lt.s32.totalorder %s1639_s15, %s1639_s15 }
  0x1b   :  { %p1550_p11 = scmp.ne.s32.totalorder %s1639_s15, %s1549_s8  ;;  %p1555_p13 = scmp.lt.s32.totalorder %s1549_s8, %s1549_s8 }
  0x1d   :  { %p1556_p0 = por %p1555_p13, %p1554_p12 }
  0x1f   :  { %p1557_p1 = pnand %p1556_p0, %p1550_p11 }
  0x21   :  { %1560 = shalt.err (!%p1557_p1)
}
  0x22   :  { %22 = dma.hbm_to_vmem [thread:$0]  %s2534_s0, 256, %s1639_s15, [#allocation3], %s1613_s24, %s1613_s24, %s1614_s25  }
  0x23   :  { %s1615_s10 = smov [#allocation7]   ;;  %s1561_s14 = scalar_lea.hbm %s2536_s2, 1280 }
  0x24   :  { %s40_s11 = sshll.u32 %s1615_s10, 4  ;;  %p1562_p2 = scmp.ne.s32.totalorder %s2536_s2, %s1561_s14  ;;  %s41_s11 = int_to_ptr.vmem [resolvable:$true] %s40_s11 }
  0x25   :  { %p1565_p3 = scmp.lt.u32.totalorder %s1561_s14, %s2536_s2 }
  0x27   :  { %p1567_p4 = pnand %p1565_p3, %p1562_p2 }
  0x29   :  { %1570 = shalt.err (!%p1567_p4)
}
  0x2a   :  { %s1571_s20 = scalar_lea.vmem %s41_s11, 1280  ;;  %p1576_p6 = scmp.lt.s32.totalorder %s41_s11, %s41_s11 }
  0x2b   :  { %p1572_p5 = scmp.ne.s32.totalorder %s41_s11, %s1571_s20  ;;  %p1577_p7 = scmp.lt.s32.totalorder %s1571_s20, %s1571_s20 }
  0x2d   :  { %p1578_p8 = por %p1577_p7, %p1576_p6 }
  0x2f   :  { %p1579_p9 = pnand %p1578_p8, %p1572_p5 }
  0x31   :  { %1582 = shalt.err (!%p1579_p9)
}
  0x32   :  { %46 = dma.hbm_to_vmem [thread:$0]  %s2536_s2, 1280, %s41_s11, [#allocation6], %s1613_s24, %s1613_s24, %s1614_s25  }
  0x33   :  { %1605 = dma.done.wait [#allocation3], 256  }
  0x34   :  { %1606 = vsyncadd [#allocation3], 4294967040 }
  0x35   :  { %1607 = dma.done.wait [#allocation6], 2048  }
  0x36   :  { %1608 = vsyncadd [#allocation6], 4294965248  ;;  %v58_v0 = vlaneseq  ;;  %v1693_v3 = vld [vmem:[#allocation2] sm:$0xff]  ;;  %v1695_v4 = vld [vmem:[#allocation2 + $0x8] sm:$0xff]  ;;  %s1616_s2 = smov [#allocation8]  }
  0x37   :  { %v1743_v34 = vld [vmem:[#allocation5 + $0x8] sm:$0xff]  ;;  %v1745_v35 = vld [vmem:[#allocation5 + $0x18] sm:$0xff]  ;;  %v1765_v44 = vld [vmem:[#allocation5] sm:$0xff]  ;;  %s1493_s21 = sshll.u32 %s1616_s2, 4  ;;  %s1494_s21 = int_to_ptr.vmem [resolvable:$true] %s1493_s21 }
  0x38   :  { %v59_v1 = vshrl.u32 %v58_v0, 7  ;;  %v1767_v45 = vld [vmem:[#allocation5 + $0x10] sm:$0xff]  ;;  %v1787_v53 = vld [vmem:[#allocation5 + $0x28] sm:$0xff]  ;;  %v1795_v56 = vld [vmem:[#allocation5 + $0x20] sm:$0xff]  ;;  %s1583_s22 = scalar_lea.vmem %s1494_s21, 12288  ;;  %p1588_p11 = scmp.lt.s32.totalorder %s1494_s21, %s1494_s21 }
  0x39   :  { %p1584_p10 = scmp.ne.s32.totalorder %s1494_s21, %s1583_s22  ;;  %p1589_p12 = scmp.lt.s32.totalorder %s1583_s22, %s1583_s22 }
  0x3a   :  { %v1691_v2 = vsub.s32 0, %v59_v1  ;;  %v1697_v5 = vsub.s32 1, %v59_v1  ;;  %v1707_v11 = vsub.s32 2, %v59_v1  ;;  %v1713_v15 = vsub.s32 3, %v59_v1 }
  0x3b   :  { %v1721_v20 = vsub.s32 4, %v59_v1  ;;  %v1727_v23 = vsub.s32 5, %v59_v1  ;;  %v1730_v25 = vsub.s32 6, %v59_v1  ;;  %v1735_v29 = vsub.s32 7, %v59_v1  ;;  %p1590_p13 = por %p1589_p12, %p1588_p11 }
  0x3c   :  { %v109_v6 = vrot.slane %v1695_v4, %v1691_v2  ;;  %v61_v7 = vrot.slane %v1693_v3, %v1691_v2  ;;  %v115_v10 = vrot.slane %v1695_v4, %v1697_v5  ;;  %v67_v14 = vrot.slane %v1693_v3, %v1697_v5  ;;  %2546 = vst [vmem:[#allocation12_spill] sm:$0xff] %v1713_v15 }
  0x3d   :  { %v121_v16 = vrot.slane %v1695_v4, %v1707_v11  ;;  %v73_v19 = vrot.slane %v1693_v3, %v1707_v11  ;;  %2547 = vst [vmem:[#allocation13_spill] sm:$0xff] %v1721_v20  ;;  %v127_v21 = vrot.slane %v1695_v4, %v1713_v15  ;;  %v79_v22 = vrot.slane %v1693_v3, %v1713_v15  ;;  %p1591_p0 = pnand %p1590_p13, %p1584_p10 }
  0x3e   :  { %v110_v8 = vmul.f32 %v109_v6, %v1693_v3  ;;  %v62_v9 = vmul.f32 %v61_v7, %v1693_v3  ;;  %v111_v12 = vmul.f32 %v109_v6, %v1695_v4  ;;  %v63_v13 = vmul.f32 %v61_v7, %v1695_v4  ;;  %2548 = vst [vmem:[#allocation14_spill] sm:$0xff] %v1727_v23 }
  0x3f   :  { %v116_v17 = vmul.f32 %v115_v10, %v1693_v3  ;;  %v68_v18 = vmul.f32 %v67_v14, %v1693_v3  ;;  %v117_v24 = vmul.f32 %v115_v10, %v1695_v4  ;;  %v69_v26 = vmul.f32 %v67_v14, %v1695_v4  ;;  %2549 = vst [vmem:[#allocation15_spill] sm:$0xff] %v1735_v29 }
  0x40   :  { %186 = vxpose.xlu1.b32.start [1/16] %v110_v8, 128  ;;  %154 = vxpose.xlu0.b32.start [1/16] %v62_v9, 128  ;;  %v122_v27 = vmul.f32 %v121_v16, %v1693_v3  ;;  %v74_v28 = vmul.f32 %v73_v19, %v1693_v3  ;;  %v123_v30 = vmul.f32 %v121_v16, %v1695_v4 }
  0x41   :  { %v75_v31 = vmul.f32 %v73_v19, %v1695_v4  ;;  %v133_v32 = vrot.slane %v1695_v4, %v1721_v20  ;;  %v85_v33 = vrot.slane %v1693_v3, %v1721_v20  ;;  %v1748_v36 = vmul.f32 %v127_v21, %v1693_v3 }
  0x42   :  { %v80_v37 = vmul.f32 %v79_v22, %v1693_v3  ;;  %v139_v38 = vrot.slane %v1695_v4, %v1727_v23  ;;  %v91_v39 = vrot.slane %v1693_v3, %v1727_v23  ;;  %v1756_v40 = vmul.f32 %v127_v21, %v1695_v4 }
  0x43   :  { %v1759_v41 = vmul.f32 %v79_v22, %v1695_v4  ;;  %v145_v42 = vrot.slane %v1695_v4, %v1730_v25  ;;  %v97_v43 = vrot.slane %v1693_v3, %v1730_v25  ;;  %v151_v46 = vrot.slane %v1695_v4, %v1735_v29 }
  0x44   :  { %187 = vxpose.xlu1.b32.cont [2/16] %v111_v12, 128  ;;  %155 = vxpose.xlu0.b32.cont [2/16] %v63_v13, 128  ;;  %v437_v47 = vrot.slane %v1743_v34, %v1691_v2  ;;  %v443_v48 = vrot.slane %v1745_v35, %v1691_v2  ;;  %v1776_v49 = vmul.f32 %v133_v32, %v1693_v3 }
  0x45   :  { %v1779_v50 = vmul.f32 %v85_v33, %v1693_v3  ;;  %v1782_v51 = vmul.f32 %v133_v32, %v1695_v4  ;;  %v1785_v52 = vmul.f32 %v85_v33, %v1695_v4  ;;  %v1790_v54 = vmul.f32 %v139_v38, %v1693_v3 }
  0x46   :  { %v1793_v55 = vmul.f32 %v91_v39, %v1693_v3  ;;  %v255_v57 = vrot.slane %v1765_v44, %v1691_v2  ;;  %v264_v58 = vrot.slane %v1767_v45, %v1691_v2  ;;  %v1802_v59 = vmul.f32 %v139_v38, %v1695_v4 }
  0x47   :  { %v1805_v60 = vmul.f32 %v91_v39, %v1695_v4  ;;  %v1808_v61 = vmul.f32 %v145_v42, %v1693_v3  ;;  %v103_v62 = vrot.slane %v1693_v3, %v1735_v29  ;;  %v438_v63 = vmul.f32 %v437_v47, %v1765_v44 }
  0x48   :  { %188 = vxpose.xlu1.b32.cont [3/16] %v116_v17, 128  ;;  %156 = vxpose.xlu0.b32.cont [3/16] %v68_v18, 128  ;;  %v444_v0 = vmul.f32 %v443_v48, %v1767_v45  ;;  %v451_v1 = vrot.slane %v1787_v53, %v1691_v2  ;;  %v1817_v6 = vmul.f32 %v97_v43, %v1693_v3 }
  0x49   :  { %v1820_v7 = vmul.f32 %v145_v42, %v1695_v4  ;;  %v1823_v8 = vmul.f32 %v97_v43, %v1695_v4  ;;  %v275_v9 = vrot.slane %v1795_v56, %v1691_v2  ;;  %v1828_v10 = vmul.f32 %v151_v46, %v1693_v3 }
  0x4a   :  { %v1831_v12 = vmul.f32 %v151_v46, %v1695_v4  ;;  %v256_v13 = vmul.f32 %v255_v57, %v1765_v44  ;;  %v265_v14 = vmul.f32 %v264_v58, %v1767_v45  ;;  %v439_v16 = vmul.f32 %v437_v47, %v1743_v34 }
  0x4b   :  { %v445_v17 = vmul.f32 %v443_v48, %v1745_v35  ;;  %v459_v18 = vrot.slane %v1743_v34, %v1697_v5  ;;  %v465_v19 = vrot.slane %v1745_v35, %v1697_v5  ;;  %v1842_v21 = vmul.f32 %v103_v62, %v1693_v3 }
  0x4c   :  { %189 = vxpose.xlu1.b32.cont [4/16] %v117_v24, 128  ;;  %157 = vxpose.xlu0.b32.cont [4/16] %v69_v26, 128  ;;  %v446_v22 = vadd.f32 %v444_v0, %v438_v63  ;;  %v452_v24 = vmul.f32 %v451_v1, %v1795_v56  ;;  %v1846_v26 = vmul.f32 %v103_v62, %v1695_v4 }
  0x4d   :  { %v289_v32 = vrot.slane %v1767_v45, %v1697_v5  ;;  %v267_v33 = vadd.f32 %v265_v14, %v256_v13  ;;  %v257_v3 = vmul.f32 %v255_v57, %v1743_v34  ;;  %v447_v38 = vadd.f32 %v445_v17, %v439_v16 }
  0x4e   :  { %v460_v39 = vmul.f32 %v459_v18, %v1765_v44  ;;  %v466_v4 = vmul.f32 %v465_v19, %v1767_v45  ;;  %v473_v42 = vrot.slane %v1787_v53, %v1697_v5  ;;  %v454_v43 = vadd.f32 %v452_v24, %v446_v22 }
  0x4f   :  { %v461_v46 = vmul.f32 %v459_v18, %v1743_v34  ;;  %v467_v47 = vmul.f32 %v465_v19, %v1745_v35  ;;  %v277_v48 = vmul.f32 %v275_v9, %v1787_v53  ;;  %v297_v62 = vrot.slane %v1795_v56, %v1697_v5 }
  0x50   :  { %190 = vxpose.xlu1.b32.cont [5/16] %v122_v27, 128  ;;  %158 = vxpose.xlu0.b32.cont [5/16] %v74_v28, 128  ;;  %v276_v27 = vmul.f32 %v275_v9, %v1795_v56  ;;  %v283_v28 = vrot.slane %v1765_v44, %v1697_v5  ;;  %v468_v13 = vadd.f32 %v466_v4, %v460_v39 }
  0x51   :  { %v474_v14 = vmul.f32 %v473_v42, %v1795_v56  ;;  %v475_v9 = vmul.f32 %v473_v42, %v1787_v53  ;;  %v469_v16 = vadd.f32 %v467_v47, %v461_v46  ;;  %v291_v18 = vmul.f32 %v289_v32, %v1745_v35 }
  0x52   :  { %v284_v57 = vmul.f32 %v283_v28, %v1765_v44  ;;  %v278_v63 = vadd.f32 %v276_v27, %v267_v33  ;;  %v285_v17 = vmul.f32 %v283_v28, %v1743_v34  ;;  %v298_v22 = vmul.f32 %v297_v62, %v1795_v56 }
  0x53   :  { %v305_v24 = vrot.slane %v1765_v44, %v1707_v11  ;;  %v311_v27 = vrot.slane %v1767_v45, %v1707_v11  ;;  %v1887_v28 = vmul.f32 0.57735026, %v454_v43  ;;  %v477_v39 = vadd.f32 %v475_v9, %v469_v16 }
  0x54   :  { %191 = vxpose.xlu1.b32.cont [6/16] %v123_v30, 128  ;;  %159 = vxpose.xlu0.b32.cont [6/16] %v75_v31, 128  ;;  %v453_v30 = vmul.f32 %v451_v1, %v1787_v53  ;;  %v266_v31 = vmul.f32 %v264_v58, %v1745_v35  ;;  %v290_v58 = vmul.f32 %v289_v32, %v1767_v45 }
  0x55   :  { %v476_v32 = vadd.f32 %v474_v14, %v468_v13  ;;  %v293_v4 = vadd.f32 %v291_v18, %v285_v17  ;;  %v299_v42 = vmul.f32 %v297_v62, %v1787_v53  ;;  %v306_v47 = vmul.f32 %v305_v24, %v1765_v44 }
  0x56   :  { %v268_v0 = vadd.f32 %v266_v31, %v257_v3  ;;  %v455_v1 = vadd.f32 %v453_v30, %v447_v38  ;;  %v292_v19 = vadd.f32 %v290_v58, %v284_v57  ;;  %v1893_v38 = vmul.f32 0.57735026, %v278_v63 }
  0x57   :  { %v312_v43 = vmul.f32 %v311_v27, %v1767_v45  ;;  %v307_v62 = vmul.f32 %v305_v24, %v1743_v34  ;;  %v503_v13 = vrot.slane %v1743_v34, %v1713_v15  ;;  %v509_v14 = vrot.slane %v1745_v35, %v1713_v15 }
  0x58   :  { %192 = vxpose.xlu1.b32.cont [7/16] %v1748_v36, 128  ;;  %160 = vxpose.xlu0.b32.cont [7/16] %v80_v37, 128  ;;  %v481_v36 = vrot.slane %v1743_v34, %v1707_v11  ;;  %v487_v37 = vrot.slane %v1745_v35, %v1707_v11  ;;  %v279_v33 = vadd.f32 %v277_v48, %v268_v0  ;;  %v1900_v57 = vmul.f32 0.57735026, %v455_v1 }
  0x59   :  { %v300_v46 = vadd.f32 %v298_v22, %v292_v19  ;;  %v319_v48 = vrot.slane %v1795_v56, %v1707_v11  ;;  %v301_v1 = vadd.f32 %v299_v42, %v293_v4  ;;  %v1918_v16 = vmul.f32 0.57735026, %v477_v39 }
  0x5a   :  { %v482_v30 = vmul.f32 %v481_v36, %v1765_v44  ;;  %v483_v3 = vmul.f32 %v481_v36, %v1743_v34  ;;  %v489_v31 = vmul.f32 %v487_v37, %v1745_v35  ;;  %v1902_v58 = vmul.f32 0.57735026, %v279_v33 }
  0x5b   :  { %v313_v36 = vmul.f32 %v311_v27, %v1745_v35  ;;  %v1916_v9 = vmul.f32 0.57735026, %v300_v46  ;;  %v314_v17 = vadd.f32 %v312_v43, %v306_v47  ;;  %v320_v18 = vmul.f32 %v319_v48, %v1795_v56 }
  0x5c   :  { %193 = vxpose.xlu1.b32.cont [8/16] %v1756_v40, 128  ;;  %161 = vxpose.xlu0.b32.cont [8/16] %v1759_v41, 128  ;;  %v488_v40 = vmul.f32 %v487_v37, %v1767_v45  ;;  %v495_v41 = vrot.slane %v1787_v53, %v1707_v11  ;;  %v491_v63 = vadd.f32 %v489_v31, %v483_v3  ;;  %v1910_v37 = vmul.f32 0.57735026, %v476_v32 }
  0x5d   :  { %v333_v22 = vrot.slane %v1767_v45, %v1713_v15  ;;  %v315_v27 = vadd.f32 %v313_v36, %v307_v62  ;;  %v525_v33 = vrot.slane %v1743_v34, %v1721_v20  ;;  %v510_v32 = vmul.f32 %v509_v14, %v1767_v45 }
  0x5e   :  { %v497_v0 = vmul.f32 %v495_v41, %v1787_v53  ;;  %v517_v3 = vrot.slane %v1787_v53, %v1713_v15  ;;  %v322_v31 = vadd.f32 %v320_v18, %v314_v17  ;;  %v341_v39 = vrot.slane %v1795_v56, %v1713_v15 }
  0x5f   :  { %v505_v4 = vmul.f32 %v503_v13, %v1743_v34  ;;  %v511_v42 = vmul.f32 %v509_v14, %v1745_v35  ;;  %v335_v47 = vmul.f32 %v333_v22, %v1745_v35 }
  0x60   :  { %194 = vxpose.xlu1.b32.cont [9/16] %v1776_v49, 128  ;;  %162 = vxpose.xlu0.b32.cont [9/16] %v1779_v50, 128  ;;  %v490_v49 = vadd.f32 %v488_v40, %v482_v30  ;;  %v496_v50 = vmul.f32 %v495_v41, %v1795_v56  ;;  %v499_v24 = vadd.f32 %v497_v0, %v491_v63  ;;  %v1932_v40 = vmul.f32 0.57735026, %v301_v1 }
  0x61   :  { %v531_v30 = vrot.slane %v1745_v35, %v1721_v20  ;;  %v504_v41 = vmul.f32 %v503_v13, %v1765_v44  ;;  %v518_v36 = vmul.f32 %v517_v3, %v1795_v56  ;;  %v1957_v1 = vmul.f32 0.57735026, %v322_v31 }
  0x62   :  { %v498_v19 = vadd.f32 %v496_v50, %v490_v49  ;;  %v539_v50 = vrot.slane %v1787_v53, %v1721_v20  ;;  %v1954_v63 = vmul.f32 0.57735026, %v499_v24  ;;  %v342_v13 = vmul.f32 %v341_v39, %v1795_v56 }
  0x63   :  { %v532_v49 = vmul.f32 %v531_v30, %v1767_v45  ;;  %v512_v62 = vadd.f32 %v510_v32, %v504_v41  ;;  %v513_v14 = vadd.f32 %v511_v42, %v505_v4  ;;  %v519_v17 = vmul.f32 %v517_v3, %v1787_v53 }
  0x64   :  { %195 = vxpose.xlu1.b32.cont [10/16] %v1782_v51, 128  ;;  %163 = vxpose.xlu0.b32.cont [10/16] %v1785_v52, 128  ;;  %v321_v51 = vmul.f32 %v319_v48, %v1787_v53  ;;  %v327_v52 = vrot.slane %v1765_v44, %v1713_v15  ;;  %v1946_v43 = vmul.f32 0.57735026, %v498_v19  ;;  %v526_v48 = vmul.f32 %v525_v33, %v1765_v44 }
  0x65   :  { %v363_v24 = vrot.slane %v1795_v56, %v1721_v20  ;;  %v520_v41 = vadd.f32 %v518_v36, %v512_v62  ;;  %v527_v32 = vmul.f32 %v525_v33, %v1743_v34  ;;  %v533_v3 = vmul.f32 %v531_v30, %v1745_v35 }
  0x66   :  { %v329_v46 = vmul.f32 %v327_v52, %v1743_v34  ;;  %v323_v0 = vadd.f32 %v321_v51, %v315_v27  ;;  %v540_v51 = vmul.f32 %v539_v50, %v1795_v56  ;;  %v521_v31 = vadd.f32 %v519_v17, %v513_v14 }
  0x67   :  { %v553_v4 = vrot.slane %v1745_v35, %v1727_v23  ;;  %v371_v42 = vrot.slane %v1765_v44, %v1727_v23  ;;  %v561_v14 = vrot.slane %v1787_v53, %v1727_v23 }
  0x68   :  { %196 = vxpose.xlu1.b32.cont [11/16] %v1790_v54, 128  ;;  %164 = vxpose.xlu0.b32.cont [11/16] %v1793_v55, 128  ;;  %v328_v54 = vmul.f32 %v327_v52, %v1765_v44  ;;  %v334_v55 = vmul.f32 %v333_v22, %v1767_v45  ;;  %v337_v19 = vadd.f32 %v335_v47, %v329_v46  ;;  %v1971_v27 = vmul.f32 0.57735026, %v323_v0 }
  0x69   :  { %v343_v52 = vmul.f32 %v341_v39, %v1787_v53  ;;  %v355_v22 = vrot.slane %v1767_v45, %v1721_v20  ;;  %v547_v39 = vrot.slane %v1743_v34, %v1727_v23  ;;  %v364_v46 = vmul.f32 %v363_v24, %v1795_v56 }
  0x6a   :  { %v336_v18 = vadd.f32 %v334_v55, %v328_v54  ;;  %v377_v55 = vrot.slane %v1767_v45, %v1727_v23  ;;  %v541_v47 = vmul.f32 %v539_v50, %v1787_v53  ;;  %v372_v50 = vmul.f32 %v371_v42, %v1765_v44 }
  0x6b   :  { %v345_v54 = vadd.f32 %v343_v52, %v337_v19  ;;  %v356_v30 = vmul.f32 %v355_v22, %v1767_v45  ;;  %v357_v62 = vmul.f32 %v355_v22, %v1745_v35  ;;  %v548_v36 = vmul.f32 %v547_v39, %v1765_v44 }
  0x6c   :  { %197 = vxpose.xlu1.b32.cont [12/16] %v1802_v59, 128  ;;  %165 = vxpose.xlu0.b32.cont [12/16] %v1805_v60, 128  ;;  %v349_v59 = vrot.slane %v1765_v44, %v1721_v20  ;;  %v534_v60 = vadd.f32 %v532_v49, %v526_v48  ;;  %v1989_v48 = vmul.f32 0.57735026, %v520_v41  ;;  %v535_v49 = vadd.f32 %v533_v3, %v527_v32 }
  0x6d   :  { %v549_v17 = vmul.f32 %v547_v39, %v1743_v34  ;;  %v373_v19 = vmul.f32 %v371_v42, %v1743_v34  ;;  %v379_v52 = vmul.f32 %v377_v55, %v1745_v35  ;;  %v365_v32 = vmul.f32 %v363_v24, %v1787_v53 }
  0x6e   :  { %v542_v33 = vadd.f32 %v540_v51, %v534_v60  ;;  %v351_v0 = vmul.f32 %v349_v59, %v1743_v34  ;;  %v575_v60 = vrot.slane %v1745_v35, %v1730_v25  ;;  %v2011_v51 = vmul.f32 0.57735026, %v521_v31 }
  0x6f   :  { %v543_v41 = vadd.f32 %v541_v47, %v535_v49  ;;  %v563_v42 = vmul.f32 %v561_v14, %v1787_v53  ;;  %v381_v15 = vadd.f32 %v379_v52, %v373_v19  ;;  %v583_v24 = vrot.slane %v1787_v53, %v1730_v25 }
  0x70   :  { %198 = vxpose.xlu1.b32.cont [13/16] %v1808_v61, 128  ;;  %166 = vxpose.xlu0.b32.cont [13/16] %v1817_v6, 128  ;;  %v344_v61 = vadd.f32 %v342_v13, %v336_v18  ;;  %v350_v6 = vmul.f32 %v349_v59, %v1765_v44  ;;  %v554_v13 = vmul.f32 %v553_v4, %v1767_v45 }
  0x71   :  { %v555_v18 = vmul.f32 %v553_v4, %v1745_v35  ;;  %v569_v59 = vrot.slane %v1743_v34, %v1730_v25  ;;  %v359_v3 = vadd.f32 %v357_v62, %v351_v0  ;;  %v562_v4 = vmul.f32 %v561_v14, %v1795_v56 }
  0x72   :  { %v358_v22 = vadd.f32 %v356_v30, %v350_v6  ;;  %v556_v39 = vadd.f32 %v554_v13, %v548_v36  ;;  %v576_v31 = vmul.f32 %v575_v60, %v1767_v45  ;;  %v2024_v6 = vmul.f32 0.57735026, %v344_v61 }
  0x73   :  { %v557_v20 = vadd.f32 %v555_v18, %v549_v17  ;;  %v2026_v30 = vmul.f32 0.57735026, %v345_v54  ;;  %v393_v49 = vrot.slane %v1765_v44, %v1730_v25  ;;  %v2030_v0 = vmul.f32 0.57735026, %v542_v33 }
  0x74   :  { %199 = vxpose.xlu1.b32.cont [14/16] %v1820_v7, 128  ;;  %167 = vxpose.xlu0.b32.cont [14/16] %v1823_v8, 128  ;;  %v378_v7 = vmul.f32 %v377_v55, %v1767_v45  ;;  %v385_v8 = vrot.slane %v1795_v56, %v1727_v23  ;;  %v366_v47 = vadd.f32 %v364_v46, %v358_v22 }
  0x75   :  { %v399_v62 = vrot.slane %v1767_v45, %v1730_v25  ;;  %v571_v36 = vmul.f32 %v569_v59, %v1743_v34  ;;  %v577_v13 = vmul.f32 %v575_v60, %v1745_v35  ;;  %v564_v61 = vadd.f32 %v562_v4, %v556_v39  ;;  %v2066_v39 = vld [vmem:[#allocation7 + $0x18] sm:$0xff] }
  0x76   :  { %v380_v55 = vadd.f32 %v378_v7, %v372_v50  ;;  %v386_v23 = vmul.f32 %v385_v8, %v1795_v56  ;;  %v565_v14 = vadd.f32 %v563_v42, %v557_v20  ;;  %v584_v7 = vmul.f32 %v583_v24, %v1795_v56 }
  0x77   :  { %v2041_v33 = vmul.f32 0.57735026, %v366_v47  ;;  %v407_v17 = vrot.slane %v1795_v56, %v1730_v25  ;;  %v585_v18 = vmul.f32 %v583_v24, %v1787_v53  ;;  %v400_v20 = vmul.f32 %v399_v62, %v1767_v45 }
  0x78   :  { %200 = vxpose.xlu1.b32.cont [15/16] %v1828_v10, 128  ;;  %168 = vxpose.xlu0.b32.cont [15/16] %v1842_v21, 128  ;;  %v387_v10 = vmul.f32 %v385_v8, %v1787_v53  ;;  %v570_v21 = vmul.f32 %v569_v59, %v1765_v44  ;;  %v388_v54 = vadd.f32 %v386_v23, %v380_v55  ;;  %v2060_v22 = vmul.f32 0.57735026, %v565_v14 }
  0x79   :  { %v394_v8 = vmul.f32 %v393_v49, %v1765_v44  ;;  %v579_v23 = vadd.f32 %v577_v13, %v571_v36  ;;  %v401_v19 = vmul.f32 %v399_v62, %v1745_v35  ;;  %v597_v59 = vrot.slane %v1745_v35, %v1735_v29 }
  0x7a   :  { %v389_v50 = vadd.f32 %v387_v10, %v381_v15  ;;  %v578_v46 = vadd.f32 %v576_v31, %v570_v21  ;;  %v395_v15 = vmul.f32 %v393_v49, %v1743_v34  ;;  %v2058_v60 = vmul.f32 0.57735026, %v388_v54  ;;  %v2091_v54 = vld [vmem:[#allocation7] sm:$0xff] }
  0x7b   :  { %v408_v42 = vmul.f32 %v407_v17, %v1795_v56  ;;  %v409_v55 = vmul.f32 %v407_v17, %v1787_v53  ;;  %v421_v10 = vrot.slane %v1767_v45, %v1735_v29  ;;  %v402_v21 = vadd.f32 %v400_v20, %v394_v8  ;;  %v2100_v8 = vld [vmem:[#allocation7 + $0x10] sm:$0xff] }
  0x7c   :  { %201 = vxpose.xlu1.b32.end [16/16] %v1831_v12, 128  ;;  %169 = vxpose.xlu0.b32.end [16/16] %v1846_v26, 128  ;;  %v2036_v12 = vmul.f32 0.57735026, %v543_v41  ;;  %v367_v26 = vadd.f32 %v365_v32, %v359_v3  ;;  %v586_v41 = vadd.f32 %v584_v7, %v578_v46  ;;  %v415_v32 = vrot.slane %v1765_v44, %v1735_v29  ;;  %v2064_v3 = vld [vmem:[#allocation7 + $0x8] sm:$0xff] }
  0x7d   :  { %v2070_v4 = vmul.f32 0.57735026, %v389_v50  ;;  %v587_v31 = vadd.f32 %v585_v18, %v579_v23  ;;  %v403_v24 = vadd.f32 %v401_v19, %v395_v15  ;;  %v605_v47 = vrot.slane %v1787_v53, %v1735_v29  ;;  %v2107_v19 = vld [vmem:[#allocation7 + $0x38] sm:$0xff] }
  0x7e   :  { %v2050_v52 = vmul.f32 0.57735026, %v367_v26  ;;  %v1059_v62 = vrot.slane %v2064_v3, %v1691_v2  ;;  %v1065_v36 = vrot.slane %v2066_v39, %v1691_v2  ;;  %v416_v13 = vmul.f32 %v415_v32, %v1765_v44 }
  0x7f   :  { %v429_v26 = vrot.slane %v1795_v56, %v1735_v29  ;;  %v599_v14 = vmul.f32 %v597_v59, %v1745_v35  ;;  %v2095_v50 = vmul.f32 0.57735026, %v586_v41  ;;  %v422_v46 = vmul.f32 %v421_v10, %v1767_v45  ;;  %v2115_v41 = vld [vmem:[#allocation7 + $0x48] sm:$0xff] }
  0x80   :  { %674 = vxpose.xlu1.b32.start [1/16] %v1887_v28, 128  ;;  %642 = vxpose.xlu0.b32.start [1/16] %v1893_v38, 128  ;;  %v2052_v28 = vmul.f32 0.57735026, %v564_v61  ;;  %v591_v38 = vrot.slane %v1743_v34, %v1735_v29  ;;  %v417_v7 = vmul.f32 %v415_v32, %v1743_v34  ;;  %v410_v17 = vadd.f32 %v408_v42, %v402_v21 }
  0x81   :  { %v1060_v18 = vmul.f32 %v1059_v62, %v2091_v54  ;;  %v1066_v20 = vmul.f32 %v1065_v36, %v2100_v8  ;;  %v411_v23 = vadd.f32 %v409_v55, %v403_v24  ;;  %v606_v15 = vmul.f32 %v605_v47, %v1795_v56  ;;  %v2126_v24 = vld [vmem:[#allocation7 + $0x30] sm:$0xff] }
  0x82   :  { %v592_v49 = vmul.f32 %v591_v38, %v1765_v44  ;;  %v593_v61 = vmul.f32 %v591_v38, %v1743_v34  ;;  %v423_v44 = vmul.f32 %v421_v10, %v1745_v35  ;;  %v743_v34 = vrot.slane %v2091_v54, %v1691_v2 }
  0x83   :  { %v430_v35 = vmul.f32 %v429_v26, %v1795_v56  ;;  %v607_v38 = vmul.f32 %v605_v47, %v1787_v53  ;;  %v752_v32 = vrot.slane %v2100_v8, %v1691_v2  ;;  %v2121_v42 = vmul.f32 0.57735026, %v587_v31 }
  0x84   :  { %675 = vxpose.xlu1.b32.cont [2/16] %v1900_v57, 128  ;;  %643 = vxpose.xlu0.b32.cont [2/16] %v1902_v58, 128  ;;  %v598_v57 = vmul.f32 %v597_v59, %v1767_v45  ;;  %v2080_v58 = vld [vmem:[#allocation7 + $0x28] sm:$0xff]  ;;  %v601_v45 = vadd.f32 %v599_v14, %v593_v61  ;;  %v2113_v59 = vld [vmem:[#allocation7 + $0x20] sm:$0xff]  ;;  %v424_v55 = vadd.f32 %v422_v46, %v416_v13  ;;  %v2124_v21 = vmul.f32 0.57735026, %v410_v17 }
  0x85   :  { %v425_v10 = vadd.f32 %v423_v44, %v417_v7  ;;  %v431_v56 = vmul.f32 %v429_v26, %v1787_v53  ;;  %v1068_v47 = vadd.f32 %v1066_v20, %v1060_v18  ;;  %v753_v31 = vmul.f32 %v752_v32, %v2100_v8  ;;  %v2145_v18 = vld [vmem:[#allocation7 + $0x40] sm:$0xff] }
  0x86   :  { %v763_v53 = vrot.slane %v2113_v59, %v1691_v2  ;;  %v609_v26 = vadd.f32 %v607_v38, %v601_v45  ;;  %v1061_v61 = vmul.f32 %v1059_v62, %v2064_v3  ;;  %v1067_v14 = vmul.f32 %v1065_v36, %v2066_v39 }
  0x87   :  { %v2141_v46 = vmul.f32 0.57735026, %v411_v23  ;;  %v432_v7 = vadd.f32 %v430_v35, %v424_v55  ;;  %v433_v44 = vadd.f32 %v431_v56, %v425_v10  ;;  %v774_v17 = vrot.slane %v2126_v24, %v1691_v2 }
  0x88   :  { %676 = vxpose.xlu1.b32.cont [3/16] %v1910_v37, 128  ;;  %644 = vxpose.xlu0.b32.cont [3/16] %v1916_v9, 128  ;;  %v1073_v37 = vrot.slane %v2080_v58, %v1691_v2  ;;  %v600_v9 = vadd.f32 %v598_v57, %v592_v49  ;;  %v1081_v57 = vrot.slane %v2107_v19, %v1691_v2 }
  0x89   :  { %v745_v62 = vmul.f32 %v743_v34, %v2064_v3  ;;  %v754_v36 = vmul.f32 %v752_v32, %v2066_v39  ;;  %v1097_v23 = vrot.slane %v2064_v3, %v1697_v5  ;;  %v1069_v35 = vadd.f32 %v1067_v14, %v1061_v61 }
  0x8a   :  { %v1074_v49 = vmul.f32 %v1073_v37, %v2113_v59  ;;  %v608_v13 = vadd.f32 %v606_v15, %v600_v9  ;;  %v1082_v9 = vmul.f32 %v1081_v57, %v2126_v24  ;;  %v1075_v45 = vmul.f32 %v1073_v37, %v2080_v58 }
  0x8b   :  { %v1103_v38 = vrot.slane %v2066_v39, %v1697_v5  ;;  %v1111_v55 = vrot.slane %v2080_v58, %v1697_v5  ;;  %v775_v32 = vmul.f32 %v774_v17, %v2126_v24  ;;  %v785_v10 = vrot.slane %v2145_v18, %v1691_v2 }
  0x8c   :  { %677 = vxpose.xlu1.b32.cont [4/16] %v1918_v16, 128  ;;  %645 = vxpose.xlu0.b32.cont [4/16] %v1932_v40, 128  ;;  %v1089_v16 = vrot.slane %v2115_v41, %v1691_v2  ;;  %v744_v40 = vmul.f32 %v743_v34, %v2091_v54  ;;  %v1076_v20 = vadd.f32 %v1074_v49, %v1068_v47  ;;  %v2161_v34 = vmul.f32 0.57735026, %v608_v13 }
  0x8d   :  { %v1098_v56 = vmul.f32 %v1097_v23, %v2091_v54  ;;  %v756_v47 = vadd.f32 %v754_v36, %v745_v62  ;;  %v765_v49 = vmul.f32 %v763_v53, %v2080_v58  ;;  %v793_v13 = vrot.slane %v2091_v54, %v1697_v5 }
  0x8e   :  { %v755_v15 = vadd.f32 %v753_v31, %v744_v40  ;;  %v1084_v37 = vadd.f32 %v1082_v9, %v1076_v20  ;;  %v1104_v40 = vmul.f32 %v1103_v38, %v2100_v8  ;;  %v1077_v61 = vadd.f32 %v1075_v45, %v1069_v35 }
  0x8f   :  { %v1083_v2 = vmul.f32 %v1081_v57, %v2107_v19  ;;  %v799_v20 = vrot.slane %v2100_v8, %v1697_v5  ;;  %v786_v9 = vmul.f32 %v785_v10, %v2145_v18  ;;  %v794_v62 = vmul.f32 %v793_v13, %v2091_v54 }
  0x90   :  { %678 = vxpose.xlu1.b32.cont [5/16] %v1946_v43, 128  ;;  %646 = vxpose.xlu0.b32.cont [5/16] %v1957_v1, 128  ;;  %v1090_v43 = vmul.f32 %v1089_v16, %v2145_v18  ;;  %v764_v1 = vmul.f32 %v763_v53, %v2113_v59  ;;  %v1106_v14 = vadd.f32 %v1104_v40, %v1098_v56  ;;  %v2179_v53 = vmul.f32 0.57735026, %v609_v26 }
  0x91   :  { %v807_v36 = vrot.slane %v2113_v59, %v1697_v5  ;;  %v776_v57 = vmul.f32 %v774_v17, %v2107_v19  ;;  %v800_v35 = vmul.f32 %v799_v20, %v2100_v8  ;;  %v1085_v56 = vadd.f32 %v1083_v2, %v1077_v61 }
  0x92   :  { %v766_v31 = vadd.f32 %v764_v1, %v755_v15  ;;  %v767_v15 = vadd.f32 %v765_v49, %v756_v47  ;;  %v1127_v1 = vrot.slane %v2115_v41, %v1697_v5  ;;  %v815_v40 = vrot.slane %v2126_v24, %v1697_v5 }
  0x93   :  { %v1099_v29 = vmul.f32 %v1097_v23, %v2064_v3  ;;  %v1105_v47 = vmul.f32 %v1103_v38, %v2066_v39  ;;  %v2197_v17 = vmul.f32 0.57735026, %v432_v7  ;;  %v802_v49 = vadd.f32 %v800_v35, %v794_v62 }
  0x94   :  { %679 = vxpose.xlu1.b32.cont [6/16] %v1954_v63, 128  ;;  %647 = vxpose.xlu0.b32.cont [6/16] %v1971_v27, 128  ;;  %v1112_v63 = vmul.f32 %v1111_v55, %v2113_v59  ;;  %v1119_v27 = vrot.slane %v2107_v19, %v1697_v5  ;;  %v787_v61 = vmul.f32 %v785_v10, %v2115_v41 }
  0x95   :  { %v1128_v2 = vmul.f32 %v1127_v1, %v2145_v18  ;;  %v823_v38 = vrot.slane %v2145_v18, %v1697_v5  ;;  %v1113_v62 = vmul.f32 %v1111_v55, %v2080_v58  ;;  %v1135_v5 = vrot.slane %v2064_v3, %v1707_v11 }
  0x96   :  { %v1114_v26 = vadd.f32 %v1112_v63, %v1106_v14  ;;  %v1120_v45 = vmul.f32 %v1119_v27, %v2126_v24  ;;  %v778_v63 = vadd.f32 %v776_v57, %v767_v15  ;;  %v1107_v14 = vadd.f32 %v1105_v47, %v1099_v29 }
  0x97   :  { %v1149_v29 = vrot.slane %v2080_v58, %v1707_v11  ;;  %v1136_v57 = vmul.f32 %v1135_v5, %v2091_v54  ;;  %v1121_v55 = vmul.f32 %v1119_v27, %v2107_v19  ;;  %v817_v27 = vmul.f32 %v815_v40, %v2107_v19 }
  0x98   :  { %680 = vxpose.xlu1.b32.cont [7/16] %v1989_v48, 128  ;;  %648 = vxpose.xlu0.b32.cont [7/16] %v2024_v6, 128  ;;  %v777_v48 = vadd.f32 %v775_v32, %v766_v31  ;;  %v1091_v6 = vmul.f32 %v1089_v16, %v2115_v41  ;;  %v1092_v32 = vadd.f32 %v1090_v43, %v1084_v37  ;;  %v2200_v31 = vmul.f32 0.57735026, %v433_v44 }
  0x99   :  { %v808_v16 = vmul.f32 %v807_v36, %v2113_v59  ;;  %v1122_v23 = vadd.f32 %v1120_v45, %v1114_v26  ;;  %v816_v37 = vmul.f32 %v815_v40, %v2126_v24  ;;  %v1115_v45 = vadd.f32 %v1113_v62, %v1107_v14 }
  0x9a   :  { %v788_v7 = vadd.f32 %v786_v9, %v777_v48  ;;  %v1093_v43 = vadd.f32 %v1091_v6, %v1085_v56  ;;  %v2211_v44 = vmul.f32 0.4472136, %v1092_v32  ;;  %v1141_v9 = vrot.slane %v2066_v39, %v1707_v11 }
  0x9b   :  { %v810_v10 = vadd.f32 %v808_v16, %v802_v49  ;;  %v1130_v15 = vadd.f32 %v1128_v2, %v1122_v23  ;;  %v1150_v48 = vmul.f32 %v1149_v29, %v2113_v59  ;;  %v831_v56 = vrot.slane %v2091_v54, %v1707_v11 }
  0x9c   :  { %681 = vxpose.xlu1.b32.cont [8/16] %v2011_v51, 128  ;;  %649 = vxpose.xlu0.b32.cont [8/16] %v2026_v30, 128  ;;  %v795_v51 = vmul.f32 %v793_v13, %v2064_v3  ;;  %v801_v30 = vmul.f32 %v799_v20, %v2066_v39  ;;  %v809_v20 = vmul.f32 %v807_v36, %v2080_v58  ;;  %v2230_v6 = vmul.f32 0.4472136, %v788_v7 }
  0x9d   :  { %v1142_v35 = vmul.f32 %v1141_v9, %v2100_v8  ;;  %v1157_v36 = vrot.slane %v2107_v19, %v1707_v11  ;;  %v818_v26 = vadd.f32 %v816_v37, %v810_v10  ;;  %v837_v49 = vrot.slane %v2100_v8, %v1707_v11 }
  0x9e   :  { %v803_v13 = vadd.f32 %v801_v30, %v795_v51  ;;  %v1129_v16 = vmul.f32 %v1127_v1, %v2115_v41  ;;  %v1137_v40 = vmul.f32 %v1135_v5, %v2064_v3  ;;  %v2248_v1 = vmul.f32 0.4472136, %v1093_v43 }
  0x9f   :  { %v1144_v32 = vadd.f32 %v1142_v35, %v1136_v57  ;;  %v1158_v2 = vmul.f32 %v1157_v36, %v2126_v24  ;;  %v838_v23 = vmul.f32 %v837_v49, %v2100_v8  ;;  %v1123_v51 = vadd.f32 %v1121_v55, %v1115_v45  ;;  %v2550_v55 = vld [vmem:[#allocation12_spill] sm:$0xff] }
  0xa0   :  { %682 = vxpose.xlu1.b32.cont [9/16] %v2030_v0, 128  ;;  %650 = vxpose.xlu0.b32.cont [9/16] %v2041_v33, 128  ;;  %v789_v0 = vadd.f32 %v787_v61, %v778_v63  ;;  %v824_v33 = vmul.f32 %v823_v38, %v2145_v18  ;;  %v811_v47 = vadd.f32 %v809_v20, %v803_v13 }
  0xa1   :  { %v845_v63 = vrot.slane %v2113_v59, %v1707_v11  ;;  %v1152_v61 = vadd.f32 %v1150_v48, %v1144_v32  ;;  %v825_v30 = vmul.f32 %v823_v38, %v2115_v41  ;;  %v1143_v7 = vmul.f32 %v1141_v9, %v2066_v39 }
  0xa2   :  { %v826_v37 = vadd.f32 %v824_v33, %v818_v26  ;;  %v819_v14 = vadd.f32 %v817_v27, %v811_v47  ;;  %v853_v10 = vrot.slane %v2126_v24, %v1707_v11  ;;  %v861_v62 = vrot.slane %v2145_v18, %v1707_v11 }
  0xa3   :  { %v839_v43 = vmul.f32 %v837_v49, %v2066_v39  ;;  %v1160_v13 = vadd.f32 %v1158_v2, %v1152_v61  ;;  %v1145_v20 = vadd.f32 %v1143_v7, %v1137_v40  ;;  %v1151_v9 = vmul.f32 %v1149_v29, %v2080_v58 }
  0xa4   :  { %683 = vxpose.xlu1.b32.cont [10/16] %v2036_v12, 128  ;;  %651 = vxpose.xlu0.b32.cont [10/16] %v2050_v52, 128  ;;  %v1165_v12 = vrot.slane %v2115_v41, %v1707_v11  ;;  %v832_v52 = vmul.f32 %v831_v56, %v2091_v54  ;;  %v2263_v33 = vmul.f32 0.4472136, %v789_v0  ;;  %v847_v57 = vmul.f32 %v845_v63, %v2080_v58 }
  0xa5   :  { %v1173_v35 = vrot.slane %v2064_v3, %v2550_v55  ;;  %v1131_v48 = vadd.f32 %v1129_v16, %v1123_v51  ;;  %v827_v26 = vadd.f32 %v825_v30, %v819_v14  ;;  %v1179_v45 = vrot.slane %v2066_v39, %v2550_v55 }
  0xa6   :  { %v840_v5 = vadd.f32 %v838_v23, %v832_v52  ;;  %v1166_v38 = vmul.f32 %v1165_v12, %v2145_v18  ;;  %v1187_v29 = vrot.slane %v2080_v58, %v2550_v55  ;;  %v1153_v47 = vadd.f32 %v1151_v9, %v1145_v20 }
  0xa7   :  { %v1174_v0 = vmul.f32 %v1173_v35, %v2091_v54  ;;  %v1159_v27 = vmul.f32 %v1157_v36, %v2107_v19  ;;  %v1167_v32 = vmul.f32 %v1165_v12, %v2115_v41  ;;  %v1180_v49 = vmul.f32 %v1179_v45, %v2100_v8 }
  0xa8   :  { %684 = vxpose.xlu1.b32.cont [11/16] %v2052_v28, 128  ;;  %652 = vxpose.xlu0.b32.cont [11/16] %v2058_v60, 128  ;;  %v846_v28 = vmul.f32 %v845_v63, %v2113_v59  ;;  %v833_v60 = vmul.f32 %v831_v56, %v2064_v3  ;;  %v2280_v16 = vmul.f32 0.4472136, %v1130_v15  ;;  %v1168_v52 = vadd.f32 %v1166_v38, %v1160_v13 }
  0xa9   :  { %v855_v61 = vmul.f32 %v853_v10, %v2107_v19  ;;  %v1182_v2 = vadd.f32 %v1180_v49, %v1174_v0  ;;  %v1188_v23 = vmul.f32 %v1187_v29, %v2113_v59  ;;  %v1195_v36 = vrot.slane %v2107_v19, %v2550_v55 }
  0xaa   :  { %v841_v11 = vadd.f32 %v839_v43, %v833_v60  ;;  %v848_v56 = vadd.f32 %v846_v28, %v840_v5  ;;  %v869_v12 = vrot.slane %v2091_v54, %v2550_v55  ;;  %v883_v15 = vrot.slane %v2113_v59, %v2550_v55 }
  0xab   :  { %v1161_v51 = vadd.f32 %v1159_v27, %v1153_v47  ;;  %v1203_v30 = vrot.slane %v2115_v41, %v2550_v55  ;;  %v891_v14 = vrot.slane %v2126_v24, %v2550_v55  ;;  %v1175_v28 = vmul.f32 %v1173_v35, %v2064_v3  ;;  %v2551_v27 = vld [vmem:[#allocation13_spill] sm:$0xff] }
  0xac   :  { %685 = vxpose.xlu1.b32.cont [12/16] %v2060_v22, 128  ;;  %653 = vxpose.xlu0.b32.cont [12/16] %v2070_v4, 128  ;;  %v854_v22 = vmul.f32 %v853_v10, %v2126_v24  ;;  %v862_v4 = vmul.f32 %v861_v62, %v2145_v18  ;;  %v849_v63 = vadd.f32 %v847_v57, %v841_v11  ;;  %v2300_v10 = vmul.f32 0.4472136, %v826_v37 }
  0xad   :  { %v870_v7 = vmul.f32 %v869_v12, %v2091_v54  ;;  %v884_v5 = vmul.f32 %v883_v15, %v2113_v59  ;;  %v1190_v43 = vadd.f32 %v1188_v23, %v1182_v2  ;;  %v1196_v13 = vmul.f32 %v1195_v36, %v2126_v24 }
  0xae   :  { %v856_v40 = vadd.f32 %v854_v22, %v848_v56  ;;  %v857_v60 = vadd.f32 %v855_v61, %v849_v63  ;;  %v1181_v38 = vmul.f32 %v1179_v45, %v2066_v39  ;;  %v2307_v20 = vmul.f32 0.4472136, %v1131_v48 }
  0xaf   :  { %v2309_v9 = vmul.f32 0.4472136, %v827_v26  ;;  %v1189_v11 = vmul.f32 %v1187_v29, %v2080_v58  ;;  %v871_v57 = vmul.f32 %v869_v12, %v2064_v3  ;;  %v2318_v45 = vmul.f32 0.4472136, %v1168_v52 }
  0xb0   :  { %686 = vxpose.xlu1.b32.cont [13/16] %v2095_v50, 128  ;;  %654 = vxpose.xlu0.b32.cont [13/16] %v2124_v21, 128  ;;  %v863_v50 = vmul.f32 %v861_v62, %v2115_v41  ;;  %v875_v21 = vrot.slane %v2100_v8, %v2550_v55  ;;  %v1183_v37 = vadd.f32 %v1181_v38, %v1175_v28 }
  0xb1   :  { %v864_v48 = vadd.f32 %v862_v4, %v856_v40  ;;  %v892_v56 = vmul.f32 %v891_v14, %v2126_v24  ;;  %v1169_v22 = vadd.f32 %v1167_v32, %v1161_v51  ;;  %v1204_v47 = vmul.f32 %v1203_v30, %v2145_v18 }
  0xb2   :  { %v876_v62 = vmul.f32 %v875_v21, %v2100_v8  ;;  %v877_v35 = vmul.f32 %v875_v21, %v2066_v39  ;;  %v865_v0 = vadd.f32 %v863_v50, %v857_v60  ;;  %v1211_v49 = vrot.slane %v2064_v3, %v2551_v27 }
  0xb3   :  { %v1191_v4 = vadd.f32 %v1189_v11, %v1183_v37  ;;  %v1197_v52 = vmul.f32 %v1195_v36, %v2107_v19  ;;  %v885_v32 = vmul.f32 %v883_v15, %v2080_v58  ;;  %v2333_v61 = vmul.f32 0.4472136, %v864_v48 }
  0xb4   :  { %687 = vxpose.xlu1.b32.cont [14/16] %v2121_v42, 128  ;;  %655 = vxpose.xlu0.b32.cont [14/16] %v2141_v46, 128  ;;  %v878_v42 = vadd.f32 %v876_v62, %v870_v7  ;;  %v899_v46 = vrot.slane %v2145_v18, %v2550_v55  ;;  %v1198_v55 = vadd.f32 %v1196_v13, %v1190_v43  ;;  %v2337_v40 = vmul.f32 0.4472136, %v1169_v22 }
  0xb5   :  { %v879_v63 = vadd.f32 %v877_v35, %v871_v57  ;;  %v1212_v23 = vmul.f32 %v1211_v49, %v2091_v54  ;;  %v1233_v36 = vrot.slane %v2107_v19, %v2551_v27  ;;  %v1205_v15 = vmul.f32 %v1203_v30, %v2115_v41 }
  0xb6   :  { %v886_v26 = vadd.f32 %v884_v5, %v878_v42  ;;  %v900_v29 = vmul.f32 %v899_v46, %v2145_v18  ;;  %v1206_v50 = vadd.f32 %v1204_v47, %v1198_v55  ;;  %v907_v51 = vrot.slane %v2091_v54, %v2551_v27 }
  0xb7   :  { %v1199_v7 = vadd.f32 %v1197_v52, %v1191_v4  ;;  %v887_v62 = vadd.f32 %v885_v32, %v879_v63  ;;  %v913_v5 = vrot.slane %v2100_v8, %v2551_v27  ;;  %v921_v28 = vrot.slane %v2113_v59, %v2551_v27 }
  0xb8   :  { %688 = vxpose.xlu1.b32.cont [15/16] %v2161_v34, 128  ;;  %656 = vxpose.xlu0.b32.cont [15/16] %v2197_v17, 128  ;;  %v1217_v34 = vrot.slane %v2066_v39, %v2551_v27  ;;  %v1225_v17 = vrot.slane %v2080_v58, %v2551_v27  ;;  %v894_v2 = vadd.f32 %v892_v56, %v886_v26  ;;  %v2352_v43 = vmul.f32 0.4472136, %v865_v0 }
  0xb9   :  { %v1241_v13 = vrot.slane %v2115_v41, %v2551_v27  ;;  %v908_v38 = vmul.f32 %v907_v51, %v2091_v54  ;;  %v2357_v42 = vmul.f32 0.4472136, %v1206_v50  ;;  %v1234_v11 = vmul.f32 %v1233_v36, %v2126_v24  ;;  %v2552_v50 = vld [vmem:[#allocation14_spill] sm:$0xff] }
  0xba   :  { %v1218_v12 = vmul.f32 %v1217_v34, %v2100_v8  ;;  %v1226_v21 = vmul.f32 %v1225_v17, %v2113_v59  ;;  %v929_v57 = vrot.slane %v2126_v24, %v2551_v27  ;;  %v1213_v35 = vmul.f32 %v1211_v49, %v2064_v3 }
  0xbb   :  { %v1219_v48 = vmul.f32 %v1217_v34, %v2066_v39  ;;  %v1207_v26 = vadd.f32 %v1205_v15, %v1199_v7  ;;  %v901_v56 = vmul.f32 %v899_v46, %v2115_v41  ;;  %v1227_v0 = vmul.f32 %v1225_v17, %v2080_v58 }
  0xbc   :  { %689 = vxpose.xlu1.b32.end [16/16] %v2179_v53, 128  ;;  %657 = vxpose.xlu0.b32.end [16/16] %v2200_v31, 128  ;;  %v893_v53 = vmul.f32 %v891_v14, %v2107_v19  ;;  %v1220_v31 = vadd.f32 %v1218_v12, %v1212_v23  ;;  %v902_v14 = vadd.f32 %v900_v29, %v894_v2 }
  0xbd   :  { %v1242_v52 = vmul.f32 %v1241_v13, %v2145_v18  ;;  %v1221_v49 = vadd.f32 %v1219_v48, %v1213_v35  ;;  %v937_v46 = vrot.slane %v2145_v18, %v2551_v27  ;;  %v909_v17 = vmul.f32 %v907_v51, %v2064_v3 }
  0xbe   :  { %v1228_v37 = vadd.f32 %v1226_v21, %v1220_v31  ;;  %v2370_v29 = vmul.f32 0.4472136, %v902_v14  ;;  %v895_v4 = vadd.f32 %v893_v53, %v887_v62  ;;  %v1235_v32 = vmul.f32 %v1233_v36, %v2107_v19 }
  0xbf   :  { %v923_v2 = vmul.f32 %v921_v28, %v2080_v58  ;;  %v1229_v23 = vadd.f32 %v1227_v0, %v1221_v49  ;;  %v1249_v21 = vrot.slane %v2064_v3, %v2552_v50  ;;  %v1255_v15 = vrot.slane %v2066_v39, %v2552_v50 }
  0xc0   :  { %1424 = vxpose.xlu1.b32.start [1/16] %v2211_v44, 128  ;;  %v202_v60 = vpop.trf.xlu1  ;;  %1392 = vxpose.xlu0.b32.start [1/16] %v2230_v6, 128  ;;  %v170_v30 = vpop.trf.xlu0  ;;  %v914_v44 = vmul.f32 %v913_v5, %v2100_v8  ;;  %v922_v6 = vmul.f32 %v921_v28, %v2113_v59  ;;  %v1236_v34 = vadd.f32 %v1234_v11, %v1228_v37  ;;  %v2386_v31 = vmul.f32 0.4472136, %v1207_v26 }
  0xc1   :  { %219 = vst [vmem:[#allocation8 + $0x8] sm:$0xff] %v202_v60  ;;  %218 = vst [vmem:[#allocation8] sm:$0xff] %v170_v30  ;;  %v903_v51 = vadd.f32 %v901_v56, %v895_v4  ;;  %v1263_v36 = vrot.slane %v2080_v58, %v2552_v50  ;;  %v1271_v7 = vrot.slane %v2107_v19, %v2552_v50 }
  0xc2   :  { %v916_v22 = vadd.f32 %v914_v44, %v908_v38  ;;  %v1244_v62 = vadd.f32 %v1242_v52, %v1236_v34  ;;  %v1256_v28 = vmul.f32 %v1255_v15, %v2100_v8  ;;  %v1243_v60 = vmul.f32 %v1241_v13, %v2115_v41 }
  0xc3   :  { %v931_v30 = vmul.f32 %v929_v57, %v2107_v19  ;;  %v1264_v14 = vmul.f32 %v1263_v36, %v2113_v59  ;;  %v1237_v38 = vadd.f32 %v1235_v32, %v1229_v23  ;;  %v945_v44 = vrot.slane %v2091_v54, %v2552_v50 }
  0xc4   :  { %1425 = vxpose.xlu1.b32.cont [2/16] %v2248_v1, 128  ;;  %v203_v55 = vpop.trf.xlu1  ;;  %1393 = vxpose.xlu0.b32.cont [2/16] %v2263_v33, 128  ;;  %v171_v47 = vpop.trf.xlu0  ;;  %v915_v1 = vmul.f32 %v913_v5, %v2066_v39  ;;  %v924_v63 = vadd.f32 %v922_v6, %v916_v22  ;;  %v930_v33 = vmul.f32 %v929_v57, %v2126_v24  ;;  %v2402_v48 = vmul.f32 0.4472136, %v903_v51 }
  0xc5   :  { %221 = vst [vmem:[#allocation8 + $0x38] sm:$0xff] %v203_v55  ;;  %220 = vst [vmem:[#allocation8 + $0x30] sm:$0xff] %v171_v47  ;;  %v938_v5 = vmul.f32 %v937_v46, %v2145_v18  ;;  %v1272_v13 = vmul.f32 %v1271_v7, %v2126_v24  ;;  %v951_v57 = vrot.slane %v2100_v8, %v2552_v50 }
  0xc6   :  { %v917_v12 = vadd.f32 %v915_v1, %v909_v17  ;;  %v959_v26 = vrot.slane %v2113_v59, %v2552_v50  ;;  %v946_v22 = vmul.f32 %v945_v44, %v2091_v54  ;;  %v939_v0 = vmul.f32 %v937_v46, %v2115_v41 }
  0xc7   :  { %v952_v55 = vmul.f32 %v951_v57, %v2100_v8  ;;  %v1251_v4 = vmul.f32 %v1249_v21, %v2064_v3  ;;  %v975_v34 = vrot.slane %v2145_v18, %v2552_v50  ;;  %v1257_v17 = vmul.f32 %v1255_v15, %v2066_v39 }
  0xc8   :  { %1426 = vxpose.xlu1.b32.cont [3/16] %v2280_v16, 128  ;;  %v204_v27 = vpop.trf.xlu1  ;;  %1394 = vxpose.xlu0.b32.cont [3/16] %v2300_v10, 128  ;;  %v172_v53 = vpop.trf.xlu0  ;;  %v1250_v16 = vmul.f32 %v1249_v21, %v2091_v54  ;;  %v932_v10 = vadd.f32 %v930_v33, %v924_v63  ;;  %v925_v37 = vadd.f32 %v923_v2, %v917_v12  ;;  %v2423_v46 = vmul.f32 0.4472136, %v1244_v62 }
  0xc9   :  { %223 = vst [vmem:[#allocation8 + $0x68] sm:$0xff] %v204_v27  ;;  %222 = vst [vmem:[#allocation8 + $0x60] sm:$0xff] %v172_v53  ;;  %v960_v47 = vmul.f32 %v959_v26, %v2113_v59  ;;  %v954_v33 = vadd.f32 %v952_v55, %v946_v22  ;;  %v1265_v2 = vmul.f32 %v1263_v36, %v2080_v58 }
  0xca   :  { %v1258_v11 = vadd.f32 %v1256_v28, %v1250_v16  ;;  %v940_v52 = vadd.f32 %v938_v5, %v932_v10  ;;  %v933_v49 = vadd.f32 %v931_v30, %v925_v37  ;;  %v1245_v23 = vadd.f32 %v1243_v60, %v1237_v38 }
  0xcb   :  { %v1259_v21 = vadd.f32 %v1257_v17, %v1251_v4  ;;  %v962_v15 = vadd.f32 %v960_v47, %v954_v33  ;;  %v961_v27 = vmul.f32 %v959_v26, %v2080_v58  ;;  %v976_v51 = vmul.f32 %v975_v34, %v2145_v18 }
  0xcc   :  { %1427 = vxpose.xlu1.b32.cont [4/16] %v2307_v20, 128  ;;  %v205_v6 = vpop.trf.xlu1  ;;  %1395 = vxpose.xlu0.b32.cont [4/16] %v2309_v9, 128  ;;  %v173_v35 = vpop.trf.xlu0  ;;  %v1266_v56 = vadd.f32 %v1264_v14, %v1258_v11  ;;  %v1279_v20 = vrot.slane %v2115_v41, %v2552_v50  ;;  %v967_v9 = vrot.slane %v2126_v24, %v2552_v50  ;;  %v2435_v28 = vmul.f32 0.4472136, %v940_v52 }
  0xcd   :  { %225 = vst [vmem:[#allocation8 + $0x98] sm:$0xff] %v205_v6  ;;  %224 = vst [vmem:[#allocation8 + $0x90] sm:$0xff] %v173_v35  ;;  %v941_v53 = vadd.f32 %v939_v0, %v933_v49  ;;  %v1267_v62 = vadd.f32 %v1265_v2, %v1259_v21  ;;  %v1273_v36 = vmul.f32 %v1271_v7, %v2107_v19 }
  0xce   :  { %v968_v32 = vmul.f32 %v967_v9, %v2126_v24  ;;  %v1274_v12 = vadd.f32 %v1272_v13, %v1266_v56  ;;  %v1280_v50 = vmul.f32 %v1279_v20, %v2145_v18  ;;  %v1287_v30 = vrot.slane %v2064_v3, %v1730_v25 }
  0xcf   :  { %v969_v38 = vmul.f32 %v967_v9, %v2107_v19  ;;  %v1293_v7 = vrot.slane %v2066_v39, %v1730_v25  ;;  %v1275_v6 = vadd.f32 %v1273_v36, %v1267_v62  ;;  %v977_v35 = vmul.f32 %v975_v34, %v2115_v41 }
  0xd0   :  { %1428 = vxpose.xlu1.b32.cont [5/16] %v2318_v45, 128  ;;  %v206_v1 = vpop.trf.xlu1  ;;  %1396 = vxpose.xlu0.b32.cont [5/16] %v2333_v61, 128  ;;  %v174_v63 = vpop.trf.xlu0  ;;  %v947_v45 = vmul.f32 %v945_v44, %v2064_v3  ;;  %v953_v61 = vmul.f32 %v951_v57, %v2066_v39  ;;  %v970_v10 = vadd.f32 %v968_v32, %v962_v15 }
  0xd1   :  { %227 = vst [vmem:[#allocation8 + $0xc8] sm:$0xff] %v206_v1  ;;  %226 = vst [vmem:[#allocation8 + $0xc0] sm:$0xff] %v174_v63  ;;  %v1282_v14 = vadd.f32 %v1280_v50, %v1274_v12  ;;  %v1288_v11 = vmul.f32 %v1287_v30, %v2091_v54  ;;  %v1309_v44 = vrot.slane %v2107_v19, %v1730_v25 }
  0xd2   :  { %v955_v60 = vadd.f32 %v953_v61, %v947_v45  ;;  %v1294_v13 = vmul.f32 %v1293_v7, %v2100_v8  ;;  %v978_v22 = vadd.f32 %v976_v51, %v970_v10  ;;  %v1317_v9 = vrot.slane %v2115_v41, %v1730_v25 }
  0xd3   :  { %v983_v0 = vrot.slane %v2091_v54, %v1730_v25  ;;  %v989_v4 = vrot.slane %v2100_v8, %v1730_v25  ;;  %v1005_v49 = vrot.slane %v2126_v24, %v1730_v25  ;;  %v1013_v34 = vrot.slane %v2145_v18, %v1730_v25 }
  0xd4   :  { %1429 = vxpose.xlu1.b32.cont [6/16] %v2337_v40, 128  ;;  %v207_v5 = vpop.trf.xlu1  ;;  %1397 = vxpose.xlu0.b32.cont [6/16] %v2352_v43, 128  ;;  %v175_v16 = vpop.trf.xlu0  ;;  %v1301_v40 = vrot.slane %v2080_v58, %v1730_v25  ;;  %v1281_v43 = vmul.f32 %v1279_v20, %v2115_v41  ;;  %v963_v37 = vadd.f32 %v961_v27, %v955_v60  ;;  %v1385_v20 = vmul.f32 0.4472136, %v1245_v23 }
  0xd5   :  { %229 = vst [vmem:[#allocation8 + $0xf8] sm:$0xff] %v207_v5  ;;  %228 = vst [vmem:[#allocation8 + $0xf0] sm:$0xff] %v175_v16  ;;  %v1296_v47 = vadd.f32 %v1294_v13, %v1288_v11  ;;  %v984_v52 = vmul.f32 %v983_v0, %v2091_v54  ;;  %v990_v1 = vmul.f32 %v989_v4, %v2100_v8  ;;  %v1369_v23 = vmul.f32 0.4472136, %v941_v53 }
  0xd6   :  { %v1302_v57 = vmul.f32 %v1301_v40, %v2113_v59  ;;  %v971_v55 = vadd.f32 %v969_v38, %v963_v37  ;;  %v1289_v33 = vmul.f32 %v1287_v30, %v2064_v3  ;;  %v1283_v12 = vadd.f32 %v1281_v43, %v1275_v6  ;;  %v2553_v37 = vld [vmem:[#allocation15_spill] sm:$0xff] }
  0xd7   :  { %v1318_v50 = vmul.f32 %v1317_v9, %v2145_v18  ;;  %v1295_v21 = vmul.f32 %v1293_v7, %v2066_v39  ;;  %v992_v15 = vadd.f32 %v990_v1, %v984_v52  ;;  %v1006_v45 = vmul.f32 %v1005_v49, %v2126_v24 }
  0xd8   :  { %1430 = vxpose.xlu1.b32.cont [7/16] %v2357_v42, 128  ;;  %v208_v26 = vpop.trf.xlu1  ;;  %1398 = vxpose.xlu0.b32.cont [7/16] %v2370_v29, 128  ;;  %v176_v56 = vpop.trf.xlu0  ;;  %v997_v42 = vrot.slane %v2113_v59, %v1730_v25  ;;  %v1310_v29 = vmul.f32 %v1309_v44, %v2126_v24  ;;  %v1304_v17 = vadd.f32 %v1302_v57, %v1296_v47  ;;  %v1386_v60 = vmul.f32 0.4472136, %v1282_v14 }
  0xd9   :  { %231 = vst [vmem:[#allocation8 + $0x128] sm:$0xff] %v208_v26  ;;  %230 = vst [vmem:[#allocation8 + $0x120] sm:$0xff] %v176_v56  ;;  %v979_v25 = vadd.f32 %v977_v35, %v971_v55  ;;  %v1303_v61 = vmul.f32 %v1301_v40, %v2080_v58  ;;  %v1297_v27 = vadd.f32 %v1295_v21, %v1289_v33  ;;  %v1370_v35 = vmul.f32 0.4472136, %v978_v22 }
  0xda   :  { %v998_v63 = vmul.f32 %v997_v42, %v2113_v59  ;;  %v991_v53 = vmul.f32 %v989_v4, %v2066_v39  ;;  %v1312_v51 = vadd.f32 %v1310_v29, %v1304_v17  ;;  %v1014_v36 = vmul.f32 %v1013_v34, %v2145_v18 }
  0xdb   :  { %v999_v5 = vmul.f32 %v997_v42, %v2080_v58  ;;  %v1305_v30 = vadd.f32 %v1303_v61, %v1297_v27  ;;  %v1319_v38 = vmul.f32 %v1317_v9, %v2115_v41  ;;  %v1007_v43 = vmul.f32 %v1005_v49, %v2107_v19 }
  0xdc   :  { %1431 = vxpose.xlu1.b32.cont [8/16] %v2386_v31, 128  ;;  %v209_v32 = vpop.trf.xlu1  ;;  %1399 = vxpose.xlu0.b32.cont [8/16] %v2402_v48, 128  ;;  %v177_v2 = vpop.trf.xlu0  ;;  %v1311_v31 = vmul.f32 %v1309_v44, %v2107_v19  ;;  %v985_v48 = vmul.f32 %v983_v0, %v2064_v3  ;;  %v1000_v62 = vadd.f32 %v998_v63, %v992_v15  ;;  %v1387_v13 = vmul.f32 0.4472136, %v1283_v12 }
  0xdd   :  { %233 = vst [vmem:[#allocation8 + $0x158] sm:$0xff] %v209_v32  ;;  %232 = vst [vmem:[#allocation8 + $0x150] sm:$0xff] %v177_v2  ;;  %v1325_v11 = vrot.slane %v2064_v3, %v2553_v37  ;;  %v1347_v14 = vrot.slane %v2107_v19, %v2553_v37  ;;  %v1371_v0 = vmul.f32 0.4472136, %v979_v25  ;;  %v1015_v55 = vmul.f32 %v1013_v34, %v2115_v41 }
  0xde   :  { %v993_v7 = vadd.f32 %v991_v53, %v985_v48  ;;  %v1008_v40 = vadd.f32 %v1006_v45, %v1000_v62  ;;  %v1313_v44 = vadd.f32 %v1311_v31, %v1305_v30  ;;  %v1355_v29 = vrot.slane %v2115_v41, %v2553_v37  ;;  %v1514_v48 = vld [vmem:[#allocation7 + $0x18] sm:$0xff]  ;;  %v1516_v30 = vld [vmem:[#allocation7 + $0x28] sm:$0xff] }
  0xdf   :  { %v1326_v57 = vmul.f32 %v1325_v11, %v2091_v54  ;;  %v1348_v22 = vmul.f32 %v1347_v14, %v2126_v24  ;;  %v1021_v49 = vrot.slane %v2091_v54, %v2553_v37  ;;  %v1027_v17 = vrot.slane %v2100_v8, %v2553_v37 }
  0xe0   :  { %1432 = vxpose.xlu1.b32.cont [9/16] %v2423_v46, 128  ;;  %v210_v16 = vpop.trf.xlu1  ;;  %1400 = vxpose.xlu0.b32.cont [9/16] %v2435_v28, 128  ;;  %v178_v10 = vpop.trf.xlu0  ;;  %v1331_v46 = vrot.slane %v2066_v39, %v2553_v37  ;;  %v1001_v6 = vadd.f32 %v999_v5, %v993_v7  ;;  %v1339_v28 = vrot.slane %v2080_v58, %v2553_v37 }
  0xe1   :  { %235 = vst [vmem:[#allocation8 + $0x188] sm:$0xff] %v210_v16  ;;  %234 = vst [vmem:[#allocation8 + $0x180] sm:$0xff] %v178_v10  ;;  %v1320_v39 = vadd.f32 %v1318_v50, %v1312_v51  ;;  %v1016_v52 = vadd.f32 %v1014_v36, %v1008_v40  ;;  %v1035_v1 = vrot.slane %v2113_v59, %v2553_v37 }
  0xe2   :  { %v1332_v26 = vmul.f32 %v1331_v46, %v2100_v8  ;;  %v1340_v47 = vmul.f32 %v1339_v28, %v2113_v59  ;;  %v1009_v4 = vadd.f32 %v1007_v43, %v1001_v6  ;;  %v1043_v63 = vrot.slane %v2126_v24, %v2553_v37 }
  0xe3   :  { %v1051_v33 = vrot.slane %v2145_v18, %v2553_v37  ;;  %v1022_v12 = vmul.f32 %v1021_v49, %v2091_v54  ;;  %v1028_v50 = vmul.f32 %v1027_v17, %v2100_v8  ;;  %v1327_v21 = vmul.f32 %v1325_v11, %v2064_v3  ;;  %v1515_v3 = vld [vmem:[#allocation7 + $0x8] sm:$0xff] }
  0xe4   :  { %1433 = vxpose.xlu1.b32.cont [10/16] %v1385_v20, 128  ;;  %v211_v56 = vpop.trf.xlu1  ;;  %1401 = vxpose.xlu0.b32.cont [10/16] %v1369_v23, 128  ;;  %v179_v9 = vpop.trf.xlu0  ;;  %v1334_v42 = vadd.f32 %v1332_v26, %v1326_v57  ;;  %v1321_v20 = vadd.f32 %v1319_v38, %v1313_v44  ;;  %v1388_v23 = vmul.f32 0.4472136, %v1320_v39  ;;  %v1017_v25 = vadd.f32 %v1015_v55, %v1009_v4 }
  0xe5   :  { %237 = vst [vmem:[#allocation8 + $0x1b8] sm:$0xff] %v211_v56  ;;  %236 = vst [vmem:[#allocation8 + $0x1b0] sm:$0xff] %v179_v9  ;;  %v1356_v45 = vmul.f32 %v1355_v29, %v2145_v18  ;;  %v1036_v61 = vmul.f32 %v1035_v1, %v2113_v59  ;;  %v1030_v27 = vadd.f32 %v1028_v50, %v1022_v12  ;;  %v1372_v10 = vmul.f32 0.4472136, %v1016_v52 }
  0xe6   :  { %v1342_v34 = vadd.f32 %v1340_v47, %v1334_v42  ;;  %v1044_v31 = vmul.f32 %v1043_v63, %v2126_v24  ;;  %v1333_v53 = vmul.f32 %v1514_v48, %v1331_v46  ;;  %v1341_v51 = vmul.f32 %v1339_v28, %v2080_v58 }
  0xe7   :  { %v1052_v54 = vmul.f32 %v1051_v33, %v2145_v18  ;;  %v1349_v8 = vmul.f32 %v1347_v14, %v2107_v19  ;;  %v1023_v62 = vmul.f32 %v1515_v3, %v1021_v49  ;;  %v1029_v36 = vmul.f32 %v1514_v48, %v1027_v17 }
  0xe8   :  { %1434 = vxpose.xlu1.b32.cont [11/16] %v1386_v60, 128  ;;  %v212_v32 = vpop.trf.xlu1  ;;  %1402 = vxpose.xlu0.b32.cont [11/16] %v1370_v35, 128  ;;  %v180_v2 = vpop.trf.xlu0  ;;  %v1350_v15 = vadd.f32 %v1348_v22, %v1342_v34  ;;  %v1038_v59 = vadd.f32 %v1036_v61, %v1030_v27  ;;  %v1335_v60 = vadd.f32 %v1333_v53, %v1327_v21  ;;  %v1389_v40 = vmul.f32 0.4472136, %v1321_v20 }
  0xe9   :  { %239 = vst [vmem:[#allocation8 + $0x1e8] sm:$0xff] %v212_v32  ;;  %238 = vst [vmem:[#allocation8 + $0x1e0] sm:$0xff] %v180_v2  ;;  %v1037_v24 = vmul.f32 %v1516_v30, %v1035_v1  ;;  %v1031_v38 = vadd.f32 %v1029_v36, %v1023_v62  ;;  %v1045_v58 = vmul.f32 %v1043_v63, %v2107_v19  ;;  %v1373_v6 = vmul.f32 0.4472136, %v1017_v25 }
  0xea   :  { %v1046_v18 = vadd.f32 %v1044_v31, %v1038_v59  ;;  %v1343_v7 = vadd.f32 %v1341_v51, %v1335_v60  ;;  %v1358_v43 = vadd.f32 %v1356_v45, %v1350_v15  ;;  %v1357_v37 = vmul.f32 %v1355_v29, %v2115_v41 }
  0xeb   :  { %v1039_v11 = vadd.f32 %v1037_v24, %v1031_v38  ;;  %v1053_v35 = vmul.f32 %v1051_v33, %v2115_v41 }
  0xec   :  { %1435 = vxpose.xlu1.b32.cont [12/16] %v1387_v13, 128  ;;  %v213_v5 = vpop.trf.xlu1  ;;  %1403 = vxpose.xlu0.b32.cont [12/16] %v1371_v0, 128  ;;  %v181_v16 = vpop.trf.xlu0  ;;  %v1054_v28 = vadd.f32 %v1052_v54, %v1046_v18  ;;  %v1351_v14 = vadd.f32 %v1349_v8, %v1343_v7  ;;  %v1390_v26 = vmul.f32 0.4472136, %v1358_v43 }
  0xed   :  { %241 = vst [vmem:[#allocation8 + $0x218] sm:$0xff] %v213_v5  ;;  %240 = vst [vmem:[#allocation8 + $0x210] sm:$0xff] %v181_v16  ;;  %v1047_v13 = vadd.f32 %v1045_v58, %v1039_v11 }
  0xee   :  { %v1374_v56 = vmul.f32 0.4472136, %v1054_v28  ;;  %v1359_v9 = vadd.f32 %v1357_v37, %v1351_v14 }
  0xef   :  { %v1055_v0 = vadd.f32 %v1053_v35, %v1047_v13 }
  0xf0   :  { %1436 = vxpose.xlu1.b32.cont [13/16] %v1388_v23, 128  ;;  %v214_v46 = vpop.trf.xlu1  ;;  %1404 = vxpose.xlu0.b32.cont [13/16] %v1372_v10, 128  ;;  %v182_v44 = vpop.trf.xlu0  ;;  %v1391_v47 = vmul.f32 0.4472136, %v1359_v9 }
  0xf1   :  { %243 = vst [vmem:[#allocation8 + $0x248] sm:$0xff] %v214_v46  ;;  %242 = vst [vmem:[#allocation8 + $0x240] sm:$0xff] %v182_v44  ;;  %v1375_v4 = vmul.f32 0.4472136, %v1055_v0 }
  0xf4   :  { %1437 = vxpose.xlu1.b32.cont [14/16] %v1389_v40, 128  ;;  %v215_v19 = vpop.trf.xlu1  ;;  %1405 = vxpose.xlu0.b32.cont [14/16] %v1373_v6, 128  ;;  %v183_v57 = vpop.trf.xlu0 }
  0xf5   :  { %245 = vst [vmem:[#allocation8 + $0x278] sm:$0xff] %v215_v19  ;;  %244 = vst [vmem:[#allocation8 + $0x270] sm:$0xff] %v183_v57 }
  0xf8   :  { %1438 = vxpose.xlu1.b32.cont [15/16] %v1390_v26, 128  ;;  %v216_v39 = vpop.trf.xlu1  ;;  %1406 = vxpose.xlu0.b32.cont [15/16] %v1374_v56, 128  ;;  %v184_v55 = vpop.trf.xlu0 }
  0xf9   :  { %247 = vst [vmem:[#allocation8 + $0x2a8] sm:$0xff] %v216_v39  ;;  %246 = vst [vmem:[#allocation8 + $0x2a0] sm:$0xff] %v184_v55 }
  0xfc   :  { %1439 = vxpose.xlu1.b32.end [16/16] %v1391_v47, 128  ;;  %v217_v41 = vpop.trf.xlu1  ;;  %1407 = vxpose.xlu0.b32.end [16/16] %v1375_v4, 128  ;;  %v185_v42 = vpop.trf.xlu0 }
  0xfd   :  { %249 = vst [vmem:[#allocation8 + $0x2d8] sm:$0xff] %v217_v41  ;;  %248 = vst [vmem:[#allocation8 + $0x2d0] sm:$0xff] %v185_v42 }
 0x100   :  { %v690_v22 = vpop.trf.xlu1  ;;  %v658_v29 = vpop.trf.xlu0 }
 0x101   :  { %707 = vst [vmem:[#allocation8 + $0x18] sm:$0xff] %v690_v22  ;;  %706 = vst [vmem:[#allocation8 + $0x10] sm:$0xff] %v658_v29 }
 0x104   :  { %v691_v52 = vpop.trf.xlu1  ;;  %v659_v20 = vpop.trf.xlu0 }
 0x105   :  { %709 = vst [vmem:[#allocation8 + $0x48] sm:$0xff] %v691_v52  ;;  %708 = vst [vmem:[#allocation8 + $0x40] sm:$0xff] %v659_v20 }
 0x108   :  { %v692_v49 = vpop.trf.xlu1  ;;  %v660_v17 = vpop.trf.xlu0 }
 0x109   :  { %711 = vst [vmem:[#allocation8 + $0x78] sm:$0xff] %v692_v49  ;;  %710 = vst [vmem:[#allocation8 + $0x70] sm:$0xff] %v660_v17 }
 0x10c   :  { %v693_v34 = vpop.trf.xlu1  ;;  %v661_v1 = vpop.trf.xlu0 }
 0x10d   :  { %713 = vst [vmem:[#allocation8 + $0xa8] sm:$0xff] %v693_v34  ;;  %712 = vst [vmem:[#allocation8 + $0xa0] sm:$0xff] %v661_v1 }
 0x110   :  { %v694_v63 = vpop.trf.xlu1  ;;  %v662_v33 = vpop.trf.xlu0 }
 0x111   :  { %715 = vst [vmem:[#allocation8 + $0xd8] sm:$0xff] %v694_v63  ;;  %714 = vst [vmem:[#allocation8 + $0xd0] sm:$0xff] %v662_v33 }
 0x114   :  { %v695_v32 = vpop.trf.xlu1  ;;  %v663_v2 = vpop.trf.xlu0 }
 0x115   :  { %717 = vst [vmem:[#allocation8 + $0x108] sm:$0xff] %v695_v32  ;;  %716 = vst [vmem:[#allocation8 + $0x100] sm:$0xff] %v663_v2 }
 0x118   :  { %v696_v23 = vpop.trf.xlu1  ;;  %v664_v12 = vpop.trf.xlu0 }
 0x119   :  { %719 = vst [vmem:[#allocation8 + $0x138] sm:$0xff] %v696_v23  ;;  %718 = vst [vmem:[#allocation8 + $0x130] sm:$0xff] %v664_v12 }
 0x11c   :  { %v697_v50 = vpop.trf.xlu1  ;;  %v665_v21 = vpop.trf.xlu0 }
 0x11d   :  { %721 = vst [vmem:[#allocation8 + $0x168] sm:$0xff] %v697_v50  ;;  %720 = vst [vmem:[#allocation8 + $0x160] sm:$0xff] %v665_v21 }
 0x120   :  { %v698_v25 = vpop.trf.xlu1  ;;  %v666_v15 = vpop.trf.xlu0 }
 0x121   :  { %723 = vst [vmem:[#allocation8 + $0x198] sm:$0xff] %v698_v25  ;;  %722 = vst [vmem:[#allocation8 + $0x190] sm:$0xff] %v666_v15 }
 0x124   :  { %v699_v45 = vpop.trf.xlu1  ;;  %v667_v61 = vpop.trf.xlu0 }
 0x125   :  { %725 = vst [vmem:[#allocation8 + $0x1c8] sm:$0xff] %v699_v45  ;;  %724 = vst [vmem:[#allocation8 + $0x1c0] sm:$0xff] %v667_v61 }
 0x128   :  { %v700_v27 = vpop.trf.xlu1  ;;  %v668_v31 = vpop.trf.xlu0 }
 0x129   :  { %727 = vst [vmem:[#allocation8 + $0x1f8] sm:$0xff] %v700_v27  ;;  %726 = vst [vmem:[#allocation8 + $0x1f0] sm:$0xff] %v668_v31 }
 0x12c   :  { %v701_v48 = vpop.trf.xlu1  ;;  %v669_v53 = vpop.trf.xlu0 }
 0x12d   :  { %729 = vst [vmem:[#allocation8 + $0x228] sm:$0xff] %v701_v48  ;;  %728 = vst [vmem:[#allocation8 + $0x220] sm:$0xff] %v669_v53 }
 0x130   :  { %v702_v51 = vpop.trf.xlu1  ;;  %v670_v54 = vpop.trf.xlu0 }
 0x131   :  { %731 = vst [vmem:[#allocation8 + $0x258] sm:$0xff] %v702_v51  ;;  %730 = vst [vmem:[#allocation8 + $0x250] sm:$0xff] %v670_v54 }
 0x134   :  { %v703_v8 = vpop.trf.xlu1  ;;  %v671_v3 = vpop.trf.xlu0 }
 0x135   :  { %733 = vst [vmem:[#allocation8 + $0x288] sm:$0xff] %v703_v8  ;;  %732 = vst [vmem:[#allocation8 + $0x280] sm:$0xff] %v671_v3 }
 0x138   :  { %v704_v62 = vpop.trf.xlu1  ;;  %v672_v36 = vpop.trf.xlu0 }
 0x139   :  { %735 = vst [vmem:[#allocation8 + $0x2b8] sm:$0xff] %v704_v62  ;;  %734 = vst [vmem:[#allocation8 + $0x2b0] sm:$0xff] %v672_v36 }
 0x13c   :  { %v705_v5 = vpop.trf.xlu1  ;;  %v673_v16 = vpop.trf.xlu0 }
 0x13d   :  { %737 = vst [vmem:[#allocation8 + $0x2e8] sm:$0xff] %v705_v5  ;;  %736 = vst [vmem:[#allocation8 + $0x2e0] sm:$0xff] %v673_v16 }
 0x140   :  { %v1440_v10 = vpop.trf.xlu1  ;;  %v1408_v59 = vpop.trf.xlu0 }
 0x141   :  { %1457 = vst [vmem:[#allocation8 + $0x28] sm:$0xff] %v1440_v10  ;;  %1456 = vst [vmem:[#allocation8 + $0x20] sm:$0xff] %v1408_v59 }
 0x144   :  { %v1441_v60 = vpop.trf.xlu1  ;;  %v1409_v30 = vpop.trf.xlu0 }
 0x145   :  { %1459 = vst [vmem:[#allocation8 + $0x58] sm:$0xff] %v1441_v60  ;;  %1458 = vst [vmem:[#allocation8 + $0x50] sm:$0xff] %v1409_v30 }
 0x148   :  { %v1442_v24 = vpop.trf.xlu1  ;;  %v1410_v38 = vpop.trf.xlu0 }
 0x149   :  { %1461 = vst [vmem:[#allocation8 + $0x88] sm:$0xff] %v1442_v24  ;;  %1460 = vst [vmem:[#allocation8 + $0x80] sm:$0xff] %v1410_v38 }
 0x14c   :  { %v1443_v58 = vpop.trf.xlu1  ;;  %v1411_v18 = vpop.trf.xlu0 }
 0x14d   :  { %1463 = vst [vmem:[#allocation8 + $0xb8] sm:$0xff] %v1443_v58  ;;  %1462 = vst [vmem:[#allocation8 + $0xb0] sm:$0xff] %v1411_v18 }
 0x150   :  { %v1444_v7 = vpop.trf.xlu1  ;;  %v1412_v40 = vpop.trf.xlu0 }
 0x151   :  { %1465 = vst [vmem:[#allocation8 + $0xe8] sm:$0xff] %v1444_v7  ;;  %1464 = vst [vmem:[#allocation8 + $0xe0] sm:$0xff] %v1412_v40 }
 0x154   :  { %v1445_v43 = vpop.trf.xlu1  ;;  %v1413_v37 = vpop.trf.xlu0 }
 0x155   :  { %1467 = vst [vmem:[#allocation8 + $0x118] sm:$0xff] %v1445_v43  ;;  %1466 = vst [vmem:[#allocation8 + $0x110] sm:$0xff] %v1413_v37 }
 0x158   :  { %v1446_v11 = vpop.trf.xlu1  ;;  %v1414_v46 = vpop.trf.xlu0 }
 0x159   :  { %1469 = vst [vmem:[#allocation8 + $0x148] sm:$0xff] %v1446_v11  ;;  %1468 = vst [vmem:[#allocation8 + $0x140] sm:$0xff] %v1414_v46 }
 0x15c   :  { %v1447_v44 = vpop.trf.xlu1  ;;  %v1415_v6 = vpop.trf.xlu0 }
 0x15d   :  { %1471 = vst [vmem:[#allocation8 + $0x178] sm:$0xff] %v1447_v44  ;;  %1470 = vst [vmem:[#allocation8 + $0x170] sm:$0xff] %v1415_v6 }
 0x160   :  { %v1448_v28 = vpop.trf.xlu1  ;;  %v1416_v14 = vpop.trf.xlu0 }
 0x161   :  { %1473 = vst [vmem:[#allocation8 + $0x1a8] sm:$0xff] %v1448_v28  ;;  %1472 = vst [vmem:[#allocation8 + $0x1a0] sm:$0xff] %v1416_v14 }
 0x164   :  { %v1449_v35 = vpop.trf.xlu1  ;;  %v1417_v13 = vpop.trf.xlu0 }
 0x165   :  { %1475 = vst [vmem:[#allocation8 + $0x1d8] sm:$0xff] %v1449_v35  ;;  %1474 = vst [vmem:[#allocation8 + $0x1d0] sm:$0xff] %v1417_v13 }
 0x168   :  { %v1450_v19 = vpop.trf.xlu1  ;;  %v1418_v57 = vpop.trf.xlu0 }
 0x169   :  { %1477 = vst [vmem:[#allocation8 + $0x208] sm:$0xff] %v1450_v19  ;;  %1476 = vst [vmem:[#allocation8 + $0x200] sm:$0xff] %v1418_v57 }
 0x16c   :  { %v1451_v26 = vpop.trf.xlu1  ;;  %v1419_v56 = vpop.trf.xlu0 }
 0x16d   :  { %1479 = vst [vmem:[#allocation8 + $0x238] sm:$0xff] %v1451_v26  ;;  %1478 = vst [vmem:[#allocation8 + $0x230] sm:$0xff] %v1419_v56 }
 0x170   :  { %v1452_v9 = vpop.trf.xlu1  ;;  %v1420_v0 = vpop.trf.xlu0 }
 0x171   :  { %1481 = vst [vmem:[#allocation8 + $0x268] sm:$0xff] %v1452_v9  ;;  %1480 = vst [vmem:[#allocation8 + $0x260] sm:$0xff] %v1420_v0 }
 0x174   :  { %v1453_v39 = vpop.trf.xlu1  ;;  %v1421_v55 = vpop.trf.xlu0 }
 0x175   :  { %1483 = vst [vmem:[#allocation8 + $0x298] sm:$0xff] %v1453_v39  ;;  %1482 = vst [vmem:[#allocation8 + $0x290] sm:$0xff] %v1421_v55 }
 0x178   :  { %v1454_v47 = vpop.trf.xlu1  ;;  %v1422_v4 = vpop.trf.xlu0 }
 0x179   :  { %1485 = vst [vmem:[#allocation8 + $0x2c8] sm:$0xff] %v1454_v47  ;;  %1484 = vst [vmem:[#allocation8 + $0x2c0] sm:$0xff] %v1422_v4 }
 0x17c   :  { %v1455_v41 = vpop.trf.xlu1  ;;  %v1423_v42 = vpop.trf.xlu0 }
 0x17d   :  { %1487 = vst [vmem:[#allocation8 + $0x2f8] sm:$0xff] %v1455_v41  ;;  %1486 = vst [vmem:[#allocation8 + $0x2f0] sm:$0xff] %v1423_v42 }
 0x17e   :  { %1594 = shalt.err (!%p1591_p0)
}
 0x17f   :  { %s1595_s25 = scalar_lea.hbm %s2537_s3, 12288 }
 0x180   :  { %p1596_p1 = scmp.ne.s32.totalorder %s2537_s3, %s1595_s25  ;;  %p1599_p2 = scmp.lt.u32.totalorder %s1595_s25, %s2537_s3 }
 0x182   :  { %p1601_p3 = pnand %p1599_p2, %p1596_p1 }
 0x184   :  { %1604 = shalt.err (!%p1601_p3)
}
 0x185   :  { %s1617_s30 = smov 768   ;;  %s1618_s4 = smov 48  }
 0x186   :  { %1499 = dma.vmem_to_hbm [thread:$0]  %s1494_s21, 12288, %s2537_s3, [#allocation4], %s1617_s30, %s1617_s30, %s1618_s4  }
 0x187   :  { %1609 = dma.done.wait [#allocation4], 12288  }
 0x188   :  { %1610 = vsyncadd [#allocation4], 4294955008 }
 0x189   :  { %1503 = vsyncpa [#allocation3], 1 }
 0x18a   :  { %1504 = vsyncpa [#allocation6], 1 }
 0x18b   :  { %1505 = vsyncpa [#allocation4], 1 }

</bundles_post_ra>
